<compile_context>
chip_gen: v7x
topology: tpu7x:2x2x1
jax: 0.10.0
libtpu: 0.0.40
codegen_flags: <defaults>
</compile_context>

<pallas_src>
import functools

import numpy as np

import jax
import jax.numpy as jnp
from jax import lax
from jax.experimental import pallas as pl
from jax.experimental.pallas import tpu as pltpu

IN_CH = 3
MID_CH = 16
EPS = 1e-5        # nn.InstanceNorm2d default


def _kernel(x_ref, m_ref, w1_ref, b1_ref, w2_ref, b2_ref, g_ref, be_ref,
            o_ref, p2_ref, *, H, W, NB):
    HW = H * W
    L = NB * HW

    # Hoisted boundary masks, loaded once as (1, L) rows; the center tap (t=4)
    # needs no mask.  They broadcast along the sublane/channel axis for free
    # and are reused by BOTH convs.
    masks = [m_ref[pl.ds(t, 1), :] if t != 4 else None for t in range(9)]

    # Fold the batch onto the lane axis: (NB, C, HW) -> (C, NB*HW).  Each
    # per-image slab is 2 full lane tiles wide, so this is an aligned lane
    # concat (cheap vreg placement, no HBM transpose in the wrapper).
    if NB > 1:
        x = jnp.concatenate([x_ref[n] for n in range(NB)], axis=1)
    else:
        x = x_ref[0]

    def taps(img):
        """The 9 shifted+masked 3x3 taps of a (Cin, L) image, tap-major."""
        out = []
        for dy in range(3):
            for dx in range(3):
                t = dy * 3 + dx
                if t == 4:
                    out.append(img)
                else:
                    off = (dy - 1) * W + (dx - 1)
                    # Lane rotation lands on the XLU slot (free filler); the
                    # per-image mask zeroes out-of-image (and cross-image
                    # seam / wrap-around) taps.
                    out.append(pltpu.roll(img, shift=(-off) % L, axis=1) * masks[t])
        return out

    # conv1 + ReLU: register-level im2col -> ONE MXU matmul.  No VMEM scratch,
    # no zero-padding rows, no partial-sublane stores, 27-row contraction.
    patches1 = jnp.concatenate(taps(x), axis=0)                 # (9*Cin, L)
    h1 = jnp.dot(w1_ref[...], patches1,
                 preferred_element_type=jnp.float32,
                 precision=lax.Precision.HIGHEST) + b1_ref[...]
    h1 = jnp.maximum(h1, 0.0)                                   # (MID_CH, L)

    # conv2: the 144-row im2col would blow the vreg budget, so stage it in a
    # VMEM scratch.  Each 16-row tap chunk starts at a tile-aligned sublane
    # offset -> full (unmasked) stores.
    for t, patch in enumerate(taps(h1)):
        p2_ref[pl.ds(t * MID_CH, MID_CH), :] = patch
    y = jnp.dot(w2_ref[...], p2_ref[...],
                preferred_element_type=jnp.float32,
                precision=lax.Precision.HIGHEST) + b2_ref[...]  # (Cin, L)

    # InstanceNorm2d: per-instance, per-channel stats over HW.  Single pass:
    # sum(y) and sum(y*y) are independent lane reductions, biased variance
    # via E[y^2] - mean^2, eps inside the rsqrt (matches PyTorch).  gamma is
    # folded into the rsqrt scale so the big slab sees one mul + one add.
    inv_hw = 1.0 / HW
    for n in range(NB):
        yn = y[:, n * HW:(n + 1) * HW]                          # (Cin, HW)
        s1 = jnp.sum(yn, axis=1, keepdims=True)
        s2 = jnp.sum(yn * yn, axis=1, keepdims=True)
        mean = s1 * inv_hw
        var = s2 * inv_hw - mean * mean
        scale = g_ref[...] * lax.rsqrt(var + EPS)               # (Cin, 1)
        shift = be_ref[...] - mean * scale                      # (Cin, 1)
        o_ref[n] = (yn * scale + shift).astype(o_ref.dtype)


def _boundary_masks(H, W, NB):
    """(9, NB*H*W) f32 masks, 1.0 where the tap stays inside its own image."""
    HW = H * W
    p = np.arange(NB * HW)
    row = (p % HW) // W        # per-image local coordinates (seam-safe)
    col = p % W
    m = np.ones((9, NB * HW), np.float32)
    for dy in range(3):
        for dx in range(3):
            r = row + dy - 1
            c = col + dx - 1
            m[dy * 3 + dx] = ((r >= 0) & (r < H) & (c >= 0) & (c < W))
    return m


def low_res_wavelet_path(x_nchw, w1, b1, w2, b2, gamma, beta, *, fold_batch=None):
    """x_nchw: (N, C, H, W) f32; w1: (3,3,Cin,Cmid) HWIO; w2: (3,3,Cmid,Cin)."""
    N, C, H, W = x_nchw.shape
    HW = H * W

    if fold_batch is None:
        # Tiny per-image work => latency / per-step-overhead bound: fold the
        # whole batch into ONE grid step on the lane axis.  For large images
        # keep grid=(N,) "parallel" so v7x's two TensorCores split the batch
        # (and the folded conv2 scratch stays small).
        fold_batch = (N * HW <= 8192)
    NB = N if fold_batch else 1
    L = NB * HW

    # (N, C, HW) layout: NCHW -> (N, C, HW) is a free reshape (no HBM transpose).
    x_flat = x_nchw.reshape(N, C, HW)

    # im2col weight matrices, tap-major along the contraction axis (no padding).
    w1_mat = jnp.transpose(w1.reshape(9, C, MID_CH), (2, 0, 1)).reshape(MID_CH, 9 * C)
    w2_mat = jnp.transpose(w2.reshape(9, MID_CH, C), (2, 0, 1)).reshape(C, 9 * MID_CH)
    b1_2d = b1.reshape(MID_CH, 1)
    b2_2d = b2.reshape(C, 1)
    g_2d = gamma.reshape(C, 1)
    be_2d = beta.reshape(C, 1)
    masks = jnp.asarray(_boundary_masks(H, W, NB))      # host-built constant

    kernel = functools.partial(_kernel, H=H, W=W, NB=NB)
    out_flat = pl.pallas_call(
        kernel,
        out_shape=jax.ShapeDtypeStruct((N, C, HW), jnp.float32),
        grid_spec=pltpu.PrefetchScalarGridSpec(
            num_scalar_prefetch=0,
            grid=(N // NB,),
            in_specs=[
                pl.BlockSpec((NB, C, HW), lambda g: (g, 0, 0)),       # x (NB images)
                pl.BlockSpec((9, L), lambda g: (0, 0)),               # boundary masks
                pl.BlockSpec((MID_CH, 9 * C), lambda g: (0, 0)),      # conv1 weight (im2col)
                pl.BlockSpec((MID_CH, 1), lambda g: (0, 0)),          # conv1 bias
                pl.BlockSpec((C, 9 * MID_CH), lambda g: (0, 0)),      # conv2 weight (im2col)
                pl.BlockSpec((C, 1), lambda g: (0, 0)),               # conv2 bias
                pl.BlockSpec((C, 1), lambda g: (0, 0)),               # IN gamma
                pl.BlockSpec((C, 1), lambda g: (0, 0)),               # IN beta
            ],
            out_specs=pl.BlockSpec((NB, C, HW), lambda g: (g, 0, 0)),
            scratch_shapes=[
                pltpu.VMEM((9 * MID_CH, L), jnp.float32),   # conv2 im2col patches
            ],
        ),
        compiler_params=pltpu.CompilerParams(
            dimension_semantics=("parallel",),   # only matters on the grid=(N,) path
        ),
    )(x_flat, masks, w1_mat, b1_2d, w2_mat, b2_2d, g_2d, be_2d)

    return out_flat.reshape(N, C, H, W)  # free reshape back to NCHW


def reference(x_nchw, w1, b1, w2, b2, gamma, beta):
    """Pure-JAX reference matching the PyTorch module semantics."""
    dn = ("NHWC", "HWIO", "NHWC")
    x = jnp.transpose(x_nchw, (0, 2, 3, 1))
    h = jax.lax.conv_general_dilated(
        x, w1, (1, 1), "SAME", dimension_numbers=dn,
        precision=jax.lax.Precision.HIGHEST) + b1
    h = jnp.maximum(h, 0.0)
    y = jax.lax.conv_general_dilated(
        h, w2, (1, 1), "SAME", dimension_numbers=dn,
        precision=jax.lax.Precision.HIGHEST) + b2
    mean = y.mean(axis=(1, 2), keepdims=True)
    var = ((y - mean) ** 2).mean(axis=(1, 2), keepdims=True)
    yn = (y - mean) * jax.lax.rsqrt(var + EPS)
    return jnp.transpose(yn * gamma + beta, (0, 3, 1, 2))


if __name__ == "__main__":
    N, H, W = 2, 16, 16

    key = jax.random.PRNGKey(0)
    ks = jax.random.split(key, 7)
    x = jax.random.normal(ks[0], (N, IN_CH, H, W), jnp.float32)
    # Deterministic synthetic parameters (shapes per nn.Conv2d / InstanceNorm2d).
    w1 = jax.random.normal(ks[1], (3, 3, IN_CH, MID_CH), jnp.float32) * 0.2
    b1 = jax.random.normal(ks[2], (MID_CH,), jnp.float32) * 0.1
    w2 = jax.random.normal(ks[3], (3, 3, MID_CH, IN_CH), jnp.float32) * 0.2
    b2 = jax.random.normal(ks[4], (IN_CH,), jnp.float32) * 0.1
    gamma = 1.0 + 0.1 * jax.random.normal(ks[5], (IN_CH,), jnp.float32)
    beta = 0.1 * jax.random.normal(ks[6], (IN_CH,), jnp.float32)

    out = low_res_wavelet_path(x, w1, b1, w2, b2, gamma, beta)
    out = jax.block_until_ready(out)

    ref = jax.block_until_ready(reference(x, w1, b1, w2, b2, gamma, beta))
    assert out.shape == (N, IN_CH, H, W), out.shape
    assert jnp.allclose(out, ref, atol=1e-3, rtol=1e-3), (
        float(jnp.max(jnp.abs(out - ref))))

    print("KERNEL_OK")
</pallas_src>

<mosaic_0001>
module attributes {stable_mosaic.version = 11 : i64} {
  func.func @_kernel(%arg0: i32, %arg1: memref<2x3x256xf32, #tpu.memory_space<vmem>>, %arg2: memref<9x512xf32, #tpu.memory_space<vmem>>, %arg3: memref<16x27xf32, #tpu.memory_space<vmem>>, %arg4: memref<16x1xf32, #tpu.memory_space<vmem>>, %arg5: memref<3x144xf32, #tpu.memory_space<vmem>>, %arg6: memref<3x1xf32, #tpu.memory_space<vmem>>, %arg7: memref<3x1xf32, #tpu.memory_space<vmem>>, %arg8: memref<3x1xf32, #tpu.memory_space<vmem>>, %arg9: memref<2x3x256xf32, #tpu.memory_space<vmem>>, %arg10: memref<144x512xf32, #tpu.memory_space<vmem>>) attributes {dimension_semantics = [#tpu.dimension_semantics<parallel>], iteration_bounds = array<i64: 1>, scalar_prefetch = 0 : i64, scratch_operands = 1 : i64, tpu.core_type = #tpu.core_type<tc>, window_params = [{transform_indices = @transform_0, window_bounds = array<i64: 2, 3, 256>}, {pipeline_mode = #tpu.pipeline_mode<synchronous>, transform_indices = @transform_1, window_bounds = array<i64: 9, 512>}, {pipeline_mode = #tpu.pipeline_mode<synchronous>, transform_indices = @transform_2, window_bounds = array<i64: 16, 27>}, {pipeline_mode = #tpu.pipeline_mode<synchronous>, transform_indices = @transform_3, window_bounds = array<i64: 16, 1>}, {pipeline_mode = #tpu.pipeline_mode<synchronous>, transform_indices = @transform_4, window_bounds = array<i64: 3, 144>}, {pipeline_mode = #tpu.pipeline_mode<synchronous>, transform_indices = @transform_5, window_bounds = array<i64: 3, 1>}, {pipeline_mode = #tpu.pipeline_mode<synchronous>, transform_indices = @transform_6, window_bounds = array<i64: 3, 1>}, {pipeline_mode = #tpu.pipeline_mode<synchronous>, transform_indices = @transform_7, window_bounds = array<i64: 3, 1>}, {transform_indices = @transform_8, window_bounds = array<i64: 2, 3, 256>}]} {
    %c0 = arith.constant 0 : index
    %c0_0 = arith.constant 0 : index
    %0 = vector.load %arg2[%c0, %c0_0] : memref<9x512xf32, #tpu.memory_space<vmem>>, vector<1x512xf32>
    %c1 = arith.constant 1 : index
    %c0_1 = arith.constant 0 : index
    %1 = vector.load %arg2[%c1, %c0_1] : memref<9x512xf32, #tpu.memory_space<vmem>>, vector<1x512xf32>
    %c2 = arith.constant 2 : index
    %c0_2 = arith.constant 0 : index
    %2 = vector.load %arg2[%c2, %c0_2] : memref<9x512xf32, #tpu.memory_space<vmem>>, vector<1x512xf32>
    %c3 = arith.constant 3 : index
    %c0_3 = arith.constant 0 : index
    %3 = vector.load %arg2[%c3, %c0_3] : memref<9x512xf32, #tpu.memory_space<vmem>>, vector<1x512xf32>
    %c5 = arith.constant 5 : index
    %c0_4 = arith.constant 0 : index
    %4 = vector.load %arg2[%c5, %c0_4] : memref<9x512xf32, #tpu.memory_space<vmem>>, vector<1x512xf32>
    %c6 = arith.constant 6 : index
    %c0_5 = arith.constant 0 : index
    %5 = vector.load %arg2[%c6, %c0_5] : memref<9x512xf32, #tpu.memory_space<vmem>>, vector<1x512xf32>
    %c7 = arith.constant 7 : index
    %c0_6 = arith.constant 0 : index
    %6 = vector.load %arg2[%c7, %c0_6] : memref<9x512xf32, #tpu.memory_space<vmem>>, vector<1x512xf32>
    %c8 = arith.constant 8 : index
    %c0_7 = arith.constant 0 : index
    %7 = vector.load %arg2[%c8, %c0_7] : memref<9x512xf32, #tpu.memory_space<vmem>>, vector<1x512xf32>
    %c0_8 = arith.constant 0 : index
    %c0_9 = arith.constant 0 : index
    %c0_10 = arith.constant 0 : index
    %8 = vector.load %arg1[%c0_8, %c0_9, %c0_10] : memref<2x3x256xf32, #tpu.memory_space<vmem>>, vector<1x3x256xf32>
    %9 = vector.shape_cast %8 : vector<1x3x256xf32> to vector<3x256xf32>
    %c1_11 = arith.constant 1 : index
    %c0_12 = arith.constant 0 : index
    %c0_13 = arith.constant 0 : index
    %10 = vector.load %arg1[%c1_11, %c0_12, %c0_13] : memref<2x3x256xf32, #tpu.memory_space<vmem>>, vector<1x3x256xf32>
    %11 = vector.shape_cast %10 : vector<1x3x256xf32> to vector<3x256xf32>
    %12 = tpu.concatenate %9, %11 in 1 : vector<3x256xf32>, vector<3x256xf32> -> vector<3x512xf32>
    %c17_i32 = arith.constant 17 : i32
    %13 = tpu.dynamic_rotate %12 by %c17_i32 dim 1 : vector<3x512xf32>, i32 -> vector<3x512xf32>
    %14 = vector.broadcast %0 : vector<1x512xf32> to vector<3x512xf32>
    %15 = arith.mulf %13, %14 : vector<3x512xf32>
    %c16_i32 = arith.constant 16 : i32
    %16 = tpu.dynamic_rotate %12 by %c16_i32 dim 1 : vector<3x512xf32>, i32 -> vector<3x512xf32>
    %17 = vector.broadcast %1 : vector<1x512xf32> to vector<3x512xf32>
    %18 = arith.mulf %16, %17 : vector<3x512xf32>
    %c15_i32 = arith.constant 15 : i32
    %19 = tpu.dynamic_rotate %12 by %c15_i32 dim 1 : vector<3x512xf32>, i32 -> vector<3x512xf32>
    %20 = vector.broadcast %2 : vector<1x512xf32> to vector<3x512xf32>
    %21 = arith.mulf %19, %20 : vector<3x512xf32>
    %c1_i32 = arith.constant 1 : i32
    %22 = tpu.dynamic_rotate %12 by %c1_i32 dim 1 : vector<3x512xf32>, i32 -> vector<3x512xf32>
    %23 = vector.broadcast %3 : vector<1x512xf32> to vector<3x512xf32>
    %24 = arith.mulf %22, %23 : vector<3x512xf32>
    %c511_i32 = arith.constant 511 : i32
    %25 = tpu.dynamic_rotate %12 by %c511_i32 dim 1 : vector<3x512xf32>, i32 -> vector<3x512xf32>
    %26 = vector.broadcast %4 : vector<1x512xf32> to vector<3x512xf32>
    %27 = arith.mulf %25, %26 : vector<3x512xf32>
    %c497_i32 = arith.constant 497 : i32
    %28 = tpu.dynamic_rotate %12 by %c497_i32 dim 1 : vector<3x512xf32>, i32 -> vector<3x512xf32>
    %29 = vector.broadcast %5 : vector<1x512xf32> to vector<3x512xf32>
    %30 = arith.mulf %28, %29 : vector<3x512xf32>
    %c496_i32 = arith.constant 496 : i32
    %31 = tpu.dynamic_rotate %12 by %c496_i32 dim 1 : vector<3x512xf32>, i32 -> vector<3x512xf32>
    %32 = vector.broadcast %6 : vector<1x512xf32> to vector<3x512xf32>
    %33 = arith.mulf %31, %32 : vector<3x512xf32>
    %c495_i32 = arith.constant 495 : i32
    %34 = tpu.dynamic_rotate %12 by %c495_i32 dim 1 : vector<3x512xf32>, i32 -> vector<3x512xf32>
    %35 = vector.broadcast %7 : vector<1x512xf32> to vector<3x512xf32>
    %36 = arith.mulf %34, %35 : vector<3x512xf32>
    %37 = tpu.concatenate %15, %18, %21, %24, %12, %27, %30, %33, %36 in 0 : vector<3x512xf32>, vector<3x512xf32>, vector<3x512xf32>, vector<3x512xf32>, vector<3x512xf32>, vector<3x512xf32>, vector<3x512xf32>, vector<3x512xf32>, vector<3x512xf32> -> vector<27x512xf32>
    %c0_14 = arith.constant 0 : index
    %c0_15 = arith.constant 0 : index
    %38 = vector.load %arg3[%c0_14, %c0_15] : memref<16x27xf32, #tpu.memory_space<vmem>>, vector<16x27xf32>
    %cst = arith.constant dense<0.000000e+00> : vector<16x512xf32>
    %39 = tpu.matmul %38, %37, %cst {dimension_numbers = #tpu.dot_dimension_numbers<[1], [0], [0], [1], [0, 0, 1, 1], [], []>, precision = #tpu.contract_precision<fp32>} : vector<16x27xf32>, vector<27x512xf32>, vector<16x512xf32> -> vector<16x512xf32>
    %c0_16 = arith.constant 0 : index
    %c0_17 = arith.constant 0 : index
    %40 = vector.load %arg4[%c0_16, %c0_17] : memref<16x1xf32, #tpu.memory_space<vmem>>, vector<16x1xf32>
    %41 = vector.broadcast %40 : vector<16x1xf32> to vector<16x512xf32>
    %42 = arith.addf %39, %41 : vector<16x512xf32>
    %cst_18 = arith.constant 0.000000e+00 : f32
    %43 = vector.broadcast %cst_18 : f32 to vector<16x512xf32>
    %44 = arith.maximumf %42, %43 : vector<16x512xf32>
    %c17_i32_19 = arith.constant 17 : i32
    %45 = tpu.dynamic_rotate %44 by %c17_i32_19 dim 1 : vector<16x512xf32>, i32 -> vector<16x512xf32>
    %46 = vector.broadcast %0 : vector<1x512xf32> to vector<16x512xf32>
    %47 = arith.mulf %45, %46 : vector<16x512xf32>
    %c16_i32_20 = arith.constant 16 : i32
    %48 = tpu.dynamic_rotate %44 by %c16_i32_20 dim 1 : vector<16x512xf32>, i32 -> vector<16x512xf32>
    %49 = vector.broadcast %1 : vector<1x512xf32> to vector<16x512xf32>
    %50 = arith.mulf %48, %49 : vector<16x512xf32>
    %c15_i32_21 = arith.constant 15 : i32
    %51 = tpu.dynamic_rotate %44 by %c15_i32_21 dim 1 : vector<16x512xf32>, i32 -> vector<16x512xf32>
    %52 = vector.broadcast %2 : vector<1x512xf32> to vector<16x512xf32>
    %53 = arith.mulf %51, %52 : vector<16x512xf32>
    %c1_i32_22 = arith.constant 1 : i32
    %54 = tpu.dynamic_rotate %44 by %c1_i32_22 dim 1 : vector<16x512xf32>, i32 -> vector<16x512xf32>
    %55 = vector.broadcast %3 : vector<1x512xf32> to vector<16x512xf32>
    %56 = arith.mulf %54, %55 : vector<16x512xf32>
    %c511_i32_23 = arith.constant 511 : i32
    %57 = tpu.dynamic_rotate %44 by %c511_i32_23 dim 1 : vector<16x512xf32>, i32 -> vector<16x512xf32>
    %58 = vector.broadcast %4 : vector<1x512xf32> to vector<16x512xf32>
    %59 = arith.mulf %57, %58 : vector<16x512xf32>
    %c497_i32_24 = arith.constant 497 : i32
    %60 = tpu.dynamic_rotate %44 by %c497_i32_24 dim 1 : vector<16x512xf32>, i32 -> vector<16x512xf32>
    %61 = vector.broadcast %5 : vector<1x512xf32> to vector<16x512xf32>
    %62 = arith.mulf %60, %61 : vector<16x512xf32>
    %c496_i32_25 = arith.constant 496 : i32
    %63 = tpu.dynamic_rotate %44 by %c496_i32_25 dim 1 : vector<16x512xf32>, i32 -> vector<16x512xf32>
    %64 = vector.broadcast %6 : vector<1x512xf32> to vector<16x512xf32>
    %65 = arith.mulf %63, %64 : vector<16x512xf32>
    %c495_i32_26 = arith.constant 495 : i32
    %66 = tpu.dynamic_rotate %44 by %c495_i32_26 dim 1 : vector<16x512xf32>, i32 -> vector<16x512xf32>
    %67 = vector.broadcast %7 : vector<1x512xf32> to vector<16x512xf32>
    %68 = arith.mulf %66, %67 : vector<16x512xf32>
    %c0_27 = arith.constant 0 : index
    %c0_28 = arith.constant 0 : index
    %69 = vector.load %arg10[%c0_27, %c0_28] : memref<144x512xf32, #tpu.memory_space<vmem>>, vector<16x512xf32>
    tpu.vector_store %arg10[%c0_27, %c0_28], %47 {strides = array<i32>} : memref<144x512xf32, #tpu.memory_space<vmem>>, vector<16x512xf32>,
    %c16 = arith.constant 16 : index
    %c0_29 = arith.constant 0 : index
    %70 = vector.load %arg10[%c16, %c0_29] : memref<144x512xf32, #tpu.memory_space<vmem>>, vector<16x512xf32>
    tpu.vector_store %arg10[%c16, %c0_29], %50 {strides = array<i32>} : memref<144x512xf32, #tpu.memory_space<vmem>>, vector<16x512xf32>,
    %c32 = arith.constant 32 : index
    %c0_30 = arith.constant 0 : index
    %71 = vector.load %arg10[%c32, %c0_30] : memref<144x512xf32, #tpu.memory_space<vmem>>, vector<16x512xf32>
    tpu.vector_store %arg10[%c32, %c0_30], %53 {strides = array<i32>} : memref<144x512xf32, #tpu.memory_space<vmem>>, vector<16x512xf32>,
    %c48 = arith.constant 48 : index
    %c0_31 = arith.constant 0 : index
    %72 = vector.load %arg10[%c48, %c0_31] : memref<144x512xf32, #tpu.memory_space<vmem>>, vector<16x512xf32>
    tpu.vector_store %arg10[%c48, %c0_31], %56 {strides = array<i32>} : memref<144x512xf32, #tpu.memory_space<vmem>>, vector<16x512xf32>,
    %c64 = arith.constant 64 : index
    %c0_32 = arith.constant 0 : index
    %73 = vector.load %arg10[%c64, %c0_32] : memref<144x512xf32, #tpu.memory_space<vmem>>, vector<16x512xf32>
    tpu.vector_store %arg10[%c64, %c0_32], %44 {strides = array<i32>} : memref<144x512xf32, #tpu.memory_space<vmem>>, vector<16x512xf32>,
    %c80 = arith.constant 80 : index
    %c0_33 = arith.constant 0 : index
    %74 = vector.load %arg10[%c80, %c0_33] : memref<144x512xf32, #tpu.memory_space<vmem>>, vector<16x512xf32>
    tpu.vector_store %arg10[%c80, %c0_33], %59 {strides = array<i32>} : memref<144x512xf32, #tpu.memory_space<vmem>>, vector<16x512xf32>,
    %c96 = arith.constant 96 : index
    %c0_34 = arith.constant 0 : index
    %75 = vector.load %arg10[%c96, %c0_34] : memref<144x512xf32, #tpu.memory_space<vmem>>, vector<16x512xf32>
    tpu.vector_store %arg10[%c96, %c0_34], %62 {strides = array<i32>} : memref<144x512xf32, #tpu.memory_space<vmem>>, vector<16x512xf32>,
    %c112 = arith.constant 112 : index
    %c0_35 = arith.constant 0 : index
    %76 = vector.load %arg10[%c112, %c0_35] : memref<144x512xf32, #tpu.memory_space<vmem>>, vector<16x512xf32>
    tpu.vector_store %arg10[%c112, %c0_35], %65 {strides = array<i32>} : memref<144x512xf32, #tpu.memory_space<vmem>>, vector<16x512xf32>,
    %c128 = arith.constant 128 : index
    %c0_36 = arith.constant 0 : index
    %77 = vector.load %arg10[%c128, %c0_36] : memref<144x512xf32, #tpu.memory_space<vmem>>, vector<16x512xf32>
    tpu.vector_store %arg10[%c128, %c0_36], %68 {strides = array<i32>} : memref<144x512xf32, #tpu.memory_space<vmem>>, vector<16x512xf32>,
    %c0_37 = arith.constant 0 : index
    %c0_38 = arith.constant 0 : index
    %78 = vector.load %arg5[%c0_37, %c0_38] : memref<3x144xf32, #tpu.memory_space<vmem>>, vector<3x144xf32>
    %c0_39 = arith.constant 0 : index
    %c0_40 = arith.constant 0 : index
    %79 = vector.load %arg10[%c0_39, %c0_40] : memref<144x512xf32, #tpu.memory_space<vmem>>, vector<144x512xf32>
    %cst_41 = arith.constant dense<0.000000e+00> : vector<3x512xf32>
    %80 = tpu.matmul %78, %79, %cst_41 {dimension_numbers = #tpu.dot_dimension_numbers<[1], [0], [0], [1], [0, 0, 1, 1], [], []>, precision = #tpu.contract_precision<fp32>} : vector<3x144xf32>, vector<144x512xf32>, vector<3x512xf32> -> vector<3x512xf32>
    %c0_42 = arith.constant 0 : index
    %c0_43 = arith.constant 0 : index
    %81 = vector.load %arg6[%c0_42, %c0_43] : memref<3x1xf32, #tpu.memory_space<vmem>>, vector<3x1xf32>
    %82 = vector.broadcast %81 : vector<3x1xf32> to vector<3x512xf32>
    %83 = arith.addf %80, %82 : vector<3x512xf32>
    %84 = vector.extract_strided_slice %83 {offsets = [0, 0], sizes = [3, 256], strides = [1, 1]} : vector<3x512xf32> to vector<3x256xf32>
    %cst_44 = arith.constant dense<0.000000e+00> : vector<3xf32>
    %85 = vector.multi_reduction <add>, %84, %cst_44 [1] : vector<3x256xf32> to vector<3xf32>
    %86 = vector.shape_cast %85 : vector<3xf32> to vector<3x1xf32>
    %87 = arith.mulf %84, %84 : vector<3x256xf32>
    %cst_45 = arith.constant dense<0.000000e+00> : vector<3xf32>
    %88 = vector.multi_reduction <add>, %87, %cst_45 [1] : vector<3x256xf32> to vector<3xf32>
    %89 = vector.shape_cast %88 : vector<3xf32> to vector<3x1xf32>
    %cst_46 = arith.constant 3.906250e-03 : f32
    %90 = vector.broadcast %cst_46 : f32 to vector<3x1xf32>
    %91 = arith.mulf %86, %90 : vector<3x1xf32>
    %cst_47 = arith.constant 3.906250e-03 : f32
    %92 = vector.broadcast %cst_47 : f32 to vector<3x1xf32>
    %93 = arith.mulf %89, %92 : vector<3x1xf32>
    %94 = arith.mulf %91, %91 : vector<3x1xf32>
    %95 = arith.subf %93, %94 : vector<3x1xf32>
    %c0_48 = arith.constant 0 : index
    %c0_49 = arith.constant 0 : index
    %96 = vector.load %arg7[%c0_48, %c0_49] : memref<3x1xf32, #tpu.memory_space<vmem>>, vector<3x1xf32>
    %cst_50 = arith.constant 9.99999974E-6 : f32
    %97 = vector.broadcast %cst_50 : f32 to vector<3x1xf32>
    %98 = arith.addf %95, %97 : vector<3x1xf32>
    %99 = math.rsqrt %98 : vector<3x1xf32>
    %100 = arith.mulf %96, %99 : vector<3x1xf32>
    %c0_51 = arith.constant 0 : index
    %c0_52 = arith.constant 0 : index
    %101 = vector.load %arg8[%c0_51, %c0_52] : memref<3x1xf32, #tpu.memory_space<vmem>>, vector<3x1xf32>
    %102 = arith.mulf %91, %100 : vector<3x1xf32>
    %103 = arith.subf %101, %102 : vector<3x1xf32>
    %104 = vector.broadcast %100 : vector<3x1xf32> to vector<3x256xf32>
    %105 = arith.mulf %84, %104 : vector<3x256xf32>
    %106 = vector.broadcast %103 : vector<3x1xf32> to vector<3x256xf32>
    %107 = arith.addf %105, %106 : vector<3x256xf32>
    %c0_53 = arith.constant 0 : index
    %c0_54 = arith.constant 0 : index
    %c0_55 = arith.constant 0 : index
    %108 = vector.load %arg9[%c0_53, %c0_54, %c0_55] : memref<2x3x256xf32, #tpu.memory_space<vmem>>, vector<1x3x256xf32>
    %109 = vector.shape_cast %108 : vector<1x3x256xf32> to vector<3x256xf32>
    %110 = vector.shape_cast %107 : vector<3x256xf32> to vector<1x3x256xf32>
    tpu.vector_store %arg9[%c0_53, %c0_54, %c0_55], %110 {strides = array<i32>} : memref<2x3x256xf32, #tpu.memory_space<vmem>>, vector<1x3x256xf32>,
    %111 = vector.extract_strided_slice %83 {offsets = [0, 256], sizes = [3, 256], strides = [1, 1]} : vector<3x512xf32> to vector<3x256xf32>
    %cst_56 = arith.constant dense<0.000000e+00> : vector<3xf32>
    %112 = vector.multi_reduction <add>, %111, %cst_56 [1] : vector<3x256xf32> to vector<3xf32>
    %113 = vector.shape_cast %112 : vector<3xf32> to vector<3x1xf32>
    %114 = arith.mulf %111, %111 : vector<3x256xf32>
    %cst_57 = arith.constant dense<0.000000e+00> : vector<3xf32>
    %115 = vector.multi_reduction <add>, %114, %cst_57 [1] : vector<3x256xf32> to vector<3xf32>
    %116 = vector.shape_cast %115 : vector<3xf32> to vector<3x1xf32>
    %cst_58 = arith.constant 3.906250e-03 : f32
    %117 = vector.broadcast %cst_58 : f32 to vector<3x1xf32>
    %118 = arith.mulf %113, %117 : vector<3x1xf32>
    %cst_59 = arith.constant 3.906250e-03 : f32
    %119 = vector.broadcast %cst_59 : f32 to vector<3x1xf32>
    %120 = arith.mulf %116, %119 : vector<3x1xf32>
    %121 = arith.mulf %118, %118 : vector<3x1xf32>
    %122 = arith.subf %120, %121 : vector<3x1xf32>
    %c0_60 = arith.constant 0 : index
    %c0_61 = arith.constant 0 : index
    %123 = vector.load %arg7[%c0_60, %c0_61] : memref<3x1xf32, #tpu.memory_space<vmem>>, vector<3x1xf32>
    %cst_62 = arith.constant 9.99999974E-6 : f32
    %124 = vector.broadcast %cst_62 : f32 to vector<3x1xf32>
    %125 = arith.addf %122, %124 : vector<3x1xf32>
    %126 = math.rsqrt %125 : vector<3x1xf32>
    %127 = arith.mulf %123, %126 : vector<3x1xf32>
    %c0_63 = arith.constant 0 : index
    %c0_64 = arith.constant 0 : index
    %128 = vector.load %arg8[%c0_63, %c0_64] : memref<3x1xf32, #tpu.memory_space<vmem>>, vector<3x1xf32>
    %129 = arith.mulf %118, %127 : vector<3x1xf32>
    %130 = arith.subf %128, %129 : vector<3x1xf32>
    %131 = vector.broadcast %127 : vector<3x1xf32> to vector<3x256xf32>
    %132 = arith.mulf %111, %131 : vector<3x256xf32>
    %133 = vector.broadcast %130 : vector<3x1xf32> to vector<3x256xf32>
    %134 = arith.addf %132, %133 : vector<3x256xf32>
    %c1_65 = arith.constant 1 : index
    %c0_66 = arith.constant 0 : index
    %c0_67 = arith.constant 0 : index
    %135 = vector.load %arg9[%c1_65, %c0_66, %c0_67] : memref<2x3x256xf32, #tpu.memory_space<vmem>>, vector<1x3x256xf32>
    %136 = vector.shape_cast %135 : vector<1x3x256xf32> to vector<3x256xf32>
    %137 = vector.shape_cast %134 : vector<3x256xf32> to vector<1x3x256xf32>
    tpu.vector_store %arg9[%c1_65, %c0_66, %c0_67], %137 {strides = array<i32>} : memref<2x3x256xf32, #tpu.memory_space<vmem>>, vector<1x3x256xf32>,
    return
  }
  func.func @transform_0(%arg0: i32) -> (i32, i32, i32) {
    %c0_i32 = arith.constant 0 : i32
    %c0_i32_0 = arith.constant 0 : i32
    %c0_i32_1 = arith.constant 0 : i32
    return %arg0, %c0_i32, %c0_i32_0 : i32, i32, i32
  }
  func.func @transform_1(%arg0: i32) -> (i32, i32) {
    %c0_i32 = arith.constant 0 : i32
    %c0_i32_0 = arith.constant 0 : i32
    %c0_i32_1 = arith.constant 0 : i32
    return %c0_i32, %c0_i32_0 : i32, i32
  }
  func.func @transform_2(%arg0: i32) -> (i32, i32) {
    %c0_i32 = arith.constant 0 : i32
    %c0_i32_0 = arith.constant 0 : i32
    %c0_i32_1 = arith.constant 0 : i32
    return %c0_i32, %c0_i32_0 : i32, i32
  }
  func.func @transform_3(%arg0: i32) -> (i32, i32) {
    %c0_i32 = arith.constant 0 : i32
    %c0_i32_0 = arith.constant 0 : i32
    %c0_i32_1 = arith.constant 0 : i32
    return %c0_i32, %c0_i32_0 : i32, i32
  }
  func.func @transform_4(%arg0: i32) -> (i32, i32) {
    %c0_i32 = arith.constant 0 : i32
    %c0_i32_0 = arith.constant 0 : i32
    %c0_i32_1 = arith.constant 0 : i32
    return %c0_i32, %c0_i32_0 : i32, i32
  }
  func.func @transform_5(%arg0: i32) -> (i32, i32) {
    %c0_i32 = arith.constant 0 : i32
    %c0_i32_0 = arith.constant 0 : i32
    %c0_i32_1 = arith.constant 0 : i32
    return %c0_i32, %c0_i32_0 : i32, i32
  }
  func.func @transform_6(%arg0: i32) -> (i32, i32) {
    %c0_i32 = arith.constant 0 : i32
    %c0_i32_0 = arith.constant 0 : i32
    %c0_i32_1 = arith.constant 0 : i32
    return %c0_i32, %c0_i32_0 : i32, i32
  }
  func.func @transform_7(%arg0: i32) -> (i32, i32) {
    %c0_i32 = arith.constant 0 : i32
    %c0_i32_0 = arith.constant 0 : i32
    %c0_i32_1 = arith.constant 0 : i32
    return %c0_i32, %c0_i32_0 : i32, i32
  }
  func.func @transform_8(%arg0: i32) -> (i32, i32, i32) {
    %c0_i32 = arith.constant 0 : i32
    %c0_i32_0 = arith.constant 0 : i32
    %c0_i32_1 = arith.constant 0 : i32
    return %arg0, %c0_i32, %c0_i32_0 : i32, i32, i32
  }
}

</mosaic_0001>

<bundles_post_ra>
// kernel: tpu_custom_call.1
= control target key start
LH: loop header
LB: loop body
LE: loop exit
PB: predicated region body
PF: predicated region fallthrough
CT: control target
= control target key end

     0   :  { %13 = vsyncpa [#allocation4], 0  ;;  %s4703_s27 = smov [#allocation3]   ;;  %s7080_s0 = inlined_call_operand.vmem [shape: f32[2,3,256], index: 0, kind: input, shape index: {}]   ;;  %s7081_s1 = inlined_call_operand.hbm [shape: f32[9,512], index: 1, kind: input, shape index: {}]   ;;  %s7082_s2 = inlined_call_operand.vmem [shape: f32[16,27], index: 2, kind: input, shape index: {}]   ;;  %s7083_s3 = inlined_call_operand.vmem [shape: f32[16,1], index: 3, kind: input, shape index: {}]   ;;  %s7084_s4 = inlined_call_operand.vmem [shape: f32[3,144], index: 4, kind: input, shape index: {}]   ;;  %s7085_s5 = inlined_call_operand.vmem [shape: f32[3,1], index: 5, kind: input, shape index: {}]   ;;  %s7086_s6 = inlined_call_operand.vmem [shape: f32[3,1], index: 6, kind: input, shape index: {}]   ;;  %s7087_s7 = inlined_call_operand.vmem [shape: f32[3,1], index: 7, kind: input, shape index: {}]   ;;  %s7088_s8 = inlined_call_operand.vmem [shape: f32[2,3,256], index: 8, kind: output, shape index: {}]  }
   0x1   :  { %s21_s28 = sshll.u32 %s4703_s27, 4  ;;  %s4679_s9 = scalar_lea.hbm %s7081_s1, 1024  ;;  %s22_s28 = int_to_ptr.vmem [resolvable:$true] %s21_s28 }
   0x2   :  { %p4680_p0 = scmp.ne.s32.totalorder %s7081_s1, %s4679_s9  ;;  %p4683_p1 = scmp.lt.u32.totalorder %s4679_s9, %s7081_s1 }
   0x4   :  { %p4685_p2 = pnand %p4683_p1, %p4680_p0 }
   0x6   :  { %4688 = shalt.err (!%p4685_p2)
}
   0x7   :  { %s4689_s14 = scalar_lea.vmem %s22_s28, 1024  ;;  %p4694_p4 = scmp.lt.s32.totalorder %s22_s28, %s22_s28 }
   0x8   :  { %p4690_p3 = scmp.ne.s32.totalorder %s22_s28, %s4689_s14  ;;  %p4695_p5 = scmp.lt.s32.totalorder %s4689_s14, %s4689_s14 }
   0xa   :  { %p4696_p6 = por %p4695_p5, %p4694_p4 }
   0xc   :  { %p4697_p7 = pnand %p4696_p6, %p4690_p3 }
   0xe   :  { %4700 = shalt.err (!%p4697_p7)
}
   0xf   :  { %s4704_s15 = smov 512   ;;  %s4705_s16 = smov 32  }
  0x10   :  { %27 = dma.hbm_to_vmem [thread:$0]  %s7081_s1, 1024, %s22_s28, [#allocation4], %s4704_s15, %s4704_s15, %s4705_s16  }
  0x11   :  { %4701 = dma.done.wait [#allocation4], 1024  }
  0x12   :  { %4702 = vsyncadd [#allocation4], 4294966272  ;;  %v4776_v0 = vld [vmem:[%s7080_s0 + $0x8] sm:$0x77]  ;;  %v4781_v1 = vld [vmem:[%s7080_s0] sm:$0x77]  ;;  %v75_v8 = vlaneseq }
  0x13   :  { %s4706_s23 = smov 15   ;;  %v4789_v2 = vcombine.high %v4776_v0, %v4776_v0  ;;  %s4707_s1 = smov 1   ;;  %v4797_v3 = vcombine.high %v4781_v1, %v4781_v1  ;;  %v7089_v4 = vmov 0.0   ;;  %v490_v5 = vld [vmem:[%s7083_s3] sm:$0xff]  ;;  %v491_v6 = vld [vmem:[%s7083_s3 + $0x8] sm:$0xff]  ;;  %v4715_v7 = vmov 0  }
  0x14   :  { %149 = vrot.lane.b32.xlu1 %v4776_v0, %s4706_s23  ;;  %145 = vrot.lane.b32.xlu0 %v4781_v1, %s4706_s23  ;;  %s4708_s0 = smov 16   ;;  %s4709_s24 = smov 127   ;;  %v84_v11 = vshrl.u32 %v75_v8, 7  ;;  %v488_v12 = vld [vmem:[%s7082_s2] sm:$0xff]  ;;  %vm502_vm0 = vcmask 220160   ;;  %v4872_v15 = vand.u32 127, %v75_v8 }
  0x15   :  { %s4710_s25 = smov 17   ;;  %s4711_s26 = smov 113   ;;  %593 = vmatprep.mubr.f32.mxu0 %v7089_v4  ;;  %1185 = vmatprep.mubr.f32.mxu1 %v7089_v4  ;;  %v504_v20 = vsel %vm502_vm0, %v488_v12, 0  ;;  %v47_v21 = vld [vmem:[#allocation3 + $0x2] ss:$8 sm:$0xf] }
  0x16   :  { %s4712_s27 = smov 112   ;;  %s4713_s28 = smov 111   ;;  %4670 = vset.pattern.permute.xlu0 %v4715_v7  ;;  %4671 = vset.pattern.permute.xlu1 %v4715_v7  ;;  %v4874_v16 = vsub.s32 0, %v84_v11  ;;  %v4876_v17 = vsub.s32 3, %v84_v11  ;;  %v4878_v18 = vsub.s32 1, %v84_v11  ;;  %v4880_v19 = vsub.s32 2, %v84_v11 }
  0x17   :  { %v49_v22 = vld [vmem:[#allocation3 + $0x3] ss:$8 sm:$0xf]  ;;  %vm153_vm1 = vcmp.lt.s32.totalorder %v4872_v15, 15  ;;  %v4884_v26 = vand.u32 4294901760, %v504_v20  ;;  %vm191_vm2 = vcmp.lt.s32.totalorder %v4872_v15, 1 }
  0x18   :  { %151 = vrot.lane.b32.xlu1 %v4789_v2, %s4706_s23  ;;  %183 = vrot.lane.b32.xlu0 %v4781_v1, %s4707_s1  ;;  %v45_v25 = vld [vmem:[#allocation3 + $0x1] ss:$8 sm:$0xf]  ;;  %v4887_v27 = vrot.slane %v47_v21, %v4874_v16  ;;  %v4890_v28 = vrot.slane %v47_v21, %v4876_v17  ;;  %v4894_v29 = vrot.slane %v49_v22, %v4878_v18  ;;  %v51_v34 = vld [vmem:[#allocation3 + $0x5] ss:$8 sm:$0xf] }
  0x19   :  { %v4897_v30 = vrot.slane %v47_v21, %v4878_v18  ;;  %v4900_v31 = vrot.slane %v47_v21, %v4880_v19  ;;  %v4903_v32 = vrot.slane %v49_v22, %v4874_v16  ;;  %v4906_v33 = vrot.slane %v49_v22, %v4880_v19  ;;  %v43_v39 = vld [vmem:[#allocation3] ss:$8 sm:$0xf]  ;;  %v53_v51 = vld [vmem:[#allocation3 + $0x6] ss:$8 sm:$0xf] }
  0x1a   :  { %7364 = vst [vmem:[#allocation6_spill] sm:$0xff] %v4887_v27  ;;  %7365 = vst [vmem:[#allocation7_spill] sm:$0xff] %v4890_v28  ;;  %v4909_v37 = vrot.slane %v49_v22, %v4876_v17  ;;  %v4912_v38 = vrot.slane %v45_v25, %v4878_v18  ;;  %v489_v42 = vld [vmem:[%s7082_s2 + $0x8] sm:$0xff]  ;;  %v4920_v43 = vrot.slane %v45_v25, %v4874_v16  ;;  %vm229_vm3 = vcmp.lt.s32.totalorder %v4872_v15, 127 }
  0x1b   :  { %7366 = vst [vmem:[#allocation8_spill] sm:$0xff] %v4894_v29  ;;  %7367 = vst [vmem:[#allocation9_spill] sm:$0xff] %v4897_v30  ;;  %v4923_v44 = vrot.slane %v45_v25, %v4880_v19  ;;  %v4926_v45 = vrot.slane %v45_v25, %v4876_v17  ;;  %v4929_v46 = vsub.f32 %v504_v20, %v4884_v26  ;;  %v507_v55 = vsel %vm502_vm0, %v489_v42, 0 }
  0x1c   :  { %185 = vrot.lane.b32.xlu1 %v4797_v3, %s4707_s1  ;;  %147 = vrot.lane.b32.xlu0 %v4797_v3, %s4706_s23  ;;  %7368 = vst [vmem:[#allocation10_spill] sm:$0xff] %v4900_v31  ;;  %7369 = vst [vmem:[#allocation11_spill] sm:$0xff] %v4903_v32  ;;  %v4933_v47 = vrot.slane %v51_v34, %v4874_v16  ;;  %v4936_v48 = vrot.slane %v51_v34, %v4876_v17  ;;  %vm463_vm4 = vcmask 1040384   ;;  %vm115_vm5 = vcmp.lt.s32.totalorder %v4872_v15, 16 }
  0x1d   :  { %7370 = vst [vmem:[#allocation12_spill] sm:$0xff] %v4906_v33  ;;  %7371 = vst [vmem:[#allocation13_spill] sm:$0xff] %v4909_v37  ;;  %v4939_v49 = vrot.slane %v51_v34, %v4878_v18  ;;  %v4942_v50 = vrot.slane %v51_v34, %v4880_v19  ;;  %v4945_v52 = vrot.slane %v43_v39, %v4878_v18  ;;  %v4974_v7 = vand.u32 4294901760, %v4929_v46 }
  0x1e   :  { %7372 = vst [vmem:[#allocation14_spill] sm:$0xff] %v4926_v45  ;;  %7373 = vst [vmem:[#allocation15_spill] sm:$0xff] %v4933_v47  ;;  %v4948_v53 = vrot.slane %v43_v39, %v4874_v16  ;;  %v4951_v54 = vrot.slane %v43_v39, %v4880_v19  ;;  %v4963_v61 = vrot.slane %v43_v39, %v4876_v17  ;;  %vm473_vm6 = vcmask 1046528  }
  0x1f   :  { %7374 = vst [vmem:[#allocation16_spill] sm:$0xff] %v4936_v48  ;;  %7375 = vst [vmem:[#allocation17_spill] sm:$0xff] %v4939_v49  ;;  %v4968_v63 = vrot.slane %v53_v51, %v4874_v16  ;;  %v4984_v12 = vrot.slane %v53_v51, %v4878_v18  ;;  %v5001_v39 = vrot.slane %v53_v51, %v4880_v19  ;;  %vm77_vm7 = vcmp.lt.s32.totalorder %v4872_v15, 17 }
  0x20   :  { %189 = vrot.lane.b32.xlu1 %v4789_v2, %s4707_s1  ;;  %187 = vrot.lane.b32.xlu0 %v4776_v0, %s4707_s1  ;;  %7376 = vst [vmem:[#allocation18_spill] sm:$0xff] %v4942_v50  ;;  %vm468_vm8 = vcmask 1043456   ;;  %vm453_vm9 = vcmask 1042432   ;;  %vm458_vm10 = vcmask 1045504   ;;  %vm267_vm11 = vcmp.lt.s32.totalorder %v4872_v15, 113 }
  0x21   :  { %7377 = vst [vmem:[#allocation19_spill] sm:$0xff] %v4968_v63  ;;  %7379 = vst [vmem:[#allocation21_spill] sm:$0xff] %v4984_v12  ;;  %vm305_vm12 = vcmp.lt.s32.totalorder %v4872_v15, 112  ;;  %vm478_vm13 = vcmask 1041408   ;;  %vm483_vm14 = vcmask 1044480   ;;  %vm343_vm15 = vcmp.lt.s32.totalorder %v4872_v15, 111 }
  0x22   :  { %7380 = vst [vmem:[#allocation22_spill] sm:$0xff] %v5001_v39  ;;  %vm2122_vm0 = vcmask 130048  }
  0x24   :  { %109 = vrot.lane.b32.xlu1 %v4797_v3, %s4708_s0  ;;  %107 = vrot.lane.b32.xlu0 %v4781_v1, %s4708_s0 }
  0x28   :  { %113 = vrot.lane.b32.xlu1 %v4789_v2, %s4708_s0  ;;  %111 = vrot.lane.b32.xlu0 %v4776_v0, %s4708_s0 }
  0x2c   :  { %223 = vrot.lane.b32.xlu1 %v4797_v3, %s4709_s24  ;;  %221 = vrot.lane.b32.xlu0 %v4781_v1, %s4709_s24 }
  0x30   :  { %227 = vrot.lane.b32.xlu1 %v4789_v2, %s4709_s24  ;;  %225 = vrot.lane.b32.xlu0 %v4776_v0, %s4709_s24 }
  0x34   :  { %69 = vrot.lane.b32.xlu1 %v4797_v3, %s4710_s25  ;;  %67 = vrot.lane.b32.xlu0 %v4781_v1, %s4710_s25 }
  0x38   :  { %73 = vrot.lane.b32.xlu1 %v4789_v2, %s4710_s25  ;;  %71 = vrot.lane.b32.xlu0 %v4776_v0, %s4710_s25 }
  0x3c   :  { %261 = vrot.lane.b32.xlu1 %v4797_v3, %s4711_s26  ;;  %259 = vrot.lane.b32.xlu0 %v4781_v1, %s4711_s26 }
  0x40   :  { %265 = vrot.lane.b32.xlu1 %v4789_v2, %s4711_s26  ;;  %263 = vrot.lane.b32.xlu0 %v4776_v0, %s4711_s26 }
  0x44   :  { %299 = vrot.lane.b32.xlu1 %v4797_v3, %s4712_s27  ;;  %297 = vrot.lane.b32.xlu0 %v4781_v1, %s4712_s27 }
  0x48   :  { %303 = vrot.lane.b32.xlu1 %v4789_v2, %s4712_s27  ;;  %301 = vrot.lane.b32.xlu0 %v4776_v0, %s4712_s27 }
  0x4c   :  { %337 = vrot.lane.b32.xlu1 %v4797_v3, %s4713_s28  ;;  %335 = vrot.lane.b32.xlu0 %v4781_v1, %s4713_s28 }
  0x50   :  { %341 = vrot.lane.b32.xlu1 %v4789_v2, %s4713_s28  ;;  %339 = vrot.lane.b32.xlu0 %v4776_v0, %s4713_s28 }
  0x54   :  { %494 = vperm.xlu0 %4670, %v490_v5   ;;  %499 = vperm.xlu1 %4671, %v491_v6   ;;  %v4971_v5 = vrot.slane %v53_v51, %v4876_v17  ;;  %v55_v6 = vld [vmem:[#allocation3 + $0x7] ss:$8 sm:$0xf] }
  0x55   :  { %v5004_v42 = vrot.slane %v55_v6, %v4874_v16 }
  0x56   :  { %7378 = vst [vmem:[#allocation20_spill] sm:$0xff] %v4971_v5 }
  0x57   :  { %7381 = vst [vmem:[#allocation23_spill] sm:$0xff] %v5004_v42 }
  0x86   :  { %v4863_v9 = vpop.permute.xlu1 %149  ;;  %v4865_v10 = vpop.permute.xlu0 %145 }
  0x8a   :  { %v4870_v13 = vpop.permute.xlu1 %151  ;;  %v184_v14 = vpop.permute.xlu0 %183 }
  0x8b   :  { %v157_v8 = vsel %vm153_vm1, %v4870_v13, %v4865_v10 }
  0x8e   :  { %v186_v23 = vpop.permute.xlu1 %185  ;;  %v148_v24 = vpop.permute.xlu0 %147 }
  0x8f   :  { %v194_v56 = vsel %vm191_vm2, %v184_v14, %v186_v23  ;;  %v156_v57 = vsel %vm153_vm1, %v4865_v10, %v148_v24  ;;  %v155_v11 = vsel %vm153_vm1, %v148_v24, %v4863_v9  ;;  %v154_v10 = vsel %vm153_vm1, %v4863_v9, %v4870_v13  ;;  %v57_v9 = vld [vmem:[#allocation3 + $0x20] ss:$8 sm:$0xf] }
  0x90   :  { %v218_v20 = vmul.f32 %v4894_v29, %v194_v56  ;;  %v4990_v21 = vmul.f32 %v4897_v30, %v156_v57  ;;  %v5007_v56 = vmul.f32 %v4887_v27, %v157_v8  ;;  %v597_v13 = vsub.f32 %v4929_v46, %v4974_v7 }
  0x91   :  { %v5018_v51 = vmul.f32 %v4900_v31, %v155_v11  ;;  %v5029_v8 = vmul.f32 %v4890_v28, %v154_v10 }
  0x92   :  { %v190_v35 = vpop.permute.xlu1 %189  ;;  %v188_v36 = vpop.permute.xlu0 %187  ;;  %v402_v4 = vrot.slane %v218_v20, 7  ;;  %v7101_v41 = vrot.slane %v4990_v21, 2  ;;  %v5047_v10 = vand.u32 4294901760, %v597_v13 }
  0x93   :  { %v195_v58 = vsel %vm191_vm2, %v190_v35, %v184_v14  ;;  %v193_v62 = vsel %vm191_vm2, %v186_v23, %v188_v36  ;;  %v4986_v14 = vand.u32 4294901760, %v507_v55  ;;  %v192_v23 = vsel %vm191_vm2, %v188_v36, %v190_v35 }
  0x94   :  { %v217_v22 = vmul.f32 %v4903_v32, %v195_v58  ;;  %v219_v24 = vmul.f32 %v4906_v33, %v193_v62  ;;  %v5010_v35 = vrot.slane %v55_v6, %v4876_v17  ;;  %v5013_v36 = vrot.slane %v55_v6, %v4878_v18 }
  0x95   :  { %v220_v57 = vmul.f32 %v4909_v37, %v192_v23  ;;  %v5023_v58 = vrot.slane %v55_v6, %v4880_v19  ;;  %v5026_v62 = vsub.f32 %v507_v55, %v4986_v14  ;;  %v5033_v23 = vrot.slane %v57_v9, %v4874_v16 }
  0x96   :  { %v110_v59 = vpop.permute.xlu1 %109  ;;  %v108_v60 = vpop.permute.xlu0 %107  ;;  %7382 = vst [vmem:[#allocation24_spill] sm:$0xff] %v5010_v35  ;;  %7383 = vst [vmem:[#allocation25_spill] sm:$0xff] %v5013_v36  ;;  %v401_v40 = vrot.slane %v217_v22, 7  ;;  %v403_v11 = vrot.slane %v219_v24, 7  ;;  %v5036_v37 = vrot.slane %v57_v9, %v4876_v17  ;;  %v5039_v6 = vrot.slane %v57_v9, %v4878_v18 }
  0x97   :  { %7384 = vst [vmem:[#allocation26_spill] sm:$0xff] %v5023_v58  ;;  %7385 = vst [vmem:[#allocation27_spill] sm:$0xff] %v5033_v23  ;;  %v5045_v22 = vrot.slane %v57_v9, %v4880_v19  ;;  %v7104_v16 = vrot.slane %v5018_v51, 2  ;;  %v404_v24 = vrot.slane %v220_v57, 7  ;;  %v5054_v18 = vand.u32 4294901760, %v5026_v62 }
  0x98   :  { %7386 = vst [vmem:[#allocation28_spill] sm:$0xff] %v5036_v37  ;;  %7387 = vst [vmem:[#allocation29_spill] sm:$0xff] %v5039_v6  ;;  %v465_v29 = vsel %vm463_vm4, %v7101_v41, %v402_v4  ;;  %v7389_v19 = vrot.slane %v5007_v56, 2  ;;  %v118_v13 = vsel %vm115_vm5, %v108_v60, %v110_v59 }
  0x99   :  { %7388 = vst [vmem:[#allocation30_spill] sm:$0xff] %v5045_v22  ;;  %v466_v57 = vsel %vm463_vm4, %v7104_v16, %v403_v11  ;;  %v142_v16 = vmul.f32 %v4912_v38, %v118_v13 }
  0x9a   :  { %v114_v25 = vpop.permute.xlu1 %113  ;;  %v112_v34 = vpop.permute.xlu0 %111  ;;  %v464_v9 = vsel %vm463_vm4, %v7389_v19, %v401_v40 }
  0x9b   :  { %v117_v55 = vsel %vm115_vm5, %v110_v59, %v112_v34  ;;  %v116_v40 = vsel %vm115_vm5, %v112_v34, %v114_v25 }
  0x9c   :  { %v143_v34 = vmul.f32 %v4923_v44, %v117_v55  ;;  %v144_v13 = vmul.f32 %v4926_v45, %v116_v40 }
  0x9e   :  { %v224_v32 = vpop.permute.xlu1 %223  ;;  %v222_v33 = vpop.permute.xlu0 %221  ;;  %v380_v28 = vrot.slane %v144_v13, 5 }
  0x9f   :  { %v232_v20 = vsel %vm229_vm3, %v222_v33, %v224_v32 }
  0xa0   :  { %v5051_v17 = vmul.f32 %v4933_v47, %v232_v20  ;;  %v119_v20 = vsel %vm115_vm5, %v114_v25, %v108_v60  ;;  %v7390_v60 = vrot.slane %v5029_v8, 2 }
  0xa2   :  { %v228_v4 = vpop.permute.xlu1 %227  ;;  %v226_v41 = vpop.permute.xlu0 %225  ;;  %v467_v59 = vsel %vm463_vm4, %v7390_v60, %v404_v24 }
  0xa3   :  { %v233_v19 = vsel %vm229_vm3, %v228_v4, %v222_v33  ;;  %v230_v27 = vsel %vm229_vm3, %v226_v41, %v228_v4  ;;  %v231_v11 = vsel %vm229_vm3, %v224_v32, %v226_v41  ;;  %v141_v33 = vmul.f32 %v4920_v43, %v119_v20 }
  0xa4   :  { %v5086_v47 = vmul.f32 %v4936_v48, %v233_v19  ;;  %v5089_v25 = vmul.f32 %v4939_v49, %v231_v11  ;;  %v5095_v32 = vmul.f32 %v4942_v50, %v230_v27  ;;  %v7391_v41 = vrot.slane %v4781_v1, 4 }
  0xa5   :  { %v7392_v48 = vrot.slane %v5051_v17, 1  ;;  %v470_v1 = vsel %vm468_vm8, %v465_v29, %v4797_v3  ;;  %v472_v55 = vsel %vm468_vm8, %v467_v59, %v4789_v2  ;;  %v377_v59 = vrot.slane %v141_v33, 5 }
  0xa6   :  { %v469_v24 = vsel %vm468_vm8, %v464_v9, %v7391_v41  ;;  %v7113_v19 = vrot.slane %v5089_v25, 1  ;;  %v70_v11 = vpop.permute.xlu1 %69  ;;  %v68_v60 = vpop.permute.xlu0 %67  ;;  %v7393_v9 = vrot.slane %v4776_v0, 4  ;;  %v378_v41 = vrot.slane %v142_v16, 5 }
  0xa7   :  { %v474_v20 = vsel %vm473_vm6, %v469_v24, %v7392_v48  ;;  %v80_v27 = vsel %vm77_vm7, %v68_v60, %v70_v11  ;;  %v7394_v24 = vrot.slane %v5086_v47, 1  ;;  %v7114_v3 = vrot.slane %v5095_v32, 1 }
  0xa8   :  { %v471_v40 = vsel %vm468_vm8, %v466_v57, %v7393_v9  ;;  %v104_v4 = vmul.f32 %v4945_v52, %v80_v27  ;;  %v475_v48 = vsel %vm473_vm6, %v470_v1, %v7113_v19  ;;  %v527_v49 = vand.u32 4294901760, %v474_v20 }
  0xa9   :  { %v477_v50 = vsel %vm473_vm6, %v472_v55, %v7394_v24  ;;  %v525_v29 = vand.u32 4294901760, %v475_v48  ;;  %v379_v0 = vrot.slane %v143_v34, 5  ;;  %v7395_v24 = vrot.slane %v4990_v21, 2 }
  0xaa   :  { %v1117_v2 = vand.u32 4294901760, %v477_v50  ;;  %v455_v16 = vsel %vm453_vm9, %v104_v4, %v378_v41  ;;  %v74_v57 = vpop.permute.xlu1 %73  ;;  %v72_v27 = vpop.permute.xlu0 %71  ;;  %v5139_v41 = vsub.f32 %v474_v20, %v527_v49  ;;  %v476_v21 = vsel %vm473_vm6, %v471_v40, %v7114_v3 }
  0xab   :  { %v81_v9 = vsel %vm77_vm7, %v74_v57, %v68_v60  ;;  %v78_v1 = vsel %vm77_vm7, %v72_v27, %v74_v57  ;;  %v79_v55 = vsel %vm77_vm7, %v70_v11, %v72_v27  ;;  %v460_v19 = vsel %vm458_vm10, %v455_v16, %v7395_v24 }
  0xac   :  { %v103_v33 = vmul.f32 %v4948_v53, %v81_v9  ;;  %v105_v34 = vmul.f32 %v4951_v54, %v79_v55  ;;  %v106_v13 = vmul.f32 %v4963_v61, %v78_v1  ;;  %v521_v4 = vand.u32 4294901760, %v460_v19 }
  0xad   :  { %v5137_v60 = vsub.f32 %v475_v48, %v525_v29  ;;  %v5141_v57 = vsub.f32 %v477_v50, %v1117_v2  ;;  %v7396_v50 = vrot.slane %v5007_v56, 2  ;;  %v7397_v40 = vrot.slane %v5029_v8, 2 }
  0xae   :  { %v454_v11 = vsel %vm453_vm9, %v103_v33, %v377_v59  ;;  %v456_v16 = vsel %vm453_vm9, %v105_v34, %v379_v0  ;;  %v457_v27 = vsel %vm453_vm9, %v106_v13, %v380_v28  ;;  %v262_v9 = vpop.permute.xlu1 %261  ;;  %v260_v1 = vpop.permute.xlu0 %259  ;;  %v5149_v55 = vpack.c.bf16 %v525_v29, %v521_v4 }
  0xaf   :  { %v270_v20 = vsel %vm267_vm11, %v260_v1, %v262_v9  ;;  %v5153_v48 = vsub.f32 %v460_v19, %v521_v4  ;;  %v459_v24 = vsel %vm458_vm10, %v454_v11, %v7396_v50  ;;  %v462_v59 = vsel %vm458_vm10, %v457_v27, %v7397_v40 }
  0xb0   :  { %v293_v0 = vmul.f32 %v4968_v63, %v270_v20  ;;  %4058 = vmatprep.subr.bf16.mxu0 %v5149_v55  ;;  %v523_v28 = vand.u32 4294901760, %v459_v24  ;;  %v1113_v29 = vand.u32 4294901760, %v462_v59  ;;  %v7398_v33 = vrot.slane %v5018_v51, 2 }
  0xb1   :  { %v1119_v13 = vand.u32 4294901760, %v476_v21  ;;  %v7115_v56 = vand.u32 4294901760, %v5153_v48 }
  0xb2   :  { %v461_v34 = vsel %vm458_vm10, %v456_v16, %v7398_v33  ;;  %v266_v8 = vpop.permute.xlu1 %265  ;;  %v264_v11 = vpop.permute.xlu0 %263  ;;  %v5168_v27 = vpack.c.bf16 %v527_v49, %v523_v28  ;;  %v5170_v20 = vpack.c.bf16 %v1117_v2, %v1113_v29  ;;  %v5180_v3 = vsub.f32 %v462_v59, %v1113_v29 }
  0xb3   :  { %v1115_v19 = vand.u32 4294901760, %v461_v34  ;;  %v271_v51 = vsel %vm267_vm11, %v266_v8, %v260_v1  ;;  %v268_v16 = vsel %vm267_vm11, %v264_v11, %v266_v8  ;;  %v269_v33 = vsel %vm267_vm11, %v262_v9, %v264_v11 }
  0xb4   :  { %v433_v4 = vrot.slane %v293_v0, 6  ;;  %v296_v49 = vmul.f32 %v4971_v5, %v271_v51  ;;  %v294_v2 = vmul.f32 %v4984_v12, %v269_v33  ;;  %v295_v50 = vmul.f32 %v5001_v39, %v268_v16  ;;  %4060 = vmatpush1.bf16.msra.mxu0 %v5168_v27  ;;  %4106 = vmatprep.subr.bf16.mxu1 %v5170_v20 }
  0xb5   :  { %v5187_v1 = vsub.f32 %v459_v24, %v523_v28  ;;  %v5190_v8 = vpack.c.bf16 %v1119_v13, %v1115_v19  ;;  %v619_v9 = vsub.f32 %v5153_v48, %v7115_v56  ;;  %v7399_v59 = vand.u32 4294901760, %v5137_v60 }
  0xb6   :  { %v436_v29 = vrot.slane %v296_v49, 6  ;;  %v434_v11 = vrot.slane %v294_v2, 6  ;;  %v435_v51 = vrot.slane %v295_v50, 6  ;;  %v300_v16 = vpop.permute.xlu1 %299  ;;  %v298_v33 = vpop.permute.xlu0 %297  ;;  %v5200_v28 = vsub.f32 %v476_v21, %v1119_v13 }
  0xb7   :  { %v631_v0 = vsub.f32 %v5137_v60, %v7399_v59  ;;  %4108 = vmatpush1.bf16.msra.mxu1 %v5190_v8  ;;  %v308_v40 = vsel %vm305_vm12, %v298_v33, %v300_v16  ;;  %v7400_v56 = vand.u32 4294901760, %v5139_v41  ;;  %v7401_v50 = vrot.slane %v5051_v17, 1 }
  0xb8   :  { %v5214_v59 = vsub.f32 %v461_v34, %v1115_v19  ;;  %v331_v21 = vmul.f32 %v5004_v42, %v308_v40  ;;  %v620_v13 = vand.u32 4294901760, %v619_v9  ;;  %v7402_v24 = vrot.slane %v5086_v47, 1 }
  0xb9   :  { %v5207_v5 = vsub.f32 %v5139_v41, %v7400_v56  ;;  %v479_v2 = vsel %vm478_vm13, %v7401_v50, %v433_v4  ;;  %v632_v63 = vand.u32 4294901760, %v631_v0  ;;  %v7403_v56 = vand.u32 4294901760, %v5180_v3 }
  0xba   :  { %v482_v39 = vsel %vm478_vm13, %v7402_v24, %v436_v29  ;;  %v7404_v49 = vand.u32 4294901760, %v5141_v57  ;;  %v7405_v4 = vrot.slane %v5089_v25, 1  ;;  %v7406_v19 = vrot.slane %v5095_v32, 1  ;;  %v304_v9 = vpop.permute.xlu1 %303  ;;  %v302_v29 = vpop.permute.xlu0 %301 }
  0xbb   :  { %v1211_v12 = vsub.f32 %v5180_v3, %v7403_v56  ;;  %v445_v47 = vrot.slane %v331_v21, 3  ;;  %v309_v24 = vsel %vm305_vm12, %v304_v9, %v298_v33  ;;  %v306_v50 = vsel %vm305_vm12, %v302_v29, %v304_v9 }
  0xbc   :  { %v1223_v17 = vsub.f32 %v5141_v57, %v7404_v49  ;;  %v480_v34 = vsel %vm478_vm13, %v7405_v4, %v434_v11  ;;  %v481_v40 = vsel %vm478_vm13, %v7406_v19, %v435_v51  ;;  %v307_v25 = vsel %vm305_vm12, %v300_v16, %v302_v29 }
  0xbd   :  { %v1212_v49 = vand.u32 4294901760, %v1211_v12  ;;  %v334_v11 = vmul.f32 %v5010_v35, %v309_v24  ;;  %v332_v32 = vmul.f32 %v5013_v36, %v307_v25  ;;  %v333_v51 = vmul.f32 %v5023_v58, %v306_v50 }
  0xbe   :  { %v484_v21 = vsel %vm483_vm14, %v479_v2, %v445_v47  ;;  %v1224_v4 = vand.u32 4294901760, %v1223_v17  ;;  %v338_v30 = vpop.permute.xlu1 %337  ;;  %v336_v16 = vpop.permute.xlu0 %335  ;;  %v7407_v12 = vand.u32 4294901760, %v5187_v1  ;;  %v4065_v50 = vpack.c.bf16 %v632_v63, %v620_v13 }
  0xbf   :  { %v531_v56 = vand.u32 4294901760, %v484_v21  ;;  %v448_v0 = vrot.slane %v334_v11, 3  ;;  %v446_v9 = vrot.slane %v332_v32, 3  ;;  %v447_v42 = vrot.slane %v333_v51, 3 }
  0xc0   :  { %v625_v29 = vsub.f32 %v5187_v1, %v7407_v12  ;;  %v346_v24 = vsel %vm343_vm15, %v336_v16, %v338_v30  ;;  %v5250_v2 = vpack.c.bf16 %v1224_v4, %v1212_v49  ;;  %v638_v17 = vand.u32 4294901760, %v5207_v5 }
  0xc1   :  { %v369_v47 = vmul.f32 %v5033_v23, %v346_v24  ;;  %v485_v25 = vsel %vm483_vm14, %v480_v34, %v446_v9  ;;  %v487_v11 = vsel %vm483_vm14, %v482_v39, %v448_v0  ;;  %v486_v32 = vsel %vm483_vm14, %v481_v40, %v447_v42 }
  0xc2   :  { %v529_v51 = vand.u32 4294901760, %v485_v25  ;;  %v1121_v33 = vand.u32 4294901760, %v487_v11  ;;  %v1123_v19 = vand.u32 4294901760, %v486_v32  ;;  %v7408_v12 = vand.u32 4294901760, %v5214_v59  ;;  %v342_v13 = vpop.permute.xlu1 %341  ;;  %v340_v49 = vpop.permute.xlu0 %339 }
  0xc3   :  { %v510_v63 = vsel %vm453_vm9, %v369_v47, 0  ;;  %v5261_v5 = vsub.f32 %v484_v21, %v531_v56  ;;  %v626_v4 = vand.u32 4294901760, %v625_v29  ;;  %v7409_v34 = vand.u32 4294901760, %v5200_v28 }
  0xc4   :  { %v1217_v35 = vsub.f32 %v5214_v59, %v7408_v12  ;;  %v535_v0 = vand.u32 4294901760, %v510_v63  ;;  %v347_v42 = vsel %vm343_vm15, %v342_v13, %v336_v16  ;;  %v344_v40 = vsel %vm343_vm15, %v340_v49, %v342_v13 }
  0xc5   :  { %v1229_v39 = vsub.f32 %v5200_v28, %v7409_v34  ;;  %v345_v9 = vsel %vm343_vm15, %v338_v30, %v340_v49  ;;  %v372_v24 = vmul.f32 %v5036_v37, %v347_v42  ;;  %v371_v29 = vmul.f32 %v5045_v22, %v344_v40 }
  0xc6   :  { %v370_v21 = vmul.f32 %v5039_v6, %v345_v9  ;;  %v5275_v47 = vsub.f32 %v485_v25, %v529_v51  ;;  %v5277_v12 = vsub.f32 %v510_v63, %v535_v0  ;;  %v5279_v34 = vsub.f32 %v487_v11, %v1121_v33 }
  0xc7   :  { %v5281_v23 = vsub.f32 %v486_v32, %v1123_v19  ;;  %v1218_v16 = vand.u32 4294901760, %v1217_v35  ;;  %v519_v13 = vsel %vm453_vm9, %v372_v24, 0  ;;  %v516_v30 = vsel %vm453_vm9, %v371_v29, 0 }
  0xc8   :  { %v513_v58 = vsel %vm453_vm9, %v370_v21, 0  ;;  %v1125_v42 = vand.u32 4294901760, %v519_v13  ;;  %v1127_v40 = vand.u32 4294901760, %v516_v30  ;;  %v5287_v25 = vpack.c.bf16 %v535_v0, %v531_v56 }
  0xc9   :  { %v533_v9 = vand.u32 4294901760, %v513_v58  ;;  %v7137_v63 = vand.u32 4294901760, %v5277_v12  ;;  %v7138_v11 = vand.u32 4294901760, %v5275_v47  ;;  %v7136_v32 = vand.u32 4294901760, %v5279_v34 }
  0xca   :  { %v5293_v24 = vsub.f32 %v519_v13, %v1125_v42  ;;  %v5297_v29 = vsub.f32 %v516_v30, %v1127_v40  ;;  %v5301_v37 = vpack.c.bf16 %v1125_v42, %v1121_v33  ;;  %v5303_v56 = vpack.c.bf16 %v1127_v40, %v1123_v19 }
  0xcb   :  { %v5295_v21 = vsub.f32 %v513_v58, %v533_v9  ;;  %v5299_v49 = vpack.c.bf16 %v533_v9, %v529_v51  ;;  %v643_v0 = vsub.f32 %v5275_v47, %v7138_v11  ;;  %v1235_v35 = vsub.f32 %v5279_v34, %v7136_v32 }
  0xcc   :  { %v7149_v13 = vand.u32 4294901760, %v5297_v29  ;;  %v4067_v58 = vpack.c.bf16 %v638_v17, %v626_v4  ;;  %v7146_v33 = vand.u32 4294901760, %v5293_v24  ;;  %4110 = vmatprep.subr.bf16.mxu1 %v5301_v37  ;;  %v1230_v19 = vand.u32 4294901760, %v1229_v39 }
  0xcd   :  { %4062 = vmatprep.subr.bf16.mxu0 %v5299_v49  ;;  %v7145_v51 = vand.u32 4294901760, %v5295_v21  ;;  %v7410_v30 = vand.u32 4294901760, %v5261_v5  ;;  %v661_v9 = vsub.f32 %v5277_v12, %v7137_v63  ;;  %v7411_v40 = vand.u32 4294901760, %v5281_v23  ;;  %4112 = vmatpush1.bf16.msra.mxu1 %v5303_v56 }
  0xce   :  { %4064 = vmatpush1.bf16.msra.mxu0 %v5287_v25  ;;  %v7412_v4 = vsub.f32 %v5026_v62, %v5054_v18  ;;  %v1253_v63 = vsub.f32 %v5297_v29, %v7149_v13  ;;  %4114 = vmatprep.subr.bf16.mxu1 %v5250_v2  ;;  %v1236_v11 = vand.u32 4294901760, %v1235_v35 }
  0xcf   :  { %v649_v42 = vsub.f32 %v5261_v5, %v7410_v30  ;;  %v1241_v17 = vsub.f32 %v5281_v23, %v7411_v40  ;;  %4066 = vmatprep.subr.bf16.mxu0 %v4065_v50  ;;  %v655_v39 = vsub.f32 %v5295_v21, %v7145_v51  ;;  %v1247_v30 = vsub.f32 %v5293_v24, %v7146_v33 }
  0xd0   :  { %v609_v32 = vand.u32 4294901760, %v7412_v4  ;;  %v4115_v40 = vpack.c.bf16 %v1230_v19, %v1218_v16  ;;  %v644_v50 = vand.u32 4294901760, %v643_v0  ;;  %v662_v22 = vand.u32 4294901760, %v661_v9  ;;  %1191 = vmatmul.mubr.f32.vlgmr.msra.gmra.mrb[0].mxu1 %v5047_v10 }
  0xd1   :  { %599 = vmatmul.mubr.f32.vlgmr.msra.gmra.mrb[0].mxu0 %v5047_v10  ;;  %v656_v4 = vand.u32 4294901760, %v655_v39  ;;  %v1248_v6 = vand.u32 4294901760, %v1247_v30  ;;  %v1242_v36 = vand.u32 4294901760, %v1241_v17  ;;  %v1254_v51 = vand.u32 4294901760, %v1253_v63 }
  0xd2   :  { %4068 = vmatpush1.bf16.msra.mxu0 %v4067_v58  ;;  %4116 = vmatpush1.bf16.msra.mxu1 %v4115_v40  ;;  %v7413_v33 = vmov 0.0   ;;  %v650_v45 = vand.u32 4294901760, %v649_v42  ;;  %v4073_v63 = vpack.c.bf16 %v5137_v60, %v5153_v48  ;;  %v4121_v10 = vpack.c.bf16 %v5141_v57, %v5180_v3 }
  0xd3   :  { %604 = vmatprep.mubr.f32.mxu0 %v7413_v33  ;;  %v4069_v31 = vpack.c.bf16 %v656_v4, %v644_v50  ;;  %v4117_v13 = vpack.c.bf16 %v1248_v6, %v1236_v11  ;;  %v4119_v2 = vpack.c.bf16 %v1254_v51, %v1242_v36  ;;  %1196 = vmatprep.mubr.f32.mxu1 %v7413_v33  ;;  %v7416_v0 = vand.u32 4294901760, %v5180_v3 }
  0xd4   :  { %v4071_v16 = vpack.c.bf16 %v662_v22, %v650_v45  ;;  %1202 = vmatmul.mubr.f32.gmra.mrb[2].mxu1 %v609_v32  ;;  %v4123_v45 = vpack.c.bf16 %v5200_v28, %v5214_v59  ;;  %v4077_v36 = vpack.c.bf16 %v5295_v21, %v5275_v47  ;;  %v4125_v6 = vpack.c.bf16 %v5293_v24, %v5279_v34 }
  0xd5   :  { %610 = vmatmul.mubr.f32.gmra.mrb[2].mxu0 %v609_v32  ;;  %4070 = vmatprep.subr.bf16.mxu0 %v4069_v31  ;;  %v4075_v31 = vpack.c.bf16 %v5139_v41, %v5187_v1  ;;  %v4079_v22 = vpack.c.bf16 %v5277_v12, %v5261_v5  ;;  %v4127_v11 = vpack.c.bf16 %v5297_v29, %v5281_v23  ;;  %v7414_v32 = vand.u32 4294901760, %v5153_v48 }
  0xd6   :  { %4118 = vmatprep.subr.bf16.mxu1 %v4117_v13  ;;  %4072 = vmatpush1.bf16.msra.mxu0 %v4071_v16  ;;  %v7417_v13 = vand.u32 4294901760, %v5141_v57  ;;  %v7420_v3 = vand.u32 4294901760, %v5214_v59  ;;  %v7421_v57 = vand.u32 4294901760, %v5200_v28  ;;  %v7422_v19 = vand.u32 4294901760, %v5275_v47 }
  0xd7   :  { %4120 = vmatpush1.bf16.msra.mxu1 %v4119_v2  ;;  %4074 = vmatprep.subr.bf16.mxu0 %v4073_v63  ;;  %v7423_v42 = vand.u32 4294901760, %v5295_v21  ;;  %v7424_v17 = vand.u32 4294901760, %v5279_v34  ;;  %v7427_v28 = vand.u32 4294901760, %v5277_v12  ;;  %v7428_v47 = vand.u32 4294901760, %v5281_v23 }
  0xd8   :  { %4122 = vmatprep.subr.bf16.mxu1 %v4121_v10  ;;  %720 = vmatprep.mubr.f32.mxu0 %v7413_v33  ;;  %v4137_v58 = vpack.c.bf16 %v7417_v13, %v7416_v0  ;;  %v4139_v51 = vpack.c.bf16 %v7421_v57, %v7420_v3  ;;  %v7429_v34 = vand.u32 4294901760, %v5297_v29 }
  0xd9   :  { %1312 = vmatprep.mubr.f32.mxu1 %v7413_v33  ;;  %722 = vmatmul.mubr.f32.vlgmr.msra.gmra.mrb[0].mxu0 %v4884_v26  ;;  %v4093_v9 = vpack.c.bf16 %v7423_v42, %v7422_v19 }
  0xda   :  { %1314 = vmatmul.mubr.f32.vlgmr.msra.gmra.mrb[0].mxu1 %v4884_v26  ;;  %4076 = vmatpush1.bf16.msra.mxu0 %v4075_v31  ;;  %v4143_v21 = vpack.c.bf16 %v7429_v34, %v7428_v47 }
  0xdb   :  { %4124 = vmatpush1.bf16.msra.mxu1 %v4123_v45  ;;  %4078 = vmatprep.subr.bf16.mxu0 %v4077_v36 }
  0xdc   :  { %4126 = vmatprep.subr.bf16.mxu1 %v4125_v6  ;;  %727 = vmatprep.mubr.f32.mxu0 %v7413_v33 }
  0xdd   :  { %1319 = vmatprep.mubr.f32.mxu1 %v7413_v33  ;;  %729 = vmatmul.mubr.f32.gmra.mrb[2].mxu0 %v4986_v14 }
  0xde   :  { %1321 = vmatmul.mubr.f32.gmra.mrb[2].mxu1 %v4986_v14  ;;  %4080 = vmatpush1.bf16.msra.mxu0 %v4079_v22 }
  0xdf   :  { %4128 = vmatpush1.bf16.msra.mxu1 %v4127_v11  ;;  %4082 = vmatprep.subr.bf16.mxu0 %v5149_v55 }
  0xe0   :  { %4130 = vmatprep.subr.bf16.mxu1 %v5170_v20  ;;  %815 = vmatprep.mubr.f32.mxu0 %v7413_v33 }
  0xe1   :  { %1407 = vmatprep.mubr.f32.mxu1 %v7413_v33  ;;  %818 = vmatmul.mubr.f32.vlgmr.msra.gmra.mrb[0].mxu0 %v4929_v46 }
  0xe2   :  { %1410 = vmatmul.mubr.f32.vlgmr.msra.gmra.mrb[0].mxu1 %v4929_v46  ;;  %4084 = vmatpush1.bf16.msra.mxu0 %v5168_v27  ;;  %v7415_v46 = vand.u32 4294901760, %v5137_v60  ;;  %v7419_v60 = vand.u32 4294901760, %v5139_v41 }
  0xe3   :  { %4132 = vmatpush1.bf16.msra.mxu1 %v5190_v8  ;;  %4086 = vmatprep.subr.bf16.mxu0 %v5299_v49 }
  0xe4   :  { %4134 = vmatprep.subr.bf16.mxu1 %v5301_v37  ;;  %823 = vmatprep.mubr.f32.mxu0 %v7413_v33  ;;  %v4089_v35 = vpack.c.bf16 %v7415_v46, %v7414_v32 }
  0xe5   :  { %1415 = vmatprep.mubr.f32.mxu1 %v7413_v33  ;;  %826 = vmatmul.mubr.f32.gmra.mrb[2].mxu0 %v5026_v62 }
  0xe6   :  { %1418 = vmatmul.mubr.f32.gmra.mrb[2].mxu1 %v5026_v62  ;;  %4088 = vmatpush1.bf16.msra.mxu0 %v5287_v25  ;;  %v7418_v62 = vand.u32 4294901760, %v5187_v1  ;;  %v7425_v1 = vand.u32 4294901760, %v5293_v24 }
  0xe7   :  { %4136 = vmatpush1.bf16.msra.mxu1 %v5303_v56  ;;  %4090 = vmatprep.subr.bf16.mxu0 %v4089_v35 }
  0xe8   :  { %4138 = vmatprep.subr.bf16.mxu1 %v4137_v58  ;;  %904 = vmatprep.mubr.f32.mxu0 %v7413_v33  ;;  %v4091_v48 = vpack.c.bf16 %v7419_v60, %v7418_v62  ;;  %v4141_v41 = vpack.c.bf16 %v7425_v1, %v7424_v17 }
  0xe9   :  { %1496 = vmatprep.mubr.f32.mxu1 %v7413_v33  ;;  %908 = vmatmul.mubr.f32.vlgmr.msra.gmra.mrb[0].mxu0 %v4974_v7 }
  0xea   :  { %1500 = vmatmul.mubr.f32.vlgmr.msra.gmra.mrb[0].mxu1 %v4974_v7  ;;  %4092 = vmatpush1.bf16.msra.mxu0 %v4091_v48  ;;  %v7426_v7 = vand.u32 4294901760, %v5261_v5 }
  0xeb   :  { %4140 = vmatpush1.bf16.msra.mxu1 %v4139_v51  ;;  %4094 = vmatprep.subr.bf16.mxu0 %v4093_v9 }
  0xec   :  { %4142 = vmatprep.subr.bf16.mxu1 %v4141_v41  ;;  %913 = vmatprep.mubr.f32.mxu0 %v7413_v33  ;;  %v4095_v59 = vpack.c.bf16 %v7427_v28, %v7426_v7 }
  0xed   :  { %1505 = vmatprep.mubr.f32.mxu1 %v7413_v33  ;;  %917 = vmatmul.mubr.f32.gmra.mrb[2].mxu0 %v5054_v18 }
  0xee   :  { %1509 = vmatmul.mubr.f32.gmra.mrb[2].mxu1 %v5054_v18  ;;  %4096 = vmatpush1.bf16.msra.mxu0 %v4095_v59 }
  0xef   :  { %4144 = vmatpush1.bf16.msra.mxu1 %v4143_v21  ;;  %4098 = vmatprep.subr.bf16.mxu0 %v5149_v55 }
  0xf0   :  { %4146 = vmatprep.subr.bf16.mxu1 %v5170_v20  ;;  %1011 = vmatprep.mubr.f32.mxu0 %v7413_v33 }
  0xf1   :  { %1603 = vmatprep.mubr.f32.mxu1 %v7413_v33  ;;  %1013 = vmatmul.mubr.f32.vlgmr.msra.gmra.mrb[0].mxu0 %v4884_v26 }
  0xf2   :  { %1605 = vmatmul.mubr.f32.vlgmr.msra.gmra.mrb[0].mxu1 %v4884_v26  ;;  %4100 = vmatpush1.bf16.msra.mxu0 %v5168_v27 }
  0xf3   :  { %4148 = vmatpush1.bf16.msra.mxu1 %v5190_v8  ;;  %4102 = vmatprep.subr.bf16.mxu0 %v5299_v49  ;;  %v500_v49 = vpop.permute.xlu1 %499 }
  0xf4   :  { %4150 = vmatprep.subr.bf16.mxu1 %v5301_v37  ;;  %1018 = vmatprep.mubr.f32.mxu0 %v7413_v33  ;;  %v495_v37 = vpop.permute.xlu0 %494 }
  0xf5   :  { %1610 = vmatprep.mubr.f32.mxu1 %v7413_v33  ;;  %1020 = vmatmul.mubr.f32.gmra.mrb[2].mxu0 %v4986_v14 }
  0xf6   :  { %1612 = vmatmul.mubr.f32.gmra.mrb[2].mxu1 %v4986_v14  ;;  %4104 = vmatpush1.bf16.msra.mxu0 %v5287_v25 }
  0xf7   :  { %4152 = vmatpush1.bf16.msra.mxu1 %v5303_v56  ;;  %1098 = vmatprep.mubr.f32.mxu0 %v7413_v33 }
  0xf8   :  { %1690 = vmatprep.mubr.f32.mxu1 %v7413_v33 }
  0xf9   :  { %1100 = vmatmul.mubr.f32.vlgmr.msra.gmra.mrb[0].mxu0 %v4884_v26 }
  0xfa   :  { %1692 = vmatmul.mubr.f32.vlgmr.msra.gmra.mrb[0].mxu1 %v4884_v26  ;;  %1105 = vmatprep.mubr.f32.mxu0 %v7413_v33 }
  0xfb   :  { %1697 = vmatprep.mubr.f32.mxu1 %v7413_v33 }
  0xfd   :  { %1107 = vmatmul.mubr.f32.gmra.mrb[2].mxu0 %v4986_v14 }
  0xfe   :  { %1699 = vmatmul.mubr.f32.gmra.mrb[2].mxu1 %v4986_v14 }
 0x1cc   :  { %v1101_v23 = vpop.f32.mrb[0].mxu0 }
 0x1cd   :  { %v1693_v18 = vpop.f32.mrb[0].mxu1  ;;  %v4585_v55 = vadd.f32 %v1101_v23, %v495_v37  ;;  %v1103_v20 = vpop.f32.mrb[1].mxu0 }
 0x1ce   :  { %v4589_v27 = vadd.f32 %v1693_v18, %v495_v37  ;;  %v1695_v8 = vpop.f32.mrb[1].mxu1  ;;  %v4586_v5 = vadd.f32 %v1103_v20, %v495_v37 }
 0x1cf   :  { %v4590_v12 = vadd.f32 %v1695_v8, %v495_v37  ;;  %v5448_v25 = vmax.f32 %v4585_v55, 0.0 }
 0x1d0   :  { %v5450_v26 = vmax.f32 %v4589_v27, 0.0  ;;  %v5452_v24 = vmax.f32 %v4586_v5, 0.0  ;;  %v1108_v56 = vpop.f32.mrb[2].mxu0 }
 0x1d1   :  { %v5454_v29 = vmax.f32 %v4590_v12, 0.0  ;;  %v1700_v14 = vpop.f32.mrb[2].mxu1  ;;  %v4587_v33 = vadd.f32 %v1108_v56, %v500_v49  ;;  %v1110_v30 = vpop.f32.mrb[3].mxu0  ;;  %1713 = vrot.lane.b32.xlu1 %v5448_v25, %s4710_s25  ;;  %v2159_v50 = vand.u32 4294901760, %v5448_v25 }
 0x1d2   :  { %v4591_v39 = vadd.f32 %v1700_v14, %v500_v49  ;;  %v1702_v40 = vpop.f32.mrb[3].mxu1  ;;  %v3079_v4 = vand.u32 4294901760, %v5450_v26  ;;  %v4588_v2 = vadd.f32 %v1110_v30, %v500_v49  ;;  %v7155_v22 = vand.u32 4294901760, %v5452_v24 }
 0x1d3   :  { %v4592_v16 = vadd.f32 %v1702_v40, %v500_v49  ;;  %v5460_v63 = vmax.f32 %v4587_v33, 0.0  ;;  %v5465_v31 = vsub.f32 %v5448_v25, %v2159_v50  ;;  %v7153_v11 = vand.u32 4294901760, %v5454_v29  ;;  %v2114_v40 = vld [vmem:[%s7085_s5] sm:$0x7] }
 0x1d4   :  { %v5462_v10 = vmax.f32 %v4591_v39, 0.0  ;;  %v5468_v45 = vsub.f32 %v5450_v26, %v3079_v4  ;;  %v5470_v36 = vmax.f32 %v4588_v2, 0.0  ;;  %v5499_v57 = vsub.f32 %v5452_v24, %v7155_v22 }
 0x1d5   :  { %7430 = vst [vmem:[#allocation31_spill] sm:$0xff] %v5465_v31  ;;  %v5472_v6 = vmax.f32 %v4592_v16, 0.0  ;;  %1715 = vrot.lane.b32.xlu0 %v5460_v63, %s4710_s25  ;;  %1721 = vrot.lane.b32.xlu1 %v5450_v26, %s4710_s25  ;;  %v2163_v32 = vand.u32 4294901760, %v5460_v63  ;;  %v2346_v35 = vand.u32 4294901760, %v5465_v31  ;;  %v5518_v42 = vsub.f32 %v5454_v29, %v7153_v11 }
 0x1d6   :  { %7431 = vst [vmem:[#allocation32_spill] sm:$0xff] %v5468_v45  ;;  %v3083_v46 = vand.u32 4294901760, %v5462_v10  ;;  %v7154_v0 = vand.u32 4294901760, %v5470_v36  ;;  %v3266_v58 = vand.u32 4294901760, %v5468_v45  ;;  %7436 = vst [vmem:[#allocation37_spill] sm:$0xff] %v5499_v57  ;;  %v7159_v47 = vand.u32 4294901760, %v5499_v57 }
 0x1d7   :  { %v7152_v13 = vand.u32 4294901760, %v5472_v6  ;;  %v5486_v62 = vpack.c.bf16 %v2163_v32, %v2159_v50  ;;  %v5489_v60 = vsub.f32 %v5460_v63, %v2163_v32  ;;  %7439 = vst [vmem:[#allocation40_spill] sm:$0xff] %v5518_v42  ;;  %v2347_v9 = vsub.f32 %v5465_v31, %v2346_v35 }
 0x1d8   :  { %v5491_v48 = vpack.c.bf16 %v3083_v46, %v3079_v4  ;;  %v5494_v3 = vsub.f32 %v5462_v10, %v3083_v46  ;;  %v5504_v51 = vsub.f32 %v5470_v36, %v7154_v0  ;;  %v3267_v1 = vsub.f32 %v5468_v45, %v3266_v58 }
 0x1d9   :  { %7432 = vst [vmem:[#allocation33_spill] sm:$0xff] %v5486_v62  ;;  %7433 = vst [vmem:[#allocation34_spill] sm:$0xff] %v5489_v60  ;;  %v5509_v19 = vsub.f32 %v5472_v6, %v7152_v13  ;;  %1723 = vrot.lane.b32.xlu0 %v5462_v10, %s4710_s25  ;;  %1745 = vrot.lane.b32.xlu1 %v5448_v25, %s4708_s0  ;;  %v2358_v17 = vand.u32 4294901760, %v5489_v60  ;;  %v2348_v21 = vand.u32 4294901760, %v2347_v9  ;;  %v7157_v23 = vand.u32 4294901760, %v5518_v42 }
 0x1da   :  { %7434 = vst [vmem:[#allocation35_spill] sm:$0xff] %v5491_v48  ;;  %7435 = vst [vmem:[#allocation36_spill] sm:$0xff] %v5494_v3  ;;  %v3278_v41 = vand.u32 4294901760, %v5494_v3  ;;  %v7158_v7 = vand.u32 4294901760, %v5504_v51  ;;  %v3268_v55 = vand.u32 4294901760, %v3267_v1  ;;  %v7456_v45 = vand.u32 4294901760, %v5518_v42 }
 0x1db   :  { %7437 = vst [vmem:[#allocation38_spill] sm:$0xff] %v5504_v51  ;;  %7438 = vst [vmem:[#allocation39_spill] sm:$0xff] %v5509_v19  ;;  %v2359_v28 = vsub.f32 %v5489_v60, %v2358_v17  ;;  %v7156_v59 = vand.u32 4294901760, %v5509_v19  ;;  %v5546_v12 = vpack.c.bf16 %v2358_v17, %v2346_v35  ;;  %v2041_v1 = vld [vmem:[%s7084_s4] sm:$0x77] }
 0x1dc   :  { %v3279_v34 = vsub.f32 %v5494_v3, %v3278_v41  ;;  %v5544_v5 = vpack.c.bf16 %v7158_v7, %v7159_v47  ;;  %v5556_v14 = vpack.c.bf16 %v3278_v41, %v3266_v58  ;;  %v2121_v41 = vcombine.high %v2041_v1, %v2041_v1 }
 0x1dd   :  { %1747 = vrot.lane.b32.xlu0 %v5460_v63, %s4708_s0  ;;  %1753 = vrot.lane.b32.xlu1 %v5450_v26, %s4708_s0  ;;  %v2360_v37 = vand.u32 4294901760, %v2359_v28  ;;  %7442 = vst [vmem:[#allocation43_spill] sm:$0xff] %v5546_v12  ;;  %v5552_v49 = vpack.c.bf16 %v7156_v59, %v7157_v23  ;;  %v5746_v47 = vand.u32 4294901760, %v2041_v1  ;;  %v7454_v12 = vand.u32 4294901760, %v5499_v57 }
 0x1de   :  { %v3280_v27 = vand.u32 4294901760, %v3279_v34  ;;  %7441 = vst [vmem:[#allocation42_spill] sm:$0xff] %v5544_v5  ;;  %7445 = vst [vmem:[#allocation46_spill] sm:$0xff] %v5556_v14  ;;  %v7455_v5 = vand.u32 4294901760, %v5504_v51  ;;  %v3261_v3 = vsub.f32 %v5518_v42, %v7456_v45 }
 0x1df   :  { %v5538_v8 = vpack.c.bf16 %v2360_v37, %v2348_v21  ;;  %7443 = vst [vmem:[#allocation44_spill] sm:$0xff] %v5552_v49  ;;  %v2123_v21 = vsel %vm2122_vm0, %v2121_v41, 0  ;;  %7450 = vst [vmem:[#allocation51_spill] sm:$0xff] %v5746_v47 }
 0x1e0   :  { %v5554_v56 = vpack.c.bf16 %v3280_v27, %v3268_v55  ;;  %v5716_v37 = vand.u32 4294901760, %v2123_v21 }
 0x1e1   :  { %7440 = vst [vmem:[#allocation41_spill] sm:$0xff] %v5538_v8  ;;  %1755 = vrot.lane.b32.xlu0 %v5462_v10, %s4708_s0  ;;  %1777 = vrot.lane.b32.xlu1 %v5448_v25, %s4706_s23 }
 0x1e2   :  { %7444 = vst [vmem:[#allocation45_spill] sm:$0xff] %v5554_v56  ;;  %7446 = vst [vmem:[#allocation47_spill] sm:$0xff] %v5716_v37 }
 0x1e5   :  { %1779 = vrot.lane.b32.xlu0 %v5460_v63, %s4706_s23  ;;  %1785 = vrot.lane.b32.xlu1 %v5450_v26, %s4706_s23 }
 0x1e9   :  { %1787 = vrot.lane.b32.xlu0 %v5462_v10, %s4706_s23  ;;  %1809 = vrot.lane.b32.xlu1 %v5448_v25, %s4707_s1 }
 0x1ed   :  { %1811 = vrot.lane.b32.xlu0 %v5460_v63, %s4707_s1  ;;  %1817 = vrot.lane.b32.xlu1 %v5450_v26, %s4707_s1 }
 0x1f1   :  { %1819 = vrot.lane.b32.xlu0 %v5462_v10, %s4707_s1  ;;  %1841 = vrot.lane.b32.xlu1 %v5448_v25, %s4709_s24 }
 0x1f5   :  { %1843 = vrot.lane.b32.xlu0 %v5460_v63, %s4709_s24  ;;  %1849 = vrot.lane.b32.xlu1 %v5450_v26, %s4709_s24 }
 0x1f9   :  { %1851 = vrot.lane.b32.xlu0 %v5462_v10, %s4709_s24  ;;  %1873 = vrot.lane.b32.xlu1 %v5448_v25, %s4711_s26 }
 0x1fd   :  { %1875 = vrot.lane.b32.xlu0 %v5460_v63, %s4711_s26  ;;  %1881 = vrot.lane.b32.xlu1 %v5450_v26, %s4711_s26 }
 0x201   :  { %1883 = vrot.lane.b32.xlu0 %v5462_v10, %s4711_s26  ;;  %1905 = vrot.lane.b32.xlu1 %v5448_v25, %s4712_s27 }
 0x205   :  { %1907 = vrot.lane.b32.xlu0 %v5460_v63, %s4712_s27  ;;  %1913 = vrot.lane.b32.xlu1 %v5450_v26, %s4712_s27 }
 0x209   :  { %1915 = vrot.lane.b32.xlu0 %v5462_v10, %s4712_s27  ;;  %1937 = vrot.lane.b32.xlu1 %v5448_v25, %s4713_s28 }
 0x20d   :  { %1939 = vrot.lane.b32.xlu0 %v5460_v63, %s4713_s28  ;;  %1945 = vrot.lane.b32.xlu1 %v5450_v26, %s4713_s28 }
 0x211   :  { %1947 = vrot.lane.b32.xlu0 %v5462_v10, %s4713_s28  ;;  %1717 = vrot.lane.b32.xlu1 %v5452_v24, %s4710_s25 }
 0x215   :  { %1719 = vrot.lane.b32.xlu0 %v5470_v36, %s4710_s25  ;;  %1725 = vrot.lane.b32.xlu1 %v5454_v29, %s4710_s25 }
 0x219   :  { %1727 = vrot.lane.b32.xlu0 %v5472_v6, %s4710_s25  ;;  %1749 = vrot.lane.b32.xlu1 %v5452_v24, %s4708_s0 }
 0x21d   :  { %1751 = vrot.lane.b32.xlu0 %v5470_v36, %s4708_s0  ;;  %1757 = vrot.lane.b32.xlu1 %v5454_v29, %s4708_s0 }
 0x221   :  { %1759 = vrot.lane.b32.xlu0 %v5472_v6, %s4708_s0  ;;  %1781 = vrot.lane.b32.xlu1 %v5452_v24, %s4706_s23 }
 0x225   :  { %1783 = vrot.lane.b32.xlu0 %v5470_v36, %s4706_s23  ;;  %1789 = vrot.lane.b32.xlu1 %v5454_v29, %s4706_s23 }
 0x229   :  { %1791 = vrot.lane.b32.xlu0 %v5472_v6, %s4706_s23  ;;  %1813 = vrot.lane.b32.xlu1 %v5452_v24, %s4707_s1 }
 0x22d   :  { %1815 = vrot.lane.b32.xlu0 %v5470_v36, %s4707_s1  ;;  %1821 = vrot.lane.b32.xlu1 %v5454_v29, %s4707_s1 }
 0x231   :  { %1823 = vrot.lane.b32.xlu0 %v5472_v6, %s4707_s1  ;;  %1845 = vrot.lane.b32.xlu1 %v5452_v24, %s4709_s24 }
 0x235   :  { %1847 = vrot.lane.b32.xlu0 %v5470_v36, %s4709_s24  ;;  %1853 = vrot.lane.b32.xlu1 %v5454_v29, %s4709_s24 }
 0x239   :  { %1855 = vrot.lane.b32.xlu0 %v5472_v6, %s4709_s24  ;;  %1877 = vrot.lane.b32.xlu1 %v5452_v24, %s4711_s26 }
 0x23d   :  { %1879 = vrot.lane.b32.xlu0 %v5470_v36, %s4711_s26  ;;  %1885 = vrot.lane.b32.xlu1 %v5454_v29, %s4711_s26 }
 0x241   :  { %1887 = vrot.lane.b32.xlu0 %v5472_v6, %s4711_s26  ;;  %1909 = vrot.lane.b32.xlu1 %v5452_v24, %s4712_s27 }
 0x243   :  { %v5658_v25 = vpop.permute.xlu1 %1713 }
 0x245   :  { %1911 = vrot.lane.b32.xlu0 %v5470_v36, %s4712_s27  ;;  %1917 = vrot.lane.b32.xlu1 %v5454_v29, %s4712_s27 }
 0x247   :  { %v5664_v26 = vpop.permute.xlu0 %1715  ;;  %v5666_v33 = vpop.permute.xlu1 %1721 }
 0x249   :  { %1919 = vrot.lane.b32.xlu0 %v5472_v6, %s4712_s27  ;;  %1941 = vrot.lane.b32.xlu1 %v5452_v24, %s4713_s28 }
 0x24b   :  { %v5672_v39 = vpop.permute.xlu0 %1723  ;;  %v5674_v30 = vpop.permute.xlu1 %1745 }
 0x24d   :  { %1943 = vrot.lane.b32.xlu0 %v5470_v36, %s4713_s28  ;;  %1949 = vrot.lane.b32.xlu1 %v5454_v29, %s4713_s28 }
 0x24f   :  { %v5683_v50 = vpop.permute.xlu0 %1747  ;;  %v5685_v4 = vpop.permute.xlu1 %1753 }
 0x251   :  { %1951 = vrot.lane.b32.xlu0 %v5472_v6, %s4713_s28  ;;  %2117 = vperm.xlu1 %4671, %v2114_v40   ;;  %v5723_v40 = vsub.f32 %v2123_v21, %v5716_v37 }
 0x253   :  { %v5689_v2 = vpop.permute.xlu0 %1755  ;;  %v5691_v16 = vpop.permute.xlu1 %1777  ;;  %7447 = vst [vmem:[#allocation48_spill] sm:$0xff] %v5723_v40  ;;  %v5726_v20 = vand.u32 4294901760, %v5723_v40 }
 0x255   :  { %7448 = vst [vmem:[#allocation49_spill] sm:$0xff] %v5726_v20  ;;  %v2228_v11 = vsub.f32 %v5723_v40, %v5726_v20  ;;  %v2353_v20 = vsub.f32 %v5504_v51, %v7455_v5  ;;  %v7460_v51 = vand.u32 4294901760, %v5452_v24 }
 0x257   :  { %v5693_v63 = vpop.permute.xlu0 %1779  ;;  %v5695_v10 = vpop.permute.xlu1 %1785  ;;  %v2229_v41 = vand.u32 4294901760, %v2228_v11  ;;  %v5753_v11 = vsub.f32 %v2041_v1, %v5746_v47  ;;  %v7459_v1 = vand.u32 4294901760, %v5509_v19 }
 0x259   :  { %2230 = vmatprep.mubr.f32.mxu0 %v2229_v41  ;;  %3150 = vmatprep.mubr.f32.mxu1 %v2229_v41  ;;  %7453 = vst [vmem:[#allocation54_spill] sm:$0xff] %v5753_v11  ;;  %v2341_v41 = vsub.f32 %v5499_v57, %v7454_v12  ;;  %v5767_v40 = vand.u32 4294901760, %v5753_v11  ;;  %v3273_v47 = vsub.f32 %v5509_v19, %v7459_v1  ;;  %v7461_v57 = vand.u32 4294901760, %v5470_v36 }
 0x25a   :  { %v2354_v1 = vand.u32 4294901760, %v2353_v20  ;;  %v3262_v19 = vand.u32 4294901760, %v3261_v3 }
 0x25b   :  { %v5697_v32 = vpop.permute.xlu0 %1787  ;;  %v5699_v46 = vpop.permute.xlu1 %1809  ;;  %7458 = vst [vmem:[#allocation56_spill] sm:$0xff] %v5767_v40  ;;  %v5784_v56 = vpack.c.bf16 %v7461_v57, %v7460_v51  ;;  %v2342_v8 = vand.u32 4294901760, %v2341_v41 }
 0x25d   :  { %7462 = vst [vmem:[#allocation57_spill] sm:$0xff] %v5784_v56 }
 0x25f   :  { %v5701_v35 = vpop.permute.xlu0 %1811  ;;  %v5703_v58 = vpop.permute.xlu1 %1817 }
 0x263   :  { %v5705_v9 = vpop.permute.xlu0 %1819  ;;  %v5707_v17 = vpop.permute.xlu1 %1841 }
 0x267   :  { %v5712_v28 = vpop.permute.xlu0 %1843  ;;  %v5714_v34 = vpop.permute.xlu1 %1849 }
 0x26b   :  { %v5718_v55 = vpop.permute.xlu0 %1851  ;;  %v5720_v27 = vpop.permute.xlu1 %1873 }
 0x26f   :  { %v5728_v18 = vpop.permute.xlu0 %1875  ;;  %v5730_v13 = vpop.permute.xlu1 %1881 }
 0x273   :  { %v5734_v0 = vpop.permute.xlu0 %1883  ;;  %v5736_v22 = vpop.permute.xlu1 %1905 }
 0x277   :  { %v5738_v59 = vpop.permute.xlu0 %1907  ;;  %v5740_v21 = vpop.permute.xlu1 %1913 }
 0x27b   :  { %v5742_v23 = vpop.permute.xlu0 %1915  ;;  %v5744_v7 = vpop.permute.xlu1 %1937 }
 0x27c   :  { %7449 = vst [vmem:[#allocation50_spill] sm:$0xff] %v5744_v7 }
 0x27f   :  { %v5748_v14 = vpop.permute.xlu0 %1939  ;;  %v5750_v49 = vpop.permute.xlu1 %1945 }
 0x280   :  { %7451 = vst [vmem:[#allocation52_spill] sm:$0xff] %v5748_v14  ;;  %7452 = vst [vmem:[#allocation53_spill] sm:$0xff] %v5750_v49  ;;  %v3274_v49 = vand.u32 4294901760, %v3273_v47 }
 0x283   :  { %v5764_v31 = vpop.permute.xlu0 %1947  ;;  %v1718_v60 = vpop.permute.xlu1 %1717 }
 0x284   :  { %7457 = vst [vmem:[#allocation55_spill] sm:$0xff] %v5764_v31  ;;  %v1731_v12 = vsel %vm77_vm7, %v1718_v60, %v5666_v33  ;;  %v1733_v5 = vsel %vm77_vm7, %v5658_v25, %v1718_v60  ;;  %v2234_v60 = vsub.f32 %v5753_v11, %v5767_v40 }
 0x285   :  { %v1738_v45 = vmul.f32 %v1733_v5, %v4945_v52  ;;  %v1739_v42 = vmul.f32 %v1731_v12, %v4951_v54  ;;  %v7464_v5 = vand.u32 4294901760, %v5454_v29 }
 0x287   :  { %v2125_v37 = vand.u32 4294901760, %v1738_v45  ;;  %v3047_v14 = vand.u32 4294901760, %v1739_v42  ;;  %v1720_v31 = vpop.permute.xlu0 %1719  ;;  %v1726_v7 = vpop.permute.xlu1 %1725 }
 0x288   :  { %v1732_v12 = vsel %vm77_vm7, %v1720_v31, %v5672_v39  ;;  %v1734_v24 = vsel %vm77_vm7, %v5664_v26, %v1720_v31  ;;  %v1729_v36 = vsel %vm77_vm7, %v5666_v33, %v1726_v7  ;;  %v1735_v3 = vsel %vm77_vm7, %v1726_v7, %v5658_v25 }
 0x289   :  { %v5800_v57 = vsub.f32 %v1738_v45, %v2125_v37  ;;  %v5802_v51 = vsub.f32 %v1739_v42, %v3047_v14  ;;  %v1742_v47 = vmul.f32 %v1734_v24, %v4945_v52  ;;  %v1743_v20 = vmul.f32 %v1732_v12, %v4951_v54 }
 0x28a   :  { %v1737_v41 = vmul.f32 %v1735_v3, %v4948_v53  ;;  %v5808_v31 = vmul.f32 %v1729_v36, %v4963_v61  ;;  %v7465_v33 = vand.u32 4294901760, %v5472_v6  ;;  %v5816_v7 = vpack.c.bf16 %v2354_v1, %v2342_v8 }
 0x28b   :  { %7463 = vst [vmem:[#allocation58_spill] sm:$0xff] %v5802_v51  ;;  %v7182_v42 = vand.u32 4294901760, %v5802_v51  ;;  %v2129_v25 = vand.u32 4294901760, %v1742_v47  ;;  %v3051_v45 = vand.u32 4294901760, %v1743_v20  ;;  %v1728_v52 = vpop.permute.xlu0 %1727  ;;  %v1750_v24 = vpop.permute.xlu1 %1749  ;;  %v5819_v54 = vpack.c.bf16 %v3274_v49, %v3262_v19 }
 0x28c   :  { %v5814_v40 = vpack.c.bf16 %v7465_v33, %v7464_v5  ;;  %7467 = vst [vmem:[#allocation60_spill] sm:$0xff] %v5816_v7  ;;  %v2127_v12 = vand.u32 4294901760, %v1737_v41  ;;  %v3045_v36 = vand.u32 4294901760, %v5808_v31  ;;  %v1730_v29 = vsel %vm77_vm7, %v5672_v39, %v1728_v52 }
 0x28d   :  { %7468 = vst [vmem:[#allocation61_spill] sm:$0xff] %v5819_v54  ;;  %v1736_v6 = vsel %vm77_vm7, %v1728_v52, %v5664_v26  ;;  %v5828_v8 = vsub.f32 %v1742_v47, %v2129_v25  ;;  %v5830_v1 = vpack.c.bf16 %v3051_v45, %v3047_v14  ;;  %v5832_v3 = vsub.f32 %v1743_v20, %v3051_v45 }
 0x28e   :  { %7466 = vst [vmem:[#allocation59_spill] sm:$0xff] %v5814_v40  ;;  %v5834_v5 = vand.u32 4294901760, %v2234_v60  ;;  %v5836_v19 = vsub.f32 %v1737_v41, %v2127_v12  ;;  %v5839_v49 = vsub.f32 %v5808_v31, %v3045_v36  ;;  %v1741_v33 = vmul.f32 %v1736_v6, %v4948_v53 }
 0x28f   :  { %7469 = vst [vmem:[#allocation62_spill] sm:$0xff] %v5830_v1  ;;  %7470 = vst [vmem:[#allocation63_spill] sm:$0xff] %v5832_v3  ;;  %v1744_v39 = vmul.f32 %v1730_v29, %v4963_v61  ;;  %v1763_v26 = vsel %vm115_vm5, %v1750_v24, %v5685_v4  ;;  %v1765_v14 = vsel %vm115_vm5, %v5674_v30, %v1750_v24  ;;  %v1752_v47 = vpop.permute.xlu0 %1751  ;;  %v1758_v20 = vpop.permute.xlu1 %1757 }
 0x290   :  { %7471 = vst [vmem:[#allocation64_spill] sm:$0xff] %v5836_v19  ;;  %v5849_v60 = vpack.c.bf16 %v2129_v25, %v2125_v37  ;;  %v5855_v53 = vsub.f32 %v5802_v51, %v7182_v42  ;;  %v2131_v61 = vand.u32 4294901760, %v1741_v33  ;;  %v5858_v45 = vmul.f32 %v1765_v14, %v4912_v38 }
 0x291   :  { %v3049_v31 = vand.u32 4294901760, %v1744_v39  ;;  %v1771_v24 = vmul.f32 %v1763_v26, %v4923_v44  ;;  %v1764_v37 = vsel %vm115_vm5, %v1752_v47, %v5689_v2  ;;  %v1766_v25 = vsel %vm115_vm5, %v5683_v50, %v1752_v47 }
 0x292   :  { %7472 = vst [vmem:[#allocation65_spill] sm:$0xff] %v5849_v60  ;;  %7473 = vst [vmem:[#allocation66_spill] sm:$0xff] %v5855_v53  ;;  %4154 = vmatprep.subr.bf16.mxu0 %v5849_v60  ;;  %v7193_v29 = vand.u32 4294901760, %v5836_v19  ;;  %v5870_v6 = vpack.c.bf16 %v2131_v61, %v2127_v12  ;;  %v5872_v14 = vsub.f32 %v1741_v33, %v2131_v61  ;;  %v2133_v26 = vand.u32 4294901760, %v5858_v45 }
 0x293   :  { %v5874_v42 = vsub.f32 %v1744_v39, %v3049_v31  ;;  %v3055_v41 = vand.u32 4294901760, %v1771_v24  ;;  %v1774_v52 = vmul.f32 %v1766_v25, %v4912_v38  ;;  %v1775_v11 = vmul.f32 %v1764_v37, %v4923_v44  ;;  %v1760_v51 = vpop.permute.xlu0 %1759  ;;  %v1782_v54 = vpop.permute.xlu1 %1781 }
 0x294   :  { %7474 = vst [vmem:[#allocation67_spill] sm:$0xff] %v5870_v6  ;;  %7475 = vst [vmem:[#allocation68_spill] sm:$0xff] %v5872_v14  ;;  %v1761_v12 = vsel %vm115_vm5, %v5685_v4, %v1758_v20  ;;  %v1767_v33 = vsel %vm115_vm5, %v1758_v20, %v5674_v30  ;;  %v1762_v39 = vsel %vm115_vm5, %v5689_v2, %v1760_v51  ;;  %4156 = vmatpush1.bf16.msra.mxu0 %v5870_v6  ;;  %v7479_v20 = vld [vmem:[#allocation14_spill] sm:$0xff] }
 0x295   :  { %v5891_v38 = vsub.f32 %v5858_v45, %v2133_v26  ;;  %v5893_v44 = vsub.f32 %v1771_v24, %v3055_v41  ;;  %v2137_v61 = vand.u32 4294901760, %v1774_v52  ;;  %v3059_v37 = vand.u32 4294901760, %v1775_v11 }
 0x296   :  { %v7477_v25 = vand.u32 4294901760, %v5832_v3  ;;  %v1769_v30 = vmul.f32 %v1767_v33, %v4920_v43  ;;  %v5902_v47 = vmul.f32 %v1761_v12, %v7479_v20  ;;  %v1768_v2 = vsel %vm115_vm5, %v1760_v51, %v5683_v50 }
 0x297   :  { %7476 = vst [vmem:[#allocation69_spill] sm:$0xff] %v5893_v44  ;;  %v5910_v45 = vsub.f32 %v5836_v19, %v7193_v29  ;;  %v7480_v24 = vand.u32 4294901760, %v5872_v14  ;;  %v5919_v33 = vsub.f32 %v1775_v11, %v3059_v37  ;;  %v1784_v12 = vpop.permute.xlu0 %1783  ;;  %v1790_v60 = vpop.permute.xlu1 %1789  ;;  %v1773_v50 = vmul.f32 %v1768_v2, %v4920_v43  ;;  %v7490_v43 = vld [vmem:[#allocation9_spill] sm:$0xff] }
 0x298   :  { %v5898_v4 = vsub.f32 %v5832_v3, %v7477_v25  ;;  %v5917_v25 = vsub.f32 %v1774_v52, %v2137_v61  ;;  %v2135_v3 = vand.u32 4294901760, %v1769_v30  ;;  %v3053_v7 = vand.u32 4294901760, %v5902_v47 }
 0x299   :  { %v5915_v6 = vsub.f32 %v5872_v14, %v7480_v24  ;;  %7481 = vst [vmem:[#allocation14_spill] sm:$0xff] %v5919_v33  ;;  %v1776_v51 = vmul.f32 %v1762_v39, %v7479_v20  ;;  %v5925_v19 = vpack.c.bf16 %v3059_v37, %v3055_v41  ;;  %v1795_v11 = vsel %vm153_vm1, %v1782_v54, %v5695_v10  ;;  %v7486_v41 = vld [vmem:[#allocation10_spill] sm:$0xff] }
 0x29a   :  { %7478 = vst [vmem:[#allocation70_spill] sm:$0xff] %v5898_v4  ;;  %v5927_v4 = vpack.c.bf16 %v3049_v31, %v3045_v36  ;;  %v5932_v52 = vsub.f32 %v1769_v30, %v2135_v3  ;;  %v5935_v24 = vsub.f32 %v5902_v47, %v3053_v7  ;;  %v2139_v14 = vand.u32 4294901760, %v1773_v50 }
 0x29b   :  { %7482 = vst [vmem:[#allocation71_spill] sm:$0xff] %v5925_v19  ;;  %v3057_v53 = vand.u32 4294901760, %v1776_v51  ;;  %v1797_v36 = vsel %vm153_vm1, %v5691_v16, %v1782_v54  ;;  %v1803_v31 = vmul.f32 %v1795_v11, %v7486_v41  ;;  %v1796_v39 = vsel %vm153_vm1, %v1784_v12, %v5697_v32  ;;  %v1792_v37 = vpop.permute.xlu0 %1791 }
 0x29c   :  { %7483 = vst [vmem:[#allocation72_spill] sm:$0xff] %v5927_v4  ;;  %7484 = vst [vmem:[#allocation73_spill] sm:$0xff] %v5932_v52  ;;  %4370 = vmatprep.subr.bf16.mxu1 %v5927_v4  ;;  %v5947_v30 = vpack.c.bf16 %v2139_v14, %v2135_v3  ;;  %v5949_v20 = vsub.f32 %v1773_v50, %v2139_v14  ;;  %v1802_v29 = vmul.f32 %v1797_v36, %v7490_v43 }
 0x29d   :  { %7485 = vst [vmem:[#allocation74_spill] sm:$0xff] %v5935_v24  ;;  %v5951_v2 = vsub.f32 %v1776_v51, %v3057_v53  ;;  %4372 = vmatpush1.bf16.msra.mxu1 %v5830_v1  ;;  %v3063_v54 = vand.u32 4294901760, %v1803_v31  ;;  %v1798_v11 = vsel %vm153_vm1, %v5693_v63, %v1784_v12  ;;  %v1807_v4 = vmul.f32 %v1796_v39, %v7486_v41  ;;  %v1814_v24 = vpop.permute.xlu1 %1813 }
 0x29e   :  { %7487 = vst [vmem:[#allocation10_spill] sm:$0xff] %v5947_v30  ;;  %7488 = vst [vmem:[#allocation75_spill] sm:$0xff] %v5949_v20  ;;  %v7491_v47 = vand.u32 4294901760, %v5893_v44  ;;  %v7212_v14 = vand.u32 4294901760, %v5949_v20  ;;  %v1806_v50 = vmul.f32 %v1798_v11, %v7490_v43  ;;  %v5966_v51 = vpack.c.bf16 %v2137_v61, %v2133_v26  ;;  %v7495_v61 = vld [vmem:[#allocation7_spill] sm:$0xff] }
 0x29f   :  { %7489 = vst [vmem:[#allocation76_spill] sm:$0xff] %v5951_v2  ;;  %v2141_v36 = vand.u32 4294901760, %v1802_v29  ;;  %v5968_v1 = vsub.f32 %v1803_v31, %v3063_v54  ;;  %v3067_v2 = vand.u32 4294901760, %v1807_v4  ;;  %v1793_v12 = vsel %vm153_vm1, %v5695_v10, %v1790_v60  ;;  %v1816_v41 = vpop.permute.xlu0 %1815 }
 0x2a0   :  { %v5962_v3 = vsub.f32 %v5893_v44, %v7491_v47  ;;  %7492 = vst [vmem:[#allocation9_spill] sm:$0xff] %v5966_v51  ;;  %v7494_v39 = vand.u32 4294901760, %v5919_v33  ;;  %v2145_v44 = vand.u32 4294901760, %v1806_v50  ;;  %4158 = vmatprep.subr.bf16.mxu0 %v5966_v51  ;;  %v1799_v26 = vsel %vm153_vm1, %v1790_v60, %v5691_v16 }
 0x2a1   :  { %7493 = vst [vmem:[#allocation77_spill] sm:$0xff] %v5968_v1  ;;  %v5983_v43 = vmul.f32 %v1793_v12, %v7495_v61  ;;  %v7496_v31 = vand.u32 4294901760, %v5932_v52  ;;  %v5993_v11 = vsub.f32 %v5949_v20, %v7212_v14  ;;  %v5996_v51 = vsub.f32 %v1807_v4, %v3067_v2  ;;  %4160 = vmatpush1.bf16.msra.mxu0 %v5947_v30  ;;  %v7499_v12 = vld [vmem:[#allocation6_spill] sm:$0xff] }
 0x2a2   :  { %v5976_v47 = vsub.f32 %v5919_v33, %v7494_v39  ;;  %v5999_v16 = vsub.f32 %v1802_v29, %v2141_v36  ;;  %v6001_v60 = vpack.c.bf16 %v3067_v2, %v3063_v54  ;;  %v1801_v33 = vmul.f32 %v1799_v26, %v7499_v12  ;;  %v1822_v29 = vpop.permute.xlu1 %1821 }
 0x2a3   :  { %v5988_v10 = vsub.f32 %v5932_v52, %v7496_v31  ;;  %7497 = vst [vmem:[#allocation7_spill] sm:$0xff] %v5996_v51  ;;  %v1794_v31 = vsel %vm153_vm1, %v5697_v32, %v1792_v37  ;;  %v6007_v52 = vsub.f32 %v1806_v50, %v2145_v44  ;;  %v3061_v14 = vand.u32 4294901760, %v5983_v43 }
 0x2a4   :  { %7498 = vst [vmem:[#allocation78_spill] sm:$0xff] %v6001_v60  ;;  %v1800_v4 = vsel %vm153_vm1, %v1792_v37, %v5693_v63  ;;  %v1808_v39 = vmul.f32 %v1794_v31, %v7495_v61  ;;  %v7500_v2 = vand.u32 4294901760, %v5968_v1  ;;  %v2143_v26 = vand.u32 4294901760, %v1801_v33  ;;  %v1824_v61 = vpop.permute.xlu0 %1823 }
 0x2a5   :  { %v1805_v30 = vmul.f32 %v1800_v4, %v7499_v12  ;;  %v6020_v32 = vpack.c.bf16 %v3057_v53, %v3053_v7  ;;  %v1827_v63 = vsel %vm191_vm2, %v1814_v24, %v5703_v58  ;;  %v1829_v37 = vsel %vm191_vm2, %v5699_v46, %v1814_v24  ;;  %v7504_v12 = vld [vmem:[#allocation8_spill] sm:$0xff] }
 0x2a6   :  { %v6017_v54 = vsub.f32 %v5968_v1, %v7500_v2  ;;  %v3065_v20 = vand.u32 4294901760, %v1808_v39  ;;  %v6029_v31 = vsub.f32 %v1801_v33, %v2143_v26  ;;  %v6033_v7 = vmul.f32 %v1829_v37, %v7504_v12  ;;  %v7505_v53 = vld [vmem:[#allocation12_spill] sm:$0xff] }
 0x2a7   :  { %7502 = vst [vmem:[#allocation79_spill] sm:$0xff] %v6020_v32  ;;  %v2147_v2 = vand.u32 4294901760, %v1805_v30  ;;  %4374 = vmatprep.subr.bf16.mxu1 %v6020_v32  ;;  %v1835_v4 = vmul.f32 %v1827_v63, %v7505_v53  ;;  %v6037_v50 = vsub.f32 %v5983_v43, %v3061_v14  ;;  %v1828_v24 = vsel %vm191_vm2, %v1816_v41, %v5705_v9 }
 0x2a8   :  { %7501 = vst [vmem:[#allocation6_spill] sm:$0xff] %v6017_v54  ;;  %7503 = vst [vmem:[#allocation80_spill] sm:$0xff] %v6029_v31  ;;  %4376 = vmatpush1.bf16.msra.mxu1 %v5925_v19  ;;  %v1830_v33 = vsel %vm191_vm2, %v5701_v35, %v1816_v41  ;;  %v6046_v1 = vpack.c.bf16 %v2145_v44, %v2141_v36  ;;  %v2149_v43 = vand.u32 4294901760, %v6033_v7  ;;  %v1846_v36 = vpop.permute.xlu1 %1845  ;;  %v7510_v41 = vand.u32 4294901760, %v5996_v51 }
 0x2a9   :  { %7506 = vst [vmem:[#allocation8_spill] sm:$0xff] %v6037_v50  ;;  %v6049_v32 = vpack.c.bf16 %v2147_v2, %v2143_v26  ;;  %v6051_v63 = vsub.f32 %v1805_v30, %v2147_v2  ;;  %v3071_v54 = vand.u32 4294901760, %v1835_v4  ;;  %v1838_v19 = vmul.f32 %v1830_v33, %v7504_v12  ;;  %v7514_v33 = vld [vmem:[#allocation11_spill] sm:$0xff] }
 0x2aa   :  { %7507 = vst [vmem:[#allocation12_spill] sm:$0xff] %v6046_v1  ;;  %v1839_v50 = vmul.f32 %v1828_v24, %v7505_v53  ;;  %4162 = vmatprep.subr.bf16.mxu0 %v6046_v1  ;;  %v1825_v44 = vsel %vm191_vm2, %v5703_v58, %v1822_v29  ;;  %v6063_v26 = vsub.f32 %v5996_v51, %v7510_v41  ;;  %v1848_v1 = vpop.permute.xlu0 %1847  ;;  %v7515_v41 = vand.u32 4294901760, %v6029_v31 }
 0x2ab   :  { %7508 = vst [vmem:[#allocation81_spill] sm:$0xff] %v6049_v32  ;;  %7509 = vst [vmem:[#allocation82_spill] sm:$0xff] %v6051_v63  ;;  %v6066_v2 = vsub.f32 %v1808_v39, %v3065_v20  ;;  %v1831_v12 = vsel %vm191_vm2, %v1822_v29, %v5699_v46  ;;  %4164 = vmatpush1.bf16.msra.mxu0 %v6049_v32  ;;  %v6072_v53 = vsub.f32 %v1835_v4, %v3071_v54  ;;  %v7516_v39 = vld [vmem:[#allocation13_spill] sm:$0xff] }
 0x2ac   :  { %7511 = vst [vmem:[#allocation83_spill] sm:$0xff] %v6063_v26  ;;  %v2153_v24 = vand.u32 4294901760, %v1838_v19  ;;  %v3075_v58 = vand.u32 4294901760, %v1839_v50  ;;  %v1833_v37 = vmul.f32 %v1831_v12, %v7514_v33  ;;  %v6078_v51 = vsub.f32 %v6029_v31, %v7515_v41  ;;  %v1854_v41 = vpop.permute.xlu1 %1853 }
 0x2ad   :  { %7512 = vst [vmem:[#allocation84_spill] sm:$0xff] %v6066_v2  ;;  %7513 = vst [vmem:[#allocation85_spill] sm:$0xff] %v6072_v53  ;;  %v6081_v30 = vmul.f32 %v1825_v44, %v7516_v39  ;;  %v1826_v46 = vsel %vm191_vm2, %v5705_v9, %v1824_v61  ;;  %v1832_v29 = vsel %vm191_vm2, %v1824_v61, %v5701_v35  ;;  %v7517_v4 = vand.u32 4294901760, %v6051_v63 }
 0x2ae   :  { %v6095_v32 = vsub.f32 %v6033_v7, %v2149_v43  ;;  %v6098_v44 = vsub.f32 %v1839_v50, %v3075_v58  ;;  %v2151_v31 = vand.u32 4294901760, %v1833_v37  ;;  %v1837_v9 = vmul.f32 %v1832_v29, %v7514_v33 }
 0x2af   :  { %v6092_v12 = vsub.f32 %v6051_v63, %v7517_v4  ;;  %v3069_v26 = vand.u32 4294901760, %v6081_v30  ;;  %v1840_v2 = vmul.f32 %v1826_v46, %v7516_v39  ;;  %v6103_v35 = vsub.f32 %v1838_v19, %v2153_v24  ;;  %v1856_v46 = vpop.permute.xlu0 %1855 }
 0x2b0   :  { %7518 = vst [vmem:[#allocation11_spill] sm:$0xff] %v6098_v44  ;;  %v6105_v61 = vpack.c.bf16 %v3075_v58, %v3071_v54  ;;  %v6107_v4 = vpack.c.bf16 %v3065_v20, %v3061_v14  ;;  %v1859_v7 = vsel %vm229_vm3, %v1846_v36, %v5714_v34  ;;  %v7522_v50 = vand.u32 4294901760, %v6072_v53  ;;  %v7525_v14 = vld [vmem:[#allocation17_spill] sm:$0xff] }
 0x2b1   :  { %7519 = vst [vmem:[#allocation13_spill] sm:$0xff] %v6103_v35  ;;  %v6118_v29 = vsub.f32 %v1833_v37, %v2151_v31  ;;  %v2155_v19 = vand.u32 4294901760, %v1837_v9  ;;  %v3073_v39 = vand.u32 4294901760, %v1840_v2  ;;  %v1861_v20 = vsel %vm229_vm3, %v5707_v17, %v1846_v36  ;;  %v7528_v36 = vld [vmem:[#allocation15_spill] sm:$0xff] }
 0x2b2   :  { %7520 = vst [vmem:[#allocation86_spill] sm:$0xff] %v6105_v61  ;;  %7521 = vst [vmem:[#allocation87_spill] sm:$0xff] %v6107_v4  ;;  %v6115_v63 = vsub.f32 %v6072_v53, %v7522_v50  ;;  %4378 = vmatprep.subr.bf16.mxu1 %v6107_v4  ;;  %v6125_v54 = vmul.f32 %v1859_v7, %v7525_v14  ;;  %v1860_v58 = vsel %vm229_vm3, %v1848_v1, %v5718_v55 }
 0x2b3   :  { %7524 = vst [vmem:[#allocation89_spill] sm:$0xff] %v6118_v29  ;;  %v6132_v37 = vsub.f32 %v6081_v30, %v3069_v26  ;;  %v6134_v33 = vpack.c.bf16 %v2155_v19, %v2151_v31  ;;  %v6136_v4 = vsub.f32 %v1837_v9, %v2155_v19  ;;  %4380 = vmatpush1.bf16.msra.mxu1 %v6001_v60  ;;  %v7529_v30 = vand.u32 4294901760, %v6098_v44 }
 0x2b4   :  { %7523 = vst [vmem:[#allocation88_spill] sm:$0xff] %v6115_v63  ;;  %v1865_v53 = vmul.f32 %v1861_v20, %v7528_v36  ;;  %v1862_v63 = vsel %vm229_vm3, %v5712_v28, %v1848_v1  ;;  %v6145_v35 = vmul.f32 %v1860_v58, %v7525_v14  ;;  %v6154_v50 = vpack.c.bf16 %v2153_v24, %v2149_v43 }
 0x2b5   :  { %7526 = vst [vmem:[#allocation17_spill] sm:$0xff] %v6134_v33  ;;  %7527 = vst [vmem:[#allocation90_spill] sm:$0xff] %v6136_v4  ;;  %v6150_v31 = vsub.f32 %v6098_v44, %v7529_v30  ;;  %v1869_v19 = vmul.f32 %v1862_v63, %v7528_v36  ;;  %v7531_v20 = vand.u32 4294901760, %v6118_v29  ;;  %v6161_v1 = vsub.f32 %v1840_v2, %v3073_v39  ;;  %v1878_v30 = vpop.permute.xlu1 %1877  ;;  %v7534_v2 = vld [vmem:[#allocation18_spill] sm:$0xff] }
 0x2b6   :  { %7530 = vst [vmem:[#allocation15_spill] sm:$0xff] %v6154_v50  ;;  %v2167_v14 = vand.u32 4294901760, %v1865_v53  ;;  %v1857_v58 = vsel %vm229_vm3, %v5714_v34, %v1854_v41  ;;  %v7532_v60 = vand.u32 4294901760, %v6125_v54  ;;  %4166 = vmatprep.subr.bf16.mxu0 %v6154_v50  ;;  %v1863_v43 = vsel %vm229_vm3, %v1854_v41, %v5707_v17  ;;  %v7536_v34 = vld [vmem:[#allocation16_spill] sm:$0xff]  ;;  %v1880_v50 = vpop.permute.xlu0 %1879 }
 0x2b7   :  { %v6159_v7 = vsub.f32 %v6118_v29, %v7531_v20  ;;  %v2171_v63 = vand.u32 4294901760, %v1869_v19  ;;  %v1867_v24 = vmul.f32 %v1857_v58, %v7534_v2  ;;  %v2169_v20 = vand.u32 4294901760, %v6145_v35  ;;  %4168 = vmatpush1.bf16.msra.mxu0 %v6134_v33 }
 0x2b8   :  { %v6169_v9 = vsub.f32 %v6125_v54, %v7532_v60  ;;  %v6176_v36 = vsub.f32 %v1865_v53, %v2167_v14  ;;  %v6180_v44 = vmul.f32 %v1863_v43, %v7536_v34  ;;  %v1858_v60 = vsel %vm229_vm3, %v5718_v55, %v1856_v46  ;;  %4170 = vmatprep.subr.bf16.mxu0 %v5784_v56 }
 0x2b9   :  { %v7537_v29 = vand.u32 4294901760, %v6136_v4  ;;  %v6191_v41 = vsub.f32 %v1869_v19, %v2171_v63  ;;  %v3087_v53 = vand.u32 4294901760, %v1867_v24  ;;  %v1864_v58 = vsel %vm229_vm3, %v1856_v46, %v5712_v28 }
 0x2ba   :  { %7533 = vst [vmem:[#allocation91_spill] sm:$0xff] %v6169_v9  ;;  %7535 = vst [vmem:[#allocation18_spill] sm:$0xff] %v6176_v36  ;;  %v7255_v43 = vand.u32 4294901760, %v6176_v36  ;;  %v3085_v55 = vand.u32 4294901760, %v6180_v44  ;;  %v1871_v33 = vmul.f32 %v1858_v60, %v7534_v2  ;;  %v1872_v9 = vmul.f32 %v1864_v58, %v7536_v34  ;;  %v1886_v60 = vpop.permute.xlu1 %1885  ;;  %v7542_v58 = vld [vmem:[#allocation21_spill] sm:$0xff] }
 0x2bb   :  { %v6189_v17 = vsub.f32 %v6136_v4, %v7537_v29  ;;  %7538 = vst [vmem:[#allocation16_spill] sm:$0xff] %v6191_v41  ;;  %v7262_v29 = vand.u32 4294901760, %v6191_v41  ;;  %v6202_v4 = vsub.f32 %v1867_v24, %v3087_v53  ;;  %v6204_v19 = vpack.c.bf16 %v3073_v39, %v3069_v26  ;;  %4172 = vmatpush1.bf16.msra.mxu0 %v5486_v62 }
 0x2bc   :  { %v1891_v28 = vsel %vm267_vm11, %v1878_v30, %v5730_v13  ;;  %v6212_v46 = vsub.f32 %v6176_v36, %v7255_v43  ;;  %v6214_v56 = vpack.c.bf16 %v2171_v63, %v2167_v14  ;;  %v6217_v2 = vsub.f32 %v6145_v35, %v2169_v20 }
 0x2bd   :  { %7539 = vst [vmem:[#allocation92_spill] sm:$0xff] %v6202_v4  ;;  %7540 = vst [vmem:[#allocation93_spill] sm:$0xff] %v6204_v19  ;;  %v3091_v34 = vand.u32 4294901760, %v1871_v33  ;;  %v6221_v26 = vsub.f32 %v6180_v44, %v3085_v55  ;;  %v3089_v39 = vand.u32 4294901760, %v1872_v9  ;;  %4382 = vmatprep.subr.bf16.mxu1 %v6204_v19  ;;  %v1893_v24 = vsel %vm267_vm11, %v5720_v27, %v1878_v30  ;;  %v7544_v44 = vld [vmem:[#allocation19_spill] sm:$0xff]  ;;  %v1888_v19 = vpop.permute.xlu0 %1887 }
 0x2be   :  { %7541 = vst [vmem:[#allocation94_spill] sm:$0xff] %v6214_v56  ;;  %v6228_v14 = vmul.f32 %v1891_v28, %v7542_v58  ;;  %v6233_v35 = vsub.f32 %v6191_v41, %v7262_v29  ;;  %v1897_v62 = vmul.f32 %v1893_v24, %v7544_v44  ;;  %4384 = vmatpush1.bf16.msra.mxu1 %v6105_v61  ;;  %v7548_v29 = vand.u32 4294901760, %v6202_v4 }
 0x2bf   :  { %v6236_v43 = vsub.f32 %v1871_v33, %v3091_v34  ;;  %v6240_v36 = vpack.c.bf16 %v3091_v34, %v3087_v53  ;;  %4386 = vmatprep.subr.bf16.mxu1 %v5814_v40  ;;  %v1892_v28 = vsel %vm267_vm11, %v1880_v50, %v5734_v0  ;;  %v1894_v33 = vsel %vm267_vm11, %v5728_v18, %v1880_v50 }
 0x2c0   :  { %v2175_v24 = vand.u32 4294901760, %v1897_v62  ;;  %v1901_v63 = vmul.f32 %v1894_v33, %v7544_v44  ;;  %v6253_v53 = vmul.f32 %v1892_v28, %v7542_v58  ;;  %v6255_v34 = vsub.f32 %v1872_v9, %v3089_v39  ;;  %v7551_v33 = vld [vmem:[#allocation22_spill] sm:$0xff] }
 0x2c1   :  { %7543 = vst [vmem:[#allocation21_spill] sm:$0xff] %v6236_v43  ;;  %7545 = vst [vmem:[#allocation19_spill] sm:$0xff] %v6240_v36  ;;  %v1889_v30 = vsel %vm267_vm11, %v5730_v13, %v1886_v60  ;;  %v1895_v40 = vsel %vm267_vm11, %v1886_v60, %v5720_v27  ;;  %v7546_v50 = vand.u32 4294901760, %v6125_v54  ;;  %v6270_v44 = vsub.f32 %v6202_v4, %v7548_v29  ;;  %v1910_v13 = vpop.permute.xlu1 %1909  ;;  %v7552_v27 = vld [vmem:[#allocation20_spill] sm:$0xff] }
 0x2c2   :  { %v6272_v58 = vsub.f32 %v1897_v62, %v2175_v24  ;;  %v2177_v9 = vand.u32 4294901760, %v6253_v53  ;;  %v2179_v28 = vand.u32 4294901760, %v1901_v63  ;;  %4388 = vmatpush1.bf16.msra.mxu1 %v5491_v48  ;;  %v1899_v41 = vmul.f32 %v1889_v30, %v7551_v33 }
 0x2c3   :  { %v6265_v61 = vpack.c.bf16 %v2169_v20, %v7546_v50  ;;  %7549 = vst [vmem:[#allocation96_spill] sm:$0xff] %v6270_v44  ;;  %v6278_v60 = vmul.f32 %v1895_v40, %v7552_v27  ;;  %v1890_v54 = vsel %vm267_vm11, %v5734_v0, %v1888_v19  ;;  %v1896_v62 = vsel %vm267_vm11, %v1888_v19, %v5728_v18  ;;  %v1912_v0 = vpop.permute.xlu0 %1911 }
 0x2c4   :  { %7550 = vst [vmem:[#allocation97_spill] sm:$0xff] %v6272_v58  ;;  %v7553_v20 = vand.u32 4294901760, %v6236_v43  ;;  %v7555_v30 = vand.u32 4294901760, %v6228_v14  ;;  %v7279_v50 = vand.u32 4294901760, %v6272_v58  ;;  %v6298_v48 = vsub.f32 %v1901_v63, %v2179_v28 }
 0x2c5   :  { %7547 = vst [vmem:[#allocation95_spill] sm:$0xff] %v6265_v61  ;;  %4174 = vmatprep.subr.bf16.mxu0 %v6265_v61  ;;  %v3093_v61 = vand.u32 4294901760, %v6278_v60  ;;  %v3095_v18 = vand.u32 4294901760, %v1899_v41  ;;  %v1903_v19 = vmul.f32 %v1890_v54, %v7551_v33  ;;  %v1923_v63 = vsel %vm305_vm12, %v1910_v13, %v5740_v21 }
 0x2c6   :  { %v6290_v29 = vsub.f32 %v6236_v43, %v7553_v20  ;;  %v6295_v40 = vsub.f32 %v6228_v14, %v7555_v30  ;;  %7556 = vst [vmem:[#allocation20_spill] sm:$0xff] %v6298_v48  ;;  %4176 = vmatpush1.bf16.msra.mxu0 %v6214_v56  ;;  %v1904_v20 = vmul.f32 %v1896_v62, %v7552_v27  ;;  %v7284_v4 = vand.u32 4294901760, %v6298_v48  ;;  %v1918_v62 = vpop.permute.xlu1 %1917 }
 0x2c7   :  { %v6304_v43 = vpack.c.bf16 %v2179_v28, %v2175_v24  ;;  %v6307_v30 = vpack.c.bf16 %v3089_v39, %v3085_v55  ;;  %v6315_v56 = vsub.f32 %v6272_v58, %v7279_v50  ;;  %v6318_v44 = vsub.f32 %v6253_v53, %v2177_v9  ;;  %v7561_v39 = vld [vmem:[#allocation25_spill] sm:$0xff] }
 0x2c8   :  { %7554 = vst [vmem:[#allocation22_spill] sm:$0xff] %v6290_v29  ;;  %v6320_v33 = vsub.f32 %v1899_v41, %v3095_v18  ;;  %v3099_v24 = vand.u32 4294901760, %v1903_v19  ;;  %v3097_v28 = vand.u32 4294901760, %v1904_v20  ;;  %v1925_v55 = vsel %vm305_vm12, %v5736_v22, %v1910_v13  ;;  %v7565_v13 = vld [vmem:[#allocation23_spill] sm:$0xff] }
 0x2c9   :  { %7557 = vst [vmem:[#allocation98_spill] sm:$0xff] %v6304_v43  ;;  %7558 = vst [vmem:[#allocation99_spill] sm:$0xff] %v6307_v30  ;;  %4390 = vmatprep.subr.bf16.mxu1 %v6307_v30  ;;  %v6327_v27 = vmul.f32 %v1923_v63, %v7561_v39  ;;  %v1924_v54 = vsel %vm305_vm12, %v1912_v0, %v5742_v23  ;;  %v6335_v41 = vsub.f32 %v6298_v48, %v7284_v4  ;;  %v1920_v48 = vpop.permute.xlu0 %1919 }
 0x2ca   :  { %7559 = vst [vmem:[#allocation100_spill] sm:$0xff] %v6315_v56  ;;  %7560 = vst [vmem:[#allocation101_spill] sm:$0xff] %v6320_v33  ;;  %v6338_v53 = vsub.f32 %v6278_v60, %v3093_v61  ;;  %v6341_v30 = vsub.f32 %v1903_v19, %v3099_v24  ;;  %4392 = vmatpush1.bf16.msra.mxu1 %v6240_v36  ;;  %v1929_v63 = vmul.f32 %v1925_v55, %v7565_v13 }
 0x2cb   :  { %7562 = vst [vmem:[#allocation25_spill] sm:$0xff] %v6335_v41  ;;  %v1926_v56 = vsel %vm305_vm12, %v5738_v59, %v1912_v0  ;;  %v1934_v4 = vmul.f32 %v1924_v54, %v7561_v39  ;;  %v6350_v29 = vpack.c.bf16 %v3099_v24, %v3095_v18  ;;  %v1921_v50 = vsel %vm305_vm12, %v5740_v21, %v1918_v62  ;;  %v7570_v54 = vld [vmem:[#allocation26_spill] sm:$0xff] }
 0x2cc   :  { %7563 = vst [vmem:[#allocation102_spill] sm:$0xff] %v6338_v53  ;;  %7564 = vst [vmem:[#allocation103_spill] sm:$0xff] %v6341_v30  ;;  %v1933_v19 = vmul.f32 %v1926_v56, %v7565_v13  ;;  %v7567_v55 = vand.u32 4294901760, %v6320_v33  ;;  %v6362_v36 = vsub.f32 %v1904_v20, %v3097_v28  ;;  %v2183_v0 = vand.u32 4294901760, %v1929_v63  ;;  %v7571_v13 = vld [vmem:[#allocation24_spill] sm:$0xff] }
 0x2cd   :  { %7566 = vst [vmem:[#allocation23_spill] sm:$0xff] %v6350_v29  ;;  %v1927_v18 = vsel %vm305_vm12, %v1918_v62, %v5736_v22  ;;  %v2185_v24 = vand.u32 4294901760, %v1934_v4  ;;  %v1931_v56 = vmul.f32 %v1921_v50, %v7570_v54  ;;  %v7572_v21 = vand.u32 4294901760, %v6327_v27  ;;  %v1942_v62 = vpop.permute.xlu1 %1941 }
 0x2ce   :  { %v6360_v58 = vsub.f32 %v6320_v33, %v7567_v55  ;;  %7569 = vst [vmem:[#allocation105_spill] sm:$0xff] %v6362_v36  ;;  %v2187_v39 = vand.u32 4294901760, %v1933_v19  ;;  %v6369_v60 = vmul.f32 %v1927_v18, %v7571_v13  ;;  %v6376_v55 = vsub.f32 %v1929_v63, %v2183_v0 }
 0x2cf   :  { %v6374_v53 = vsub.f32 %v6327_v27, %v7572_v21  ;;  %v7575_v20 = vand.u32 4294901760, %v6228_v14  ;;  %v1922_v22 = vsel %vm305_vm12, %v5742_v23, %v1920_v48  ;;  %v7577_v50 = vand.u32 4294901760, %v6341_v30 }
 0x2d0   :  { %7568 = vst [vmem:[#allocation104_spill] sm:$0xff] %v6360_v58  ;;  %7574 = vst [vmem:[#allocation24_spill] sm:$0xff] %v6376_v55  ;;  %v6390_v58 = vsub.f32 %v1933_v19, %v2187_v39  ;;  %v3101_v21 = vand.u32 4294901760, %v6369_v60  ;;  %v3103_v63 = vand.u32 4294901760, %v1931_v56  ;;  %v1928_v14 = vsel %vm305_vm12, %v1920_v48, %v5738_v59  ;;  %v7584_v48 = vld [vmem:[#allocation53_spill] sm:$0xff] }
 0x2d1   :  { %7573 = vst [vmem:[#allocation26_spill] sm:$0xff] %v6374_v53  ;;  %v6380_v33 = vpack.c.bf16 %v2177_v9, %v7575_v20  ;;  %v6388_v18 = vsub.f32 %v6341_v30, %v7577_v50  ;;  %v1935_v23 = vmul.f32 %v1922_v22, %v7570_v54  ;;  %v6399_v9 = vpack.c.bf16 %v3097_v28, %v3093_v61  ;;  %v1944_v20 = vpop.permute.xlu0 %1943  ;;  %v7585_v61 = vld [vmem:[#allocation50_spill] sm:$0xff]  ;;  %v7591_v19 = vld [vmem:[#allocation29_spill] sm:$0xff] }
 0x2d2   :  { %7579 = vst [vmem:[#allocation108_spill] sm:$0xff] %v6390_v58  ;;  %v6401_v50 = vsub.f32 %v1934_v4, %v2185_v24  ;;  %v6404_v30 = vsub.f32 %v1931_v56, %v3103_v63  ;;  %v1936_v36 = vmul.f32 %v1928_v14, %v7571_v13  ;;  %v1955_v59 = vsel %vm343_vm15, %v1942_v62, %v7584_v48 }
 0x2d3   :  { %7576 = vst [vmem:[#allocation106_spill] sm:$0xff] %v6380_v33  ;;  %7578 = vst [vmem:[#allocation107_spill] sm:$0xff] %v6388_v18  ;;  %4178 = vmatprep.subr.bf16.mxu0 %v6380_v33  ;;  %v6408_v33 = vpack.c.bf16 %v2187_v39, %v2183_v0  ;;  %v3107_v18 = vand.u32 4294901760, %v1935_v23  ;;  %4394 = vmatprep.subr.bf16.mxu1 %v6399_v9  ;;  %v1957_v4 = vsel %vm343_vm15, %v7585_v61, %v1942_v62  ;;  %v7589_v39 = vld [vmem:[#allocation27_spill] sm:$0xff] }
 0x2d4   :  { %7580 = vst [vmem:[#allocation109_spill] sm:$0xff] %v6399_v9  ;;  %7581 = vst [vmem:[#allocation110_spill] sm:$0xff] %v6401_v50  ;;  %4180 = vmatpush1.bf16.msra.mxu0 %v6304_v43  ;;  %v7586_v28 = vand.u32 4294901760, %v6376_v55  ;;  %v6423_v56 = vsub.f32 %v6369_v60, %v3101_v21  ;;  %v1961_v13 = vmul.f32 %v1957_v4, %v7589_v39  ;;  %4396 = vmatpush1.bf16.msra.mxu1 %v6350_v29  ;;  %v7592_v62 = vld [vmem:[#allocation55_spill] sm:$0xff] }
 0x2d5   :  { %7582 = vst [vmem:[#allocation111_spill] sm:$0xff] %v6404_v30  ;;  %7583 = vst [vmem:[#allocation112_spill] sm:$0xff] %v6408_v33  ;;  %v3105_v22 = vand.u32 4294901760, %v1936_v36  ;;  %v6428_v14 = vsub.f32 %v1935_v23, %v3107_v18  ;;  %v1962_v9 = vmul.f32 %v1955_v59, %v7591_v19  ;;  %v1956_v43 = vsel %vm343_vm15, %v1944_v20, %v7592_v62  ;;  %v1952_v53 = vpop.permute.xlu0 %1951 }
 0x2d6   :  { %v6420_v54 = vsub.f32 %v6376_v55, %v7586_v28  ;;  %7588 = vst [vmem:[#allocation50_spill] sm:$0xff] %v6423_v56  ;;  %v1950_v28 = vpop.permute.xlu1 %1949  ;;  %v7593_v55 = vand.u32 4294901760, %v6390_v58  ;;  %v6439_v0 = vpack.c.bf16 %v3107_v18, %v3103_v63  ;;  %v2191_v4 = vand.u32 4294901760, %v1961_v13  ;;  %v7595_v56 = vld [vmem:[#allocation52_spill] sm:$0xff] }
 0x2d7   :  { %7590 = vst [vmem:[#allocation27_spill] sm:$0xff] %v6428_v14  ;;  %v1958_v23 = vsel %vm343_vm15, %v7595_v56, %v1944_v20  ;;  %v2189_v59 = vand.u32 4294901760, %v1962_v9  ;;  %v1966_v50 = vmul.f32 %v1956_v43, %v7591_v19  ;;  %v1959_v18 = vsel %vm343_vm15, %v1950_v28, %v7585_v61 }
 0x2d8   :  { %7587 = vst [vmem:[#allocation53_spill] sm:$0xff] %v6420_v54  ;;  %v6437_v60 = vsub.f32 %v6390_v58, %v7593_v55  ;;  %7594 = vst [vmem:[#allocation29_spill] sm:$0xff] %v6439_v0  ;;  %v1965_v54 = vmul.f32 %v1958_v23, %v7589_v39  ;;  %v6447_v41 = vsub.f32 %v1961_v13, %v2191_v4  ;;  %v7596_v63 = vand.u32 4294901760, %v6327_v27  ;;  %v7600_v58 = vld [vmem:[#allocation30_spill] sm:$0xff] }
 0x2d9   :  { %v1953_v55 = vsel %vm343_vm15, %v7584_v48, %v1950_v28  ;;  %v7598_v29 = vand.u32 4294901760, %v6404_v30  ;;  %v6464_v43 = vsub.f32 %v1936_v36, %v3105_v22  ;;  %v2193_v19 = vand.u32 4294901760, %v1966_v50  ;;  %v7601_v28 = vld [vmem:[#allocation28_spill] sm:$0xff] }
 0x2da   :  { %v6457_v20 = vpack.c.bf16 %v2185_v24, %v7596_v63  ;;  %v2195_v13 = vand.u32 4294901760, %v1965_v54  ;;  %v7599_v23 = vand.u32 4294901760, %v6428_v14  ;;  %v1963_v61 = vmul.f32 %v1953_v55, %v7600_v58 }
 0x2db   :  { %v6462_v39 = vsub.f32 %v6404_v30, %v7598_v29  ;;  %v1964_v27 = vmul.f32 %v1959_v18, %v7601_v28  ;;  %v1954_v29 = vsel %vm343_vm15, %v7592_v62, %v1952_v53  ;;  %v6477_v24 = vsub.f32 %v1962_v9, %v2189_v59 }
 0x2dc   :  { %7597 = vst [vmem:[#allocation55_spill] sm:$0xff] %v6457_v20  ;;  %v6469_v48 = vsub.f32 %v6428_v14, %v7599_v23  ;;  %4182 = vmatprep.subr.bf16.mxu0 %v6457_v20  ;;  %v6480_v63 = vsub.f32 %v1965_v54, %v2195_v13  ;;  %v1960_v55 = vsel %vm343_vm15, %v1952_v53, %v7595_v56  ;;  %v3111_v20 = vand.u32 4294901760, %v1963_v61 }
 0x2dd   :  { %4184 = vmatpush1.bf16.msra.mxu0 %v6408_v33  ;;  %v6486_v23 = vpack.c.bf16 %v2195_v13, %v2191_v4  ;;  %v3109_v18 = vand.u32 4294901760, %v1964_v27  ;;  %v1967_v14 = vmul.f32 %v1954_v29, %v7600_v58  ;;  %v1968_v9 = vmul.f32 %v1960_v55, %v7601_v28  ;;  %v7611_v28 = vld [vmem:[#allocation70_spill] sm:$0xff] }
 0x2de   :  { %v7318_v62 = vand.u32 4294901760, %v6480_v63  ;;  %v6491_v30 = vpack.c.bf16 %v3105_v22, %v3101_v21  ;;  %v6493_v54 = vpack.c.bf16 %v2193_v19, %v2189_v59  ;;  %v6495_v36 = vsub.f32 %v1966_v50, %v2193_v19 }
 0x2df   :  { %7602 = vst [vmem:[#allocation52_spill] sm:$0xff] %v6486_v23  ;;  %v6497_v33 = vsub.f32 %v1963_v61, %v3111_v20  ;;  %v3115_v15 = vand.u32 4294901760, %v1967_v14  ;;  %v7605_v53 = vand.u32 4294901760, %v5800_v57  ;;  %v7606_v4 = vand.u32 4294901760, %v6447_v41 }
 0x2e0   :  { %7603 = vst [vmem:[#allocation30_spill] sm:$0xff] %v6491_v30  ;;  %7604 = vst [vmem:[#allocation28_spill] sm:$0xff] %v6493_v54  ;;  %v6507_v13 = vsub.f32 %v1964_v27, %v3109_v18  ;;  %v3113_v21 = vand.u32 4294901760, %v1968_v9  ;;  %4398 = vmatprep.subr.bf16.mxu1 %v6491_v30  ;;  %4186 = vmatprep.subr.bf16.mxu0 %v6493_v54  ;;  %v7319_v50 = vand.u32 4294901760, %v5828_v8  ;;  %v2252_v61 = vand.u32 4294901760, %v5910_v45  ;;  %v7631_v54 = vld [vmem:[#allocation110_spill] sm:$0xff] }
 0x2e1   :  { %v2245_v56 = vsub.f32 %v5800_v57, %v7605_v53  ;;  %v6505_v58 = vsub.f32 %v6447_v41, %v7606_v4  ;;  %v6515_v22 = vsub.f32 %v6480_v63, %v7318_v62  ;;  %v6517_v59 = vpack.c.bf16 %v3115_v15, %v3111_v20  ;;  %4400 = vmatpush1.bf16.msra.mxu1 %v6439_v0 }
 0x2e2   :  { %v6519_v19 = vsub.f32 %v1967_v14, %v3115_v15  ;;  %4188 = vmatpush1.bf16.msra.mxu0 %v6486_v23  ;;  %v2257_v27 = vsub.f32 %v5828_v8, %v7319_v50  ;;  %v6528_v29 = vpack.c.bf16 %v3113_v21, %v3109_v18  ;;  %v2264_v55 = vand.u32 4294901760, %v5915_v6 }
 0x2e3   :  { %7607 = vst [vmem:[#allocation113_spill] sm:$0xff] %v6517_v59  ;;  %v6531_v20 = vsub.f32 %v1968_v9, %v3113_v21  ;;  %v2246_v14 = vand.u32 4294901760, %v2245_v56  ;;  %v7322_v15 = vand.u32 4294901760, %v5891_v38  ;;  %v7327_v53 = vand.u32 4294901760, %v5917_v25  ;;  %v7609_v56 = vld [vmem:[#allocation66_spill] sm:$0xff] }
 0x2e4   :  { %7608 = vst [vmem:[#allocation114_spill] sm:$0xff] %v6528_v29  ;;  %v2258_v4 = vand.u32 4294901760, %v2257_v27  ;;  %4402 = vmatprep.subr.bf16.mxu1 %v6528_v29  ;;  %v4191_v45 = vpack.c.bf16 %v2264_v55, %v2252_v61  ;;  %v7330_v62 = vand.u32 4294901760, %v5839_v49  ;;  %v7333_v18 = vand.u32 4294901760, %v5874_v42  ;;  %v7610_v27 = vld [vmem:[#allocation47_spill] sm:$0xff] }
 0x2e5   :  { %2236 = vmatmul.mubr.f32.vlgmr.msra.gmra.mrb[4].mxu0 %v5834_v5  ;;  %4404 = vmatpush1.bf16.msra.mxu1 %v6517_v59  ;;  %v2269_v6 = vsub.f32 %v5891_v38, %v7322_v15  ;;  %v2281_v9 = vsub.f32 %v5917_v25, %v7327_v53  ;;  %v3172_v21 = vand.u32 4294901760, %v7609_v56  ;;  %v3184_v59 = vand.u32 4294901760, %v7611_v28  ;;  %v7612_v28 = vld [vmem:[#allocation74_spill] sm:$0xff] }
 0x2e6   :  { %2487 = vmatprep.mubr.f32.mxu0 %v7610_v27  ;;  %v4189_v61 = vpack.c.bf16 %v2258_v4, %v2246_v14  ;;  %v3165_v55 = vsub.f32 %v5839_v49, %v7330_v62  ;;  %v3177_v50 = vsub.f32 %v5874_v42, %v7333_v18  ;;  %v2276_v0 = vand.u32 4294901760, %v5988_v10 }
 0x2e7   :  { %v2270_v15 = vand.u32 4294901760, %v2269_v6  ;;  %v2282_v29 = vand.u32 4294901760, %v2281_v9  ;;  %v2288_v53 = vand.u32 4294901760, %v5993_v11  ;;  %v4407_v14 = vpack.c.bf16 %v3184_v59, %v3172_v21 }
 0x2e8   :  { %4190 = vmatprep.subr.bf16.mxu0 %v4189_v61  ;;  %v3166_v56 = vand.u32 4294901760, %v3165_v55  ;;  %v3178_v23 = vand.u32 4294901760, %v3177_v50  ;;  %3156 = vmatmul.mubr.f32.vlgmr.msra.gmra.mrb[4].mxu1 %v5834_v5  ;;  %v7341_v4 = vand.u32 4294901760, %v5999_v16  ;;  %v7340_v18 = vand.u32 4294901760, %v6007_v52  ;;  %v7613_v50 = vld [vmem:[#allocation76_spill] sm:$0xff]  ;;  %v7614_v55 = vld [vmem:[#allocation13_spill] sm:$0xff] }
 0x2e9   :  { %4192 = vmatpush1.bf16.msra.mxu0 %v4191_v45  ;;  %v4193_v62 = vpack.c.bf16 %v2282_v29, %v2270_v15  ;;  %v4195_v30 = vpack.c.bf16 %v2288_v53, %v2276_v0  ;;  %v7334_v6 = vand.u32 4294901760, %v7612_v28  ;;  %3407 = vmatprep.mubr.f32.mxu1 %v7610_v27  ;;  %v7335_v9 = vand.u32 4294901760, %v7613_v50 }
 0x2ea   :  { %v4405_v10 = vpack.c.bf16 %v3178_v23, %v3166_v56  ;;  %v2293_v11 = vsub.f32 %v5999_v16, %v7341_v4  ;;  %v2300_v5 = vand.u32 4294901760, %v6078_v51  ;;  %v2305_v0 = vsub.f32 %v6007_v52, %v7340_v18 }
 0x2eb   :  { %4194 = vmatprep.subr.bf16.mxu0 %v4193_v62  ;;  %v3189_v59 = vsub.f32 %v7612_v28, %v7334_v6  ;;  %v2312_v29 = vand.u32 4294901760, %v6092_v12  ;;  %v3196_v23 = vand.u32 4294901760, %v5962_v3  ;;  %v3201_v53 = vsub.f32 %v7613_v50, %v7335_v9 }
 0x2ec   :  { %4406 = vmatprep.subr.bf16.mxu1 %v4405_v10  ;;  %v2294_v15 = vand.u32 4294901760, %v2293_v11  ;;  %v3208_v51 = vand.u32 4294901760, %v5976_v47  ;;  %v7337_v62 = vand.u32 4294901760, %v6095_v32  ;;  %v2306_v45 = vand.u32 4294901760, %v2305_v0  ;;  %v7615_v10 = vld [vmem:[#allocation8_spill] sm:$0xff] }
 0x2ed   :  { %4408 = vmatpush1.bf16.msra.mxu1 %v4407_v14  ;;  %4196 = vmatpush1.bf16.msra.mxu0 %v4195_v30  ;;  %v3190_v21 = vand.u32 4294901760, %v3189_v59  ;;  %v4199_v61 = vpack.c.bf16 %v2312_v29, %v2300_v5  ;;  %v7336_v56 = vand.u32 4294901760, %v7614_v55  ;;  %v3202_v12 = vand.u32 4294901760, %v3201_v53  ;;  %v7617_v5 = vld [vmem:[#allocation84_spill] sm:$0xff] }
 0x2ee   :  { %v4411_v6 = vpack.c.bf16 %v3208_v51, %v3196_v23  ;;  %v2317_v3 = vsub.f32 %v6095_v32, %v7337_v62  ;;  %v7338_v11 = vand.u32 4294901760, %v7615_v10  ;;  %v7616_v9 = vand.u32 4294901760, %v6497_v33 }
 0x2ef   :  { %v4197_v14 = vpack.c.bf16 %v2306_v45, %v2294_v15  ;;  %v2329_v30 = vsub.f32 %v7614_v55, %v7336_v56  ;;  %v7339_v0 = vand.u32 4294901760, %v7617_v5  ;;  %v4409_v59 = vpack.c.bf16 %v3202_v12, %v3190_v21  ;;  %v7618_v45 = vld [vmem:[#allocation83_spill] sm:$0xff]  ;;  %v7620_v12 = vld [vmem:[#allocation6_spill] sm:$0xff] }
 0x2f0   :  { %v6589_v47 = vsub.f32 %v6497_v33, %v7616_v9  ;;  %v3213_v29 = vsub.f32 %v7615_v10, %v7338_v11  ;;  %v2324_v23 = vand.u32 4294901760, %v6159_v7  ;;  %v2336_v53 = vand.u32 4294901760, %v6189_v17 }
 0x2f1   :  { %4198 = vmatprep.subr.bf16.mxu0 %v4197_v14  ;;  %v2318_v51 = vand.u32 4294901760, %v2317_v3  ;;  %v2330_v9 = vand.u32 4294901760, %v2329_v30  ;;  %v3225_v15 = vsub.f32 %v7617_v5, %v7339_v0  ;;  %v3232_v56 = vand.u32 4294901760, %v7618_v45  ;;  %4410 = vmatprep.subr.bf16.mxu1 %v4409_v59  ;;  %v7621_v59 = vld [vmem:[#allocation91_spill] sm:$0xff] }
 0x2f2   :  { %v7619_v62 = vand.u32 4294901760, %v6519_v19  ;;  %4200 = vmatpush1.bf16.msra.mxu0 %v4199_v61  ;;  %v3220_v7 = vand.u32 4294901760, %v7620_v12  ;;  %v7347_v17 = vand.u32 4294901760, %v6132_v37  ;;  %v7346_v3 = vand.u32 4294901760, %v6161_v1  ;;  %4412 = vmatpush1.bf16.msra.mxu1 %v4411_v6  ;;  %v7622_v6 = vld [vmem:[#allocation88_spill] sm:$0xff] }
 0x2f3   :  { %v4201_v14 = vpack.c.bf16 %v2330_v9, %v2318_v51  ;;  %v3214_v30 = vand.u32 4294901760, %v3213_v29  ;;  %v3226_v11 = vand.u32 4294901760, %v3225_v15  ;;  %v4203_v0 = vpack.c.bf16 %v2336_v53, %v2324_v23 }
 0x2f4   :  { %v6607_v21 = vsub.f32 %v6519_v19, %v7619_v62  ;;  %v3237_v45 = vsub.f32 %v6132_v37, %v7347_v17  ;;  %v3249_v62 = vsub.f32 %v6161_v1, %v7346_v3  ;;  %v3256_v61 = vand.u32 4294901760, %v6150_v31  ;;  %v7623_v31 = vld [vmem:[#allocation60_spill] sm:$0xff]  ;;  %v7629_v3 = vld [vmem:[#allocation26_spill] sm:$0xff] }
 0x2f5   :  { %v7344_v12 = vand.u32 4294901760, %v7621_v59  ;;  %4202 = vmatprep.subr.bf16.mxu0 %v4201_v14  ;;  %v4413_v18 = vpack.c.bf16 %v3226_v11, %v3214_v30  ;;  %v4415_v4 = vpack.c.bf16 %v3232_v56, %v3220_v7  ;;  %v3244_v51 = vand.u32 4294901760, %v7622_v6 }
 0x2f6   :  { %v7343_v29 = vand.u32 4294901760, %v6217_v2  ;;  %4204 = vmatpush1.bf16.msra.mxu0 %v4203_v0  ;;  %v3238_v23 = vand.u32 4294901760, %v3237_v45  ;;  %v3250_v53 = vand.u32 4294901760, %v3249_v62  ;;  %v2384_v15 = vand.u32 4294901760, %v6233_v35 }
 0x2f7   :  { %v2365_v9 = vsub.f32 %v7621_v59, %v7344_v12  ;;  %4414 = vmatprep.subr.bf16.mxu1 %v4413_v18  ;;  %4206 = vmatprep.subr.bf16.mxu0 %v7623_v31  ;;  %v2372_v11 = vand.u32 4294901760, %v6212_v46  ;;  %v7342_v7 = vand.u32 4294901760, %v6295_v40  ;;  %v7345_v0 = vand.u32 4294901760, %v6318_v44  ;;  %v7624_v31 = vld [vmem:[#allocation41_spill] sm:$0xff] }
 0x2f8   :  { %v2377_v56 = vsub.f32 %v6217_v2, %v7343_v29  ;;  %4416 = vmatpush1.bf16.msra.mxu1 %v4415_v4  ;;  %v4417_v14 = vpack.c.bf16 %v3250_v53, %v3238_v23  ;;  %v4419_v30 = vpack.c.bf16 %v3256_v61, %v3244_v51  ;;  %v7348_v45 = vand.u32 4294901760, %v6221_v26  ;;  %v7625_v23 = vld [vmem:[#allocation25_spill] sm:$0xff]  ;;  %v7626_v29 = vld [vmem:[#allocation22_spill] sm:$0xff] }
 0x2f9   :  { %v7350_v35 = vand.u32 4294901760, %v6255_v34  ;;  %v2366_v18 = vand.u32 4294901760, %v2365_v9  ;;  %v2389_v6 = vsub.f32 %v6295_v40, %v7342_v7  ;;  %v2401_v46 = vsub.f32 %v6318_v44, %v7345_v0  ;;  %v7627_v0 = vld [vmem:[#allocation100_spill] sm:$0xff] }
 0x2fa   :  { %v2378_v62 = vand.u32 4294901760, %v2377_v56  ;;  %4418 = vmatprep.subr.bf16.mxu1 %v4417_v14  ;;  %4208 = vmatpush1.bf16.msra.mxu0 %v7624_v31  ;;  %v4211_v4 = vpack.c.bf16 %v2384_v15, %v2372_v11  ;;  %v3285_v61 = vsub.f32 %v6221_v26, %v7348_v45  ;;  %v2408_v53 = vand.u32 4294901760, %v7625_v23  ;;  %v7628_v15 = vld [vmem:[#allocation96_spill] sm:$0xff]  ;;  %v7630_v45 = vld [vmem:[#allocation61_spill] sm:$0xff] }
 0x2fb   :  { %v3297_v51 = vsub.f32 %v6255_v34, %v7350_v35  ;;  %v2390_v56 = vand.u32 4294901760, %v2389_v6  ;;  %v2402_v7 = vand.u32 4294901760, %v2401_v46  ;;  %v3304_v12 = vand.u32 4294901760, %v7626_v29 }
 0x2fc   :  { %v4209_v9 = vpack.c.bf16 %v2378_v62, %v2366_v18  ;;  %4420 = vmatpush1.bf16.msra.mxu1 %v4419_v30  ;;  %v2396_v31 = vand.u32 4294901760, %v7627_v0  ;;  %v3292_v11 = vand.u32 4294901760, %v7628_v15  ;;  %v7356_v17 = vand.u32 4294901760, %v7629_v3  ;;  %v7632_v18 = vld [vmem:[#allocation102_spill] sm:$0xff]  ;;  %v7633_v30 = vld [vmem:[#allocation105_spill] sm:$0xff]  ;;  %v7637_v15 = vld [vmem:[#allocation104_spill] sm:$0xff] }
 0x2fd   :  { %v3298_v14 = vand.u32 4294901760, %v3297_v51  ;;  %4422 = vmatprep.subr.bf16.mxu1 %v7630_v45  ;;  %v4213_v27 = vpack.c.bf16 %v2402_v7, %v2390_v56  ;;  %v3286_v35 = vand.u32 4294901760, %v3285_v61  ;;  %v7355_v23 = vand.u32 4294901760, %v7631_v54  ;;  %v7634_v61 = vld [vmem:[#allocation45_spill] sm:$0xff] }
 0x2fe   :  { %4210 = vmatprep.subr.bf16.mxu0 %v4209_v9  ;;  %v7353_v62 = vand.u32 4294901760, %v7632_v18  ;;  %v4215_v6 = vpack.c.bf16 %v2408_v53, %v2396_v31  ;;  %v4427_v29 = vpack.c.bf16 %v3304_v12, %v3292_v11  ;;  %v2413_v0 = vsub.f32 %v7629_v3, %v7356_v17  ;;  %v7635_v53 = vld [vmem:[#allocation53_spill] sm:$0xff] }
 0x2ff   :  { %4212 = vmatpush1.bf16.msra.mxu0 %v4211_v4  ;;  %v7354_v46 = vand.u32 4294901760, %v7633_v30  ;;  %v4425_v51 = vpack.c.bf16 %v3298_v14, %v3286_v35  ;;  %v2425_v7 = vsub.f32 %v7631_v54, %v7355_v23  ;;  %v2432_v4 = vand.u32 4294901760, %v6437_v60  ;;  %v7638_v23 = vld [vmem:[#allocation50_spill] sm:$0xff] }
 0x300   :  { %4214 = vmatprep.subr.bf16.mxu0 %v4213_v27  ;;  %v3309_v45 = vsub.f32 %v7632_v18, %v7353_v62  ;;  %4424 = vmatpush1.bf16.msra.mxu1 %v7634_v61  ;;  %v2420_v9 = vand.u32 4294901760, %v7635_v53  ;;  %v7636_v27 = vld [vmem:[#allocation107_spill] sm:$0xff]  ;;  %v7357_v56 = vand.u32 4294901760, %v6477_v24  ;;  %v2414_v14 = vand.u32 4294901760, %v2413_v0 }
 0x301   :  { %v3321_v12 = vsub.f32 %v7633_v30, %v7354_v46  ;;  %v3328_v35 = vand.u32 4294901760, %v7636_v27  ;;  %4426 = vmatprep.subr.bf16.mxu1 %v4425_v51  ;;  %v2426_v31 = vand.u32 4294901760, %v2425_v7  ;;  %v3316_v11 = vand.u32 4294901760, %v7637_v15 }
 0x302   :  { %v7362_v62 = vand.u32 4294901760, %v6495_v36  ;;  %v3310_v60 = vand.u32 4294901760, %v3309_v45  ;;  %v2437_v46 = vsub.f32 %v6477_v24, %v7357_v56  ;;  %v7361_v53 = vand.u32 4294901760, %v7638_v23 }
 0x303   :  { %4216 = vmatpush1.bf16.msra.mxu0 %v4215_v6  ;;  %v3322_v61 = vand.u32 4294901760, %v3321_v12  ;;  %v4217_v17 = vpack.c.bf16 %v2426_v31, %v2414_v14  ;;  %v4219_v27 = vpack.c.bf16 %v2432_v4, %v2420_v9  ;;  %v7360_v51 = vand.u32 4294901760, %v6464_v43 }
 0x304   :  { %v2449_v0 = vsub.f32 %v6495_v36, %v7362_v62  ;;  %4428 = vmatpush1.bf16.msra.mxu1 %v4427_v29  ;;  %v4431_v15 = vpack.c.bf16 %v3328_v35, %v3316_v11  ;;  %v3333_v6 = vsub.f32 %v7638_v23, %v7361_v53  ;;  %v2456_v45 = vand.u32 4294901760, %v6515_v22  ;;  %v7648_v53 = vld [vmem:[#allocation14_spill] sm:$0xff] }
 0x305   :  { %v4429_v7 = vpack.c.bf16 %v3322_v61, %v3310_v60  ;;  %4218 = vmatprep.subr.bf16.mxu0 %v4217_v17  ;;  %v2438_v12 = vand.u32 4294901760, %v2437_v46  ;;  %v3345_v4 = vsub.f32 %v6464_v43, %v7360_v51  ;;  %v3352_v9 = vand.u32 4294901760, %v6469_v48  ;;  %v7647_v51 = vld [vmem:[#allocation69_spill] sm:$0xff] }
 0x306   :  { %v2450_v56 = vand.u32 4294901760, %v2449_v0  ;;  %v2444_v29 = vand.u32 4294901760, %v6505_v58  ;;  %v3340_v35 = vand.u32 4294901760, %v6462_v39  ;;  %v4225_v14 = vpack.c.bf16 %v5828_v8, %v5800_v57  ;;  %v7639_v58 = vld [vmem:[#allocation64_spill] sm:$0xff] }
 0x307   :  { %4430 = vmatprep.subr.bf16.mxu1 %v4429_v7  ;;  %4220 = vmatpush1.bf16.msra.mxu0 %v4219_v27  ;;  %v7359_v22 = vand.u32 4294901760, %v6507_v13  ;;  %v3334_v46 = vand.u32 4294901760, %v3333_v6  ;;  %v3346_v31 = vand.u32 4294901760, %v3345_v4  ;;  %v7358_v11 = vand.u32 4294901760, %v6531_v20  ;;  %v7640_v27 = vld [vmem:[#allocation68_spill] sm:$0xff]  ;;  %v7642_v4 = vld [vmem:[#allocation75_spill] sm:$0xff] }
 0x308   :  { %v4221_v17 = vpack.c.bf16 %v2450_v56, %v2438_v12  ;;  %4432 = vmatpush1.bf16.msra.mxu1 %v4431_v15  ;;  %v4223_v60 = vpack.c.bf16 %v2456_v45, %v2444_v29  ;;  %v4435_v61 = vpack.c.bf16 %v3352_v9, %v3340_v35  ;;  %v4227_v39 = vpack.c.bf16 %v7640_v27, %v7639_v58  ;;  %v7641_v12 = vld [vmem:[#allocation73_spill] sm:$0xff]  ;;  %v7643_v29 = vld [vmem:[#allocation58_spill] sm:$0xff]  ;;  %v7644_v35 = vld [vmem:[#allocation63_spill] sm:$0xff] }
 0x309   :  { %v3357_v48 = vsub.f32 %v6507_v13, %v7359_v22  ;;  %v4433_v0 = vpack.c.bf16 %v3346_v31, %v3334_v46  ;;  %v3369_v56 = vsub.f32 %v6531_v20, %v7358_v11  ;;  %v4229_v7 = vpack.c.bf16 %v5917_v25, %v5891_v38  ;;  %v7645_v22 = vld [vmem:[#allocation80_spill] sm:$0xff] }
 0x30a   :  { %4222 = vmatprep.subr.bf16.mxu0 %v4221_v17  ;;  %v4441_v15 = vpack.c.bf16 %v5874_v42, %v5839_v49  ;;  %v3376_v45 = vand.u32 4294901760, %v6607_v21  ;;  %v4231_v9 = vpack.c.bf16 %v7642_v4, %v7641_v12  ;;  %v4443_v17 = vpack.c.bf16 %v7644_v35, %v7643_v29  ;;  %v7649_v35 = vld [vmem:[#allocation51_spill] sm:$0xff] }
 0x30b   :  { %4224 = vmatpush1.bf16.msra.mxu0 %v4223_v60  ;;  %v3358_v6 = vand.u32 4294901760, %v3357_v48  ;;  %4434 = vmatprep.subr.bf16.mxu1 %v4433_v0  ;;  %v3370_v46 = vand.u32 4294901760, %v3369_v56  ;;  %v4233_v31 = vpack.c.bf16 %v6007_v52, %v5999_v16  ;;  %v4445_v11 = vpack.c.bf16 %v7613_v50, %v7612_v28  ;;  %v7646_v60 = vld [vmem:[#allocation82_spill] sm:$0xff]  ;;  %v7650_v0 = vld [vmem:[#allocation48_spill] sm:$0xff] }
 0x30c   :  { %4226 = vmatprep.subr.bf16.mxu0 %v4225_v14  ;;  %v4235_v48 = vpack.c.bf16 %v7646_v60, %v7645_v22  ;;  %4436 = vmatpush1.bf16.msra.mxu1 %v4435_v61  ;;  %v3364_v21 = vand.u32 4294901760, %v6589_v47  ;;  %v4447_v62 = vpack.c.bf16 %v7648_v53, %v7647_v51  ;;  %v7651_v56 = vand.u32 4294901760, %v5800_v57 }
 0x30d   :  { %v4437_v4 = vpack.c.bf16 %v3370_v46, %v3358_v6  ;;  %v7652_v61 = vand.u32 4294901760, %v5828_v8  ;;  %v7653_v6 = vand.u32 4294901760, %v5891_v38  ;;  %v7657_v57 = vand.u32 4294901760, %v5999_v16 }
 0x30e   :  { %2489 = vmatmul.mubr.f32.vlgmr.msra.gmra.mrb[4].mxu0 %v7649_v35  ;;  %v4439_v14 = vpack.c.bf16 %v3376_v45, %v3364_v21  ;;  %v7658_v8 = vand.u32 4294901760, %v6007_v52  ;;  %v7659_v38 = vand.u32 4294901760, %v7612_v28  ;;  %v7663_v52 = vand.u32 4294901760, %v7615_v10 }
 0x30f   :  { %4228 = vmatpush1.bf16.msra.mxu0 %v4227_v39  ;;  %4438 = vmatprep.subr.bf16.mxu1 %v4437_v4  ;;  %v6730_v47 = vpack.c.bf16 %v7652_v61, %v7651_v56  ;;  %v7654_v39 = vand.u32 4294901760, %v5917_v25  ;;  %v7660_v25 = vand.u32 4294901760, %v7613_v50  ;;  %v7664_v16 = vand.u32 4294901760, %v7617_v5 }
 0x310   :  { %4230 = vmatprep.subr.bf16.mxu0 %v4229_v7  ;;  %4440 = vmatpush1.bf16.msra.mxu1 %v4439_v14  ;;  %v7655_v7 = vand.u32 4294901760, %v5839_v49  ;;  %v7661_v49 = vand.u32 4294901760, %v6095_v32  ;;  %v7665_v28 = vand.u32 4294901760, %v6132_v37  ;;  %v7666_v50 = vand.u32 4294901760, %v6161_v1 }
 0x311   :  { %4442 = vmatprep.subr.bf16.mxu1 %v4441_v15  ;;  %2633 = vmatprep.mubr.f32.mxu0 %v7650_v0  ;;  %v6737_v45 = vpack.c.bf16 %v7654_v39, %v7653_v6  ;;  %v7656_v15 = vand.u32 4294901760, %v5874_v42  ;;  %v6756_v46 = vpack.c.bf16 %v7660_v25, %v7659_v38  ;;  %v4237_v42 = vpack.c.bf16 %v7614_v55, %v6095_v32 }
 0x312   :  { %v6770_v21 = vpack.c.bf16 %v7664_v16, %v7663_v52  ;;  %v4449_v32 = vpack.c.bf16 %v7617_v5, %v7615_v10  ;;  %v7668_v14 = vand.u32 4294901760, %v6217_v2  ;;  %v7669_v56 = vand.u32 4294901760, %v6295_v40  ;;  %v7673_v10 = vld [vmem:[#allocation89_spill] sm:$0xff]  ;;  %v7674_v5 = vld [vmem:[#allocation90_spill] sm:$0xff] }
 0x313   :  { %4232 = vmatpush1.bf16.msra.mxu0 %v4231_v9  ;;  %3409 = vmatmul.mubr.f32.vlgmr.msra.gmra.mrb[4].mxu1 %v7649_v35  ;;  %v6743_v4 = vpack.c.bf16 %v7656_v15, %v7655_v7  ;;  %v6750_v9 = vpack.c.bf16 %v7658_v8, %v7657_v57  ;;  %v7671_v6 = vand.u32 4294901760, %v6221_v26  ;;  %v7672_v39 = vand.u32 4294901760, %v6255_v34  ;;  %v7680_v52 = vld [vmem:[#allocation38_spill] sm:$0xff] }
 0x314   :  { %4234 = vmatprep.subr.bf16.mxu0 %v4233_v31  ;;  %4444 = vmatpush1.bf16.msra.mxu1 %v4443_v17  ;;  %v7662_v17 = vand.u32 4294901760, %v7614_v55  ;;  %v7667_v55 = vand.u32 4294901760, %v7621_v59  ;;  %v4239_v15 = vpack.c.bf16 %v7674_v5, %v7673_v10  ;;  %v7675_v57 = vand.u32 4294901760, %v7629_v3 }
 0x315   :  { %3553 = vmatprep.mubr.f32.mxu1 %v7650_v0  ;;  %4446 = vmatprep.subr.bf16.mxu1 %v4445_v11  ;;  %v6776_v11 = vpack.c.bf16 %v7666_v50, %v7665_v28  ;;  %v6796_v7 = vpack.c.bf16 %v7672_v39, %v7671_v6  ;;  %v7676_v8 = vand.u32 4294901760, %v7631_v54  ;;  %v7677_v25 = vand.u32 4294901760, %v7632_v18  ;;  %v7686_v6 = vld [vmem:[#allocation7_spill] sm:$0xff] }
 0x316   :  { %v6764_v31 = vpack.c.bf16 %v7662_v17, %v7661_v49  ;;  %v6784_v0 = vpack.c.bf16 %v7668_v14, %v7667_v55  ;;  %v7679_v17 = vld [vmem:[#allocation37_spill] sm:$0xff]  ;;  %v7682_v28 = vand.u32 4294901760, %v6495_v36  ;;  %v7683_v55 = vand.u32 4294901760, %v7638_v23 }
 0x317   :  { %4236 = vmatpush1.bf16.msra.mxu0 %v4235_v48  ;;  %v7670_v48 = vand.u32 4294901760, %v6318_v44  ;;  %v6804_v38 = vpack.c.bf16 %v7676_v8, %v7675_v57  ;;  %v4241_v16 = vpack.c.bf16 %v7680_v52, %v7679_v17  ;;  %v7684_v14 = vand.u32 4294901760, %v6464_v43 }
 0x318   :  { %4238 = vmatprep.subr.bf16.mxu0 %v4237_v42  ;;  %4448 = vmatpush1.bf16.msra.mxu1 %v4447_v62  ;;  %v7678_v42 = vand.u32 4294901760, %v7633_v30  ;;  %v7681_v62 = vand.u32 4294901760, %v6477_v24  ;;  %v7688_v57 = vand.u32 4294901760, %v6480_v63  ;;  %v7692_v52 = vand.u32 4294901760, %v6497_v33 }
 0x319   :  { %v6790_v61 = vpack.c.bf16 %v7670_v48, %v7669_v56  ;;  %4450 = vmatprep.subr.bf16.mxu1 %v4449_v32  ;;  %v6824_v56 = vpack.c.bf16 %v7684_v14, %v7683_v55  ;;  %v7685_v48 = vld [vmem:[#allocation77_spill] sm:$0xff]  ;;  %v7687_v32 = vand.u32 4294901760, %v6447_v41  ;;  %v4245_v55 = vpack.c.bf16 %v6217_v2, %v7621_v59  ;;  %v7695_v14 = vld [vmem:[#allocation34_spill] sm:$0xff]  ;;  %v7704_v59 = vld [vmem:[#allocation36_spill] sm:$0xff] }
 0x31a   :  { %v6810_v49 = vpack.c.bf16 %v7678_v42, %v7677_v25  ;;  %v6818_v50 = vpack.c.bf16 %v7682_v28, %v7681_v62  ;;  %v4451_v39 = vpack.c.bf16 %v7686_v6, %v7685_v48  ;;  %v7689_v25 = vand.u32 4294901760, %v6507_v13 }
 0x31b   :  { %4240 = vmatpush1.bf16.msra.mxu0 %v4239_v15  ;;  %v6832_v8 = vpack.c.bf16 %v7688_v57, %v7687_v32  ;;  %v7690_v42 = vand.u32 4294901760, %v6531_v20  ;;  %v7693_v62 = vand.u32 4294901760, %v6519_v19  ;;  %v4453_v28 = vpack.c.bf16 %v6161_v1, %v6132_v37  ;;  %v7696_v32 = vld [vmem:[#allocation31_spill] sm:$0xff] }
 0x31c   :  { %4242 = vmatprep.subr.bf16.mxu0 %v4241_v16  ;;  %4452 = vmatpush1.bf16.msra.mxu1 %v4451_v39  ;;  %v7697_v57 = vpack.c.bf16 %v7695_v14, %v7696_v32  ;;  %v7702_v16 = vld [vmem:[#allocation18_spill] sm:$0xff]  ;;  %v4249_v1 = vpack.c.bf16 %v6318_v44, %v6295_v40  ;;  %v4461_v2 = vpack.c.bf16 %v6255_v34, %v6221_v26  ;;  %v7705_v39 = vld [vmem:[#allocation32_spill] sm:$0xff] }
 0x31d   :  { %v6838_v17 = vpack.c.bf16 %v7690_v42, %v7689_v25  ;;  %v6844_v15 = vpack.c.bf16 %v7693_v62, %v7692_v52  ;;  %4454 = vmatprep.subr.bf16.mxu1 %v4453_v28  ;;  %v7698_v25 = vld [vmem:[#allocation85_spill] sm:$0xff]  ;;  %v7699_v42 = vld [vmem:[#allocation11_spill] sm:$0xff]  ;;  %v7706_v28 = vpack.c.bf16 %v7704_v59, %v7705_v39  ;;  %v7708_v14 = vld [vmem:[#allocation20_spill] sm:$0xff]  ;;  %v4465_v40 = vpack.c.bf16 %v7633_v30, %v7632_v18 }
 0x31e   :  { %v4455_v35 = vpack.c.bf16 %v7699_v42, %v7698_v25  ;;  %v7701_v52 = vld [vmem:[#allocation39_spill] sm:$0xff]  ;;  %v7709_v32 = vld [vmem:[#allocation92_spill] sm:$0xff]  ;;  %v4259_v18 = vpack.c.bf16 %v6480_v63, %v6447_v41  ;;  %v7717_v39 = vld [vmem:[#allocation65_spill] sm:$0xff] }
 0x31f   :  { %7691 = vst [vmem:[#allocation66_spill] sm:$0xff] %v6838_v17  ;;  %7694 = vst [vmem:[#allocation70_spill] sm:$0xff] %v6844_v15  ;;  %4244 = vmatpush1.bf16.msra.mxu0 %v7697_v57  ;;  %v7700_v17 = vld [vmem:[#allocation40_spill] sm:$0xff]  ;;  %v7710_v57 = vld [vmem:[#allocation21_spill] sm:$0xff] }
 0x320   :  { %4246 = vmatprep.subr.bf16.mxu0 %v4245_v55  ;;  %v4457_v62 = vpack.c.bf16 %v7701_v52, %v7700_v17  ;;  %4456 = vmatpush1.bf16.msra.mxu1 %v4455_v35  ;;  %v7703_v15 = vld [vmem:[#allocation16_spill] sm:$0xff]  ;;  %v7707_v55 = vld [vmem:[#allocation97_spill] sm:$0xff]  ;;  %v4253_v35 = vpack.c.bf16 %v7631_v54, %v7629_v3  ;;  %v4463_v44 = vpack.c.bf16 %v7710_v57, %v7709_v32  ;;  %v7715_v30 = vld [vmem:[#allocation111_spill] sm:$0xff] }
 0x321   :  { %v4247_v37 = vpack.c.bf16 %v7703_v15, %v7702_v16  ;;  %v4251_v17 = vpack.c.bf16 %v7708_v14, %v7707_v55  ;;  %v7711_v26 = vld [vmem:[#allocation24_spill] sm:$0xff]  ;;  %v4469_v3 = vpack.c.bf16 %v6464_v43, %v7638_v23  ;;  %v4475_v43 = vpack.c.bf16 %v6519_v19, %v6497_v33  ;;  %v7720_v41 = vld [vmem:[#allocation49_spill] sm:$0xff]  ;;  %v7728_v19 = vld [vmem:[#allocation15_spill] sm:$0xff] }
 0x322   :  { %4458 = vmatprep.subr.bf16.mxu1 %v4457_v62  ;;  %v7712_v34 = vld [vmem:[#allocation108_spill] sm:$0xff]  ;;  %v4257_v62 = vpack.c.bf16 %v6495_v36, %v6477_v24  ;;  %v4473_v24 = vpack.c.bf16 %v6531_v20, %v6507_v13  ;;  %v7718_v36 = vld [vmem:[#allocation54_spill] sm:$0xff]  ;;  %v7721_v63 = vld [vmem:[#allocation9_spill] sm:$0xff] }
 0x323   :  { %4248 = vmatpush1.bf16.msra.mxu0 %v4247_v37  ;;  %v4255_v52 = vpack.c.bf16 %v7712_v34, %v7711_v26  ;;  %v7713_v37 = vld [vmem:[#allocation101_spill] sm:$0xff]  ;;  %v7722_v23 = vld [vmem:[#allocation72_spill] sm:$0xff]  ;;  %v7725_v20 = vld [vmem:[#allocation62_spill] sm:$0xff] }
 0x324   :  { %4250 = vmatprep.subr.bf16.mxu0 %v4249_v1  ;;  %4460 = vmatpush1.bf16.msra.mxu1 %v7706_v28  ;;  %v7714_v1 = vld [vmem:[#allocation103_spill] sm:$0xff]  ;;  %v7724_v13 = vld [vmem:[#allocation12_spill] sm:$0xff]  ;;  %v7727_v33 = vld [vmem:[#allocation81_spill] sm:$0xff] }
 0x325   :  { %4462 = vmatprep.subr.bf16.mxu1 %v4461_v2  ;;  %v4467_v54 = vpack.c.bf16 %v7714_v1, %v7713_v37  ;;  %v7716_v2 = vld [vmem:[#allocation27_spill] sm:$0xff] }
 0x326   :  { %v4471_v59 = vpack.c.bf16 %v7716_v2, %v7715_v30  ;;  %v7719_v28 = vld [vmem:[#allocation67_spill] sm:$0xff] }
 0x327   :  { %4252 = vmatpush1.bf16.msra.mxu0 %v4251_v17  ;;  %v7723_v17 = vld [vmem:[#allocation10_spill] sm:$0xff] }
 0x328   :  { %4254 = vmatprep.subr.bf16.mxu0 %v4253_v35  ;;  %4464 = vmatpush1.bf16.msra.mxu1 %v4463_v44  ;;  %v7726_v35 = vld [vmem:[#allocation79_spill] sm:$0xff] }
 0x329   :  { %4466 = vmatprep.subr.bf16.mxu1 %v4465_v40  ;;  %v7729_v44 = vld [vmem:[#allocation71_spill] sm:$0xff] }
 0x32a   :  { %v7730_v40 = vld [vmem:[#allocation87_spill] sm:$0xff] }
 0x32b   :  { %4256 = vmatpush1.bf16.msra.mxu0 %v4255_v52  ;;  %v7731_v52 = vld [vmem:[#allocation17_spill] sm:$0xff] }
 0x32c   :  { %4258 = vmatprep.subr.bf16.mxu0 %v4257_v62  ;;  %4468 = vmatpush1.bf16.msra.mxu1 %v4467_v54  ;;  %v7732_v62 = vld [vmem:[#allocation57_spill] sm:$0xff]  ;;  %v7733_v54 = vld [vmem:[#allocation78_spill] sm:$0xff] }
 0x32d   :  { %4470 = vmatprep.subr.bf16.mxu1 %v4469_v3  ;;  %v7734_v3 = vld [vmem:[#allocation93_spill] sm:$0xff] }
 0x32f   :  { %4260 = vmatpush1.bf16.msra.mxu0 %v4259_v18  ;;  %v7735_v18 = vld [vmem:[#allocation33_spill] sm:$0xff] }
 0x330   :  { %4262 = vmatprep.subr.bf16.mxu0 %v7717_v39  ;;  %4472 = vmatpush1.bf16.msra.mxu1 %v4471_v59  ;;  %v7736_v59 = vld [vmem:[#allocation95_spill] sm:$0xff] }
 0x331   :  { %4474 = vmatprep.subr.bf16.mxu1 %v4473_v24  ;;  %v7737_v24 = vld [vmem:[#allocation86_spill] sm:$0xff] }
 0x332   :  { %2636 = vmatmul.mubr.f32.vlgmr.msra.gmra.mrb[4].mxu0 %v7718_v36 }
 0x333   :  { %4264 = vmatpush1.bf16.msra.mxu0 %v7719_v28  ;;  %2745 = vmatprep.mubr.f32.mxu0 %v7720_v41 }
 0x334   :  { %4266 = vmatprep.subr.bf16.mxu0 %v7721_v63  ;;  %4476 = vmatpush1.bf16.msra.mxu1 %v4475_v43  ;;  %v7739_v43 = vld [vmem:[#allocation94_spill] sm:$0xff] }
 0x335   :  { %4478 = vmatprep.subr.bf16.mxu1 %v7722_v23 }
 0x337   :  { %4268 = vmatpush1.bf16.msra.mxu0 %v7723_v17  ;;  %3556 = vmatmul.mubr.f32.vlgmr.msra.gmra.mrb[4].mxu1 %v7718_v36  ;;  %v7738_v36 = vld [vmem:[#allocation59_spill] sm:$0xff] }
 0x338   :  { %4270 = vmatprep.subr.bf16.mxu0 %v7724_v13  ;;  %4480 = vmatpush1.bf16.msra.mxu1 %v7725_v20 }
 0x339   :  { %3665 = vmatprep.mubr.f32.mxu1 %v7720_v41  ;;  %4482 = vmatprep.subr.bf16.mxu1 %v7726_v35  ;;  %v7740_v41 = vld [vmem:[#allocation106_spill] sm:$0xff] }
 0x33b   :  { %4272 = vmatpush1.bf16.msra.mxu0 %v7727_v33 }
 0x33c   :  { %4274 = vmatprep.subr.bf16.mxu0 %v7728_v19  ;;  %4484 = vmatpush1.bf16.msra.mxu1 %v7729_v44 }
 0x33d   :  { %4486 = vmatprep.subr.bf16.mxu1 %v7730_v40  ;;  %v7741_v40 = vld [vmem:[#allocation35_spill] sm:$0xff] }
 0x33f   :  { %4276 = vmatpush1.bf16.msra.mxu0 %v7731_v52  ;;  %v7742_v52 = vld [vmem:[#allocation99_spill] sm:$0xff] }
 0x340   :  { %4278 = vmatprep.subr.bf16.mxu0 %v7732_v62  ;;  %4488 = vmatpush1.bf16.msra.mxu1 %v7733_v54  ;;  %v7743_v62 = vld [vmem:[#allocation98_spill] sm:$0xff]  ;;  %v7744_v54 = vld [vmem:[#allocation55_spill] sm:$0xff] }
 0x341   :  { %4490 = vmatprep.subr.bf16.mxu1 %v7734_v3  ;;  %v7745_v3 = vld [vmem:[#allocation19_spill] sm:$0xff] }
 0x343   :  { %4280 = vmatpush1.bf16.msra.mxu0 %v7735_v18  ;;  %v7746_v18 = vld [vmem:[#allocation109_spill] sm:$0xff] }
 0x344   :  { %4282 = vmatprep.subr.bf16.mxu0 %v7736_v59  ;;  %4492 = vmatpush1.bf16.msra.mxu1 %v7737_v24  ;;  %v7747_v59 = vld [vmem:[#allocation112_spill] sm:$0xff] }
 0x345   :  { %4494 = vmatprep.subr.bf16.mxu1 %v7738_v36  ;;  %v7748_v24 = vld [vmem:[#allocation28_spill] sm:$0xff]  ;;  %v7749_v36 = vld [vmem:[#allocation23_spill] sm:$0xff] }
 0x347   :  { %4284 = vmatpush1.bf16.msra.mxu0 %v7739_v43  ;;  %v7750_v43 = vld [vmem:[#allocation30_spill] sm:$0xff] }
 0x348   :  { %4286 = vmatprep.subr.bf16.mxu0 %v7740_v41  ;;  %4496 = vmatpush1.bf16.msra.mxu1 %v7741_v40  ;;  %v7751_v41 = vld [vmem:[#allocation52_spill] sm:$0xff] }
 0x349   :  { %4498 = vmatprep.subr.bf16.mxu1 %v7742_v52  ;;  %v7752_v52 = vld [vmem:[#allocation29_spill] sm:$0xff] }
 0x34b   :  { %4288 = vmatpush1.bf16.msra.mxu0 %v7743_v62 }
 0x34c   :  { %4290 = vmatprep.subr.bf16.mxu0 %v7744_v54  ;;  %4500 = vmatpush1.bf16.msra.mxu1 %v7745_v3  ;;  %v7753_v54 = vand.u32 4294901760, %v7639_v58  ;;  %v7754_v3 = vand.u32 4294901760, %v7640_v27  ;;  %v7762_v58 = vand.u32 4294901760, %v7643_v29  ;;  %v7763_v27 = vld [vmem:[#allocation63_spill] sm:$0xff]  ;;  %v7767_v29 = vand.u32 4294901760, %v7647_v51  ;;  %v7773_v51 = vld [vmem:[#allocation42_spill] sm:$0xff] }
 0x34d   :  { %4502 = vmatprep.subr.bf16.mxu1 %v7746_v18  ;;  %v7755_v18 = vld [vmem:[#allocation114_spill] sm:$0xff] }
 0x34e   :  { %v4299_v62 = vpack.c.bf16 %v7754_v3, %v7753_v54  ;;  %v7764_v54 = vand.u32 4294901760, %v7763_v27 }
 0x34f   :  { %4292 = vmatpush1.bf16.msra.mxu0 %v7747_v59  ;;  %v7756_v59 = vld [vmem:[#allocation56_spill] sm:$0xff] }
 0x350   :  { %4294 = vmatprep.subr.bf16.mxu0 %v7748_v24  ;;  %4504 = vmatpush1.bf16.msra.mxu1 %v7749_v36  ;;  %v7757_v24 = vld [vmem:[#allocation47_spill] sm:$0xff]  ;;  %v4515_v3 = vpack.c.bf16 %v7764_v54, %v7762_v58  ;;  %v7786_v58 = vand.u32 4294901760, %v7712_v34  ;;  %v7796_v34 = vld [vmem:[#allocation57_spill] sm:$0xff]  ;;  %v7813_v54 = vld [vmem:[#allocation30_spill] sm:$0xff] }
 0x351   :  { %4506 = vmatprep.subr.bf16.mxu1 %v7750_v43  ;;  %v7758_v43 = vld [vmem:[#allocation113_spill] sm:$0xff] }
 0x353   :  { %4296 = vmatpush1.bf16.msra.mxu0 %v7751_v41  ;;  %v7760_v41 = vld [vmem:[#allocation75_spill] sm:$0xff] }
 0x354   :  { %4298 = vmatprep.subr.bf16.mxu0 %v6730_v47  ;;  %4508 = vmatpush1.bf16.msra.mxu1 %v7752_v52  ;;  %v7759_v47 = vand.u32 4294901760, %v7641_v12  ;;  %v7761_v52 = vand.u32 4294901760, %v7760_v41  ;;  %v7766_v12 = vand.u32 4294901760, %v7646_v60  ;;  %v7771_v60 = vand.u32 4294901760, %v7685_v48  ;;  %v7779_v41 = vld [vmem:[#allocation44_spill] sm:$0xff] }
 0x355   :  { %4510 = vmatprep.subr.bf16.mxu1 %v7755_v18  ;;  %v7778_v48 = vand.u32 4294901760, %v7703_v15  ;;  %v7784_v15 = vand.u32 4294901760, %v7710_v57 }
 0x356   :  { %2749 = vmatmul.mubr.f32.vlgmr.msra.gmra.mrb[4].mxu0 %v7756_v59  ;;  %v4303_v36 = vpack.c.bf16 %v7761_v52, %v7759_v47 }
 0x357   :  { %4300 = vmatpush1.bf16.msra.mxu0 %v4299_v62  ;;  %2928 = vmatprep.mubr.f32.mxu0 %v7757_v24 }
 0x358   :  { %4302 = vmatprep.subr.bf16.mxu0 %v6737_v45  ;;  %4512 = vmatpush1.bf16.msra.mxu1 %v7758_v43  ;;  %v7765_v45 = vand.u32 4294901760, %v7645_v22  ;;  %v7770_v22 = vand.u32 4294901760, %v7674_v5 }
 0x359   :  { %4514 = vmatprep.subr.bf16.mxu1 %v6743_v4  ;;  %v7768_v4 = vand.u32 4294901760, %v7648_v53  ;;  %v7774_v53 = vld [vmem:[#allocation43_spill] sm:$0xff] }
 0x35a   :  { %v4307_v62 = vpack.c.bf16 %v7766_v12, %v7765_v45  ;;  %v2118_v45 = vpop.permute.xlu1 %2117 }
 0x35b   :  { %4304 = vmatpush1.bf16.msra.mxu0 %v4303_v36  ;;  %3669 = vmatmul.mubr.f32.vlgmr.msra.gmra.mrb[4].mxu1 %v7756_v59  ;;  %v4519_v52 = vpack.c.bf16 %v7768_v4, %v7767_v29 }
 0x35c   :  { %4306 = vmatprep.subr.bf16.mxu0 %v6750_v9  ;;  %4516 = vmatpush1.bf16.msra.mxu1 %v4515_v3  ;;  %v7769_v9 = vand.u32 4294901760, %v7673_v10  ;;  %v7776_v10 = vand.u32 4294901760, %v7699_v42  ;;  %v7782_v42 = vand.u32 4294901760, %v7708_v14  ;;  %v7814_v3 = vld [vmem:[#allocation52_spill] sm:$0xff] }
 0x35d   :  { %3848 = vmatprep.mubr.f32.mxu1 %v7757_v24  ;;  %4518 = vmatprep.subr.bf16.mxu1 %v6756_v46  ;;  %v7772_v46 = vand.u32 4294901760, %v7686_v6 }
 0x35e   :  { %v4311_v59 = vpack.c.bf16 %v7770_v22, %v7769_v9 }
 0x35f   :  { %4308 = vmatpush1.bf16.msra.mxu0 %v4307_v62  ;;  %v4523_v36 = vpack.c.bf16 %v7772_v46, %v7771_v60 }
 0x360   :  { %4310 = vmatprep.subr.bf16.mxu0 %v6764_v31  ;;  %4520 = vmatpush1.bf16.msra.mxu1 %v4519_v52  ;;  %v7775_v31 = vand.u32 4294901760, %v7698_v25  ;;  %v7781_v25 = vand.u32 4294901760, %v7707_v55  ;;  %v7787_v55 = vand.u32 4294901760, %v7713_v37  ;;  %v7797_v37 = vld [vmem:[#allocation78_spill] sm:$0xff] }
 0x361   :  { %4522 = vmatprep.subr.bf16.mxu1 %v6770_v21  ;;  %v7777_v21 = vand.u32 4294901760, %v7702_v16 }
 0x362   :  { %v4527_v5 = vpack.c.bf16 %v7776_v10, %v7775_v31  ;;  %v4323_v47 = vpack.c.bf16 %v7782_v42, %v7781_v25 }
 0x363   :  { %4312 = vmatpush1.bf16.msra.mxu0 %v4311_v59  ;;  %v4319_v6 = vpack.c.bf16 %v7778_v48, %v7777_v21 }
 0x364   :  { %4314 = vmatprep.subr.bf16.mxu0 %v7773_v51  ;;  %4524 = vmatpush1.bf16.msra.mxu1 %v4523_v36 }
 0x365   :  { %4526 = vmatprep.subr.bf16.mxu1 %v6776_v11  ;;  %v7780_v11 = vld [vmem:[#allocation46_spill] sm:$0xff] }
 0x367   :  { %4316 = vmatpush1.bf16.msra.mxu0 %v7774_v53 }
 0x368   :  { %4318 = vmatprep.subr.bf16.mxu0 %v6784_v0  ;;  %4528 = vmatpush1.bf16.msra.mxu1 %v4527_v5  ;;  %v7783_v0 = vand.u32 4294901760, %v7709_v32  ;;  %v7790_v32 = vand.u32 4294901760, %v7716_v2  ;;  %v7800_v2 = vld [vmem:[#allocation95_spill] sm:$0xff] }
 0x369   :  { %4530 = vmatprep.subr.bf16.mxu1 %v7779_v41 }
 0x36a   :  { %v4535_v16 = vpack.c.bf16 %v7784_v15, %v7783_v0 }
 0x36b   :  { %4320 = vmatpush1.bf16.msra.mxu0 %v4319_v6 }
 0x36c   :  { %4322 = vmatprep.subr.bf16.mxu0 %v6790_v61  ;;  %4532 = vmatpush1.bf16.msra.mxu1 %v7780_v11  ;;  %v7785_v61 = vand.u32 4294901760, %v7711_v26  ;;  %v7792_v26 = vld [vmem:[#allocation51_spill] sm:$0xff] }
 0x36d   :  { %4534 = vmatprep.subr.bf16.mxu1 %v6796_v7  ;;  %v7788_v7 = vand.u32 4294901760, %v7714_v1  ;;  %v7798_v1 = vld [vmem:[#allocation93_spill] sm:$0xff] }
 0x36e   :  { %v4327_v27 = vpack.c.bf16 %v7786_v58, %v7785_v61 }
 0x36f   :  { %4324 = vmatpush1.bf16.msra.mxu0 %v4323_v47  ;;  %v4539_v14 = vpack.c.bf16 %v7788_v7, %v7787_v55 }
 0x370   :  { %4326 = vmatprep.subr.bf16.mxu0 %v6804_v38  ;;  %4536 = vmatpush1.bf16.msra.mxu1 %v4535_v16  ;;  %v7789_v38 = vand.u32 4294901760, %v7715_v30  ;;  %v7799_v30 = vld [vmem:[#allocation33_spill] sm:$0xff] }
 0x371   :  { %4538 = vmatprep.subr.bf16.mxu1 %v6810_v49  ;;  %v7791_v49 = vld [vmem:[#allocation66_spill] sm:$0xff] }
 0x372   :  { %v4543_v57 = vpack.c.bf16 %v7790_v32, %v7789_v38 }
 0x373   :  { %4328 = vmatpush1.bf16.msra.mxu0 %v4327_v27 }
 0x374   :  { %4330 = vmatprep.subr.bf16.mxu0 %v6818_v50  ;;  %4540 = vmatpush1.bf16.msra.mxu1 %v4539_v14  ;;  %v7793_v50 = vld [vmem:[#allocation70_spill] sm:$0xff] }
 0x375   :  { %4542 = vmatprep.subr.bf16.mxu1 %v6824_v56  ;;  %v7794_v56 = vld [vmem:[#allocation87_spill] sm:$0xff] }
 0x377   :  { %4332 = vmatpush1.bf16.msra.mxu0 %v6832_v8  ;;  %v7795_v8 = vld [vmem:[#allocation17_spill] sm:$0xff] }
 0x378   :  { %4334 = vmatprep.subr.bf16.mxu0 %v7717_v39  ;;  %4544 = vmatpush1.bf16.msra.mxu1 %v4543_v57  ;;  %v7801_v39 = vld [vmem:[#allocation86_spill] sm:$0xff] }
 0x379   :  { %4546 = vmatprep.subr.bf16.mxu1 %v7791_v49  ;;  %v3981_v49 = vld [vmem:[%s7086_s6] sm:$0x7] }
 0x37a   :  { %2930 = vmatmul.mubr.f32.vlgmr.msra.gmra.mrb[4].mxu0 %v7792_v26 }
 0x37b   :  { %4336 = vmatpush1.bf16.msra.mxu0 %v7719_v28  ;;  %3037 = vmatprep.mubr.f32.mxu0 %v7757_v24  ;;  %v7802_v28 = vld [vmem:[#allocation59_spill] sm:$0xff] }
 0x37c   :  { %4338 = vmatprep.subr.bf16.mxu0 %v7721_v63  ;;  %4548 = vmatpush1.bf16.msra.mxu1 %v7793_v50  ;;  %v7803_v63 = vld [vmem:[#allocation94_spill] sm:$0xff] }
 0x37d   :  { %4550 = vmatprep.subr.bf16.mxu1 %v7722_v23  ;;  %v7804_v23 = vld [vmem:[#allocation106_spill] sm:$0xff] }
 0x37f   :  { %4340 = vmatpush1.bf16.msra.mxu0 %v7723_v17  ;;  %3850 = vmatmul.mubr.f32.vlgmr.msra.gmra.mrb[4].mxu1 %v7792_v26  ;;  %v7805_v17 = vld [vmem:[#allocation99_spill] sm:$0xff] }
 0x380   :  { %4342 = vmatprep.subr.bf16.mxu0 %v7724_v13  ;;  %4552 = vmatpush1.bf16.msra.mxu1 %v7725_v20  ;;  %v7806_v13 = vld [vmem:[#allocation98_spill] sm:$0xff]  ;;  %v7807_v20 = vld [vmem:[#allocation55_spill] sm:$0xff] }
 0x381   :  { %3957 = vmatprep.mubr.f32.mxu1 %v7757_v24  ;;  %4554 = vmatprep.subr.bf16.mxu1 %v7726_v35  ;;  %v7808_v35 = vld [vmem:[#allocation19_spill] sm:$0xff] }
 0x382   :  { %v7812_v24 = vld [vmem:[#allocation23_spill] sm:$0xff] }
 0x383   :  { %4344 = vmatpush1.bf16.msra.mxu0 %v7727_v33  ;;  %v7809_v33 = vld [vmem:[#allocation109_spill] sm:$0xff] }
 0x384   :  { %4346 = vmatprep.subr.bf16.mxu0 %v7728_v19  ;;  %4556 = vmatpush1.bf16.msra.mxu1 %v7729_v44  ;;  %v7810_v19 = vld [vmem:[#allocation112_spill] sm:$0xff] }
 0x385   :  { %4558 = vmatprep.subr.bf16.mxu1 %v7794_v56  ;;  %v7811_v44 = vld [vmem:[#allocation28_spill] sm:$0xff]  ;;  %v3985_v56 = vld [vmem:[%s7087_s7] sm:$0x7] }
 0x387   :  { %4348 = vmatpush1.bf16.msra.mxu0 %v7795_v8  ;;  %v4023_v8 = vld [vmem:[%s7086_s6] sm:$0x7] }
 0x388   :  { %4350 = vmatprep.subr.bf16.mxu0 %v7796_v34  ;;  %4560 = vmatpush1.bf16.msra.mxu1 %v7797_v37 }
 0x389   :  { %4562 = vmatprep.subr.bf16.mxu1 %v7798_v1 }
 0x38b   :  { %4352 = vmatpush1.bf16.msra.mxu0 %v7799_v30 }
 0x38c   :  { %4354 = vmatprep.subr.bf16.mxu0 %v7800_v2  ;;  %4564 = vmatpush1.bf16.msra.mxu1 %v7801_v39  ;;  %v4027_v2 = vld [vmem:[%s7087_s7] sm:$0x7] }
 0x38d   :  { %4566 = vmatprep.subr.bf16.mxu1 %v7802_v28 }
 0x38f   :  { %4356 = vmatpush1.bf16.msra.mxu0 %v7803_v63 }
 0x390   :  { %4358 = vmatprep.subr.bf16.mxu0 %v7804_v23  ;;  %4568 = vmatpush1.bf16.msra.mxu1 %v7741_v40  ;;  %v7815_v40 = vld [vmem:[#allocation29_spill] sm:$0xff] }
 0x391   :  { %4570 = vmatprep.subr.bf16.mxu1 %v7805_v17 }
 0x393   :  { %4360 = vmatpush1.bf16.msra.mxu0 %v7806_v13 }
 0x394   :  { %4362 = vmatprep.subr.bf16.mxu0 %v7807_v20  ;;  %4572 = vmatpush1.bf16.msra.mxu1 %v7808_v35 }
 0x395   :  { %4574 = vmatprep.subr.bf16.mxu1 %v7809_v33 }
 0x397   :  { %4364 = vmatpush1.bf16.msra.mxu0 %v7810_v19 }
 0x398   :  { %4366 = vmatprep.subr.bf16.mxu0 %v7811_v44  ;;  %4576 = vmatpush1.bf16.msra.mxu1 %v7812_v24 }
 0x399   :  { %4578 = vmatprep.subr.bf16.mxu1 %v7813_v54 }
 0x39b   :  { %4368 = vmatpush1.bf16.msra.mxu0 %v7814_v3 }
 0x39c   :  { %4580 = vmatpush1.bf16.msra.mxu1 %v7815_v40 }
 0x39d   :  { %4582 = vmatprep.subr.bf16.mxu1 %v7755_v18 }
 0x39e   :  { %3039 = vmatmul.mubr.f32.vlgmr.msra.gmra.mrb[4].mxu0 %v7792_v26 }
 0x3a0   :  { %4584 = vmatpush1.bf16.msra.mxu1 %v7758_v43 }
 0x3a3   :  { %3959 = vmatmul.mubr.f32.vlgmr.msra.gmra.mrb[4].mxu1 %v7792_v26 }
 0x471   :  { %v3040_v12 = vpop.f32.mrb[4].mxu0 }
 0x472   :  { %v4593_v62 = vadd.f32 %v3040_v12, %v2118_v45  ;;  %v3042_v29 = vpop.f32.mrb[5].mxu0 }
 0x473   :  { %v4594_v4 = vadd.f32 %v3042_v29, %v2118_v45 }
 0x474   :  { %v3970_v52 = vmul.f32 %v4593_v62, %v4593_v62  ;;  %v3965_v9 = vsel %vm453_vm9, %v4593_v62, 0.0 }
 0x475   :  { %v3971_v22 = vmul.f32 %v4594_v4, %v4594_v4  ;;  %v3966_v59 = vsel %vm453_vm9, %v4594_v4, 0.0 }
 0x476   :  { %v3967_v60 = vadd.f32 %v3966_v59, %v3965_v9  ;;  %v3960_v46 = vpop.f32.mrb[4].mxu1  ;;  %v3972_v18 = vsel %vm453_vm9, %v3970_v52, 0.0 }
 0x477   :  { %v3973_v36 = vsel %vm453_vm9, %v3971_v22, 0.0  ;;  %v4595_v43 = vadd.f32 %v3960_v46, %v2118_v45  ;;  %v3962_v51 = vpop.f32.mrb[5].mxu1 }
 0x478   :  { %3968 = vadd.xlane.f32.xlu0 %v3967_v60  ;;  %v4596_v53 = vadd.f32 %v3962_v51, %v2118_v45  ;;  %v3974_v5 = vadd.f32 %v3973_v36, %v3972_v18 }
 0x479   :  { %v4012_v31 = vmul.f32 %v4595_v43, %v4595_v43  ;;  %v4007_v10 = vsel %vm453_vm9, %v4595_v43, 0.0 }
 0x47a   :  { %v4013_v21 = vmul.f32 %v4596_v53, %v4596_v53  ;;  %v4008_v48 = vsel %vm453_vm9, %v4596_v53, 0.0 }
 0x47b   :  { %v4009_v6 = vadd.f32 %v4008_v48, %v4007_v10  ;;  %v4014_v41 = vsel %vm453_vm9, %v4012_v31, 0.0 }
 0x47c   :  { %3975 = vadd.xlane.f32.xlu0 %v3974_v5  ;;  %v4015_v11 = vsel %vm453_vm9, %v4013_v21, 0.0 }
 0x47d   :  { %4010 = vadd.xlane.f32.xlu1 %v4009_v6  ;;  %v4016_v25 = vadd.f32 %v4015_v11, %v4014_v41 }
 0x480   :  { %4017 = vadd.xlane.f32.xlu0 %v4016_v25 }
 0x505   :  { %v3969_v42 = vpop.xlane.xlu0 %3968 }
 0x506   :  { %v3977_v47 = vmul.f32 0.00390625, %v3969_v42 }
 0x508   :  { %v3979_v15 = vmul.f32 %v3977_v47, %v3977_v47 }
 0x509   :  { %v3976_v0 = vpop.xlane.xlu0 %3975 }
 0x50a   :  { %v3978_v16 = vmul.f32 0.00390625, %v3976_v0  ;;  %v4011_v61 = vpop.xlane.xlu1 %4010 }
 0x50b   :  { %v4019_v58 = vmul.f32 0.00390625, %v4011_v61 }
 0x50c   :  { %v3980_v27 = vsub.f32 %v3978_v16, %v3979_v15 }
 0x50d   :  { %v4018_v55 = vpop.xlane.xlu0 %4017  ;;  %v4021_v7 = vmul.f32 %v4019_v58, %v4019_v58 }
 0x50e   :  { %v3982_v14 = vadd.f32 1e-05, %v3980_v27  ;;  %v4020_v38 = vmul.f32 0.00390625, %v4018_v55 }
 0x510   :  { %4675 = vrsqrt.f32 %v3982_v14  ;;  %v4022_v32 = vsub.f32 %v4020_v38, %v4021_v7 }
 0x512   :  { %v4024_v57 = vadd.f32 1e-05, %v4022_v32 }
 0x514   :  { %4677 = vrsqrt.f32 %v4024_v57 }
 0x51a   :  { %v4676_v26 = vpop.eup %4675 }
 0x51b   :  { %v3984_v50 = vmul.f32 %v4676_v26, %v3981_v49 }
 0x51d   :  { %3990 = vperm.xlu1 %4671, %v3984_v50   ;;  %v3986_v34 = vmul.f32 %v3984_v50, %v3977_v47 }
 0x51e   :  { %v4678_v37 = vpop.eup %4677 }
 0x51f   :  { %v3987_v1 = vsub.f32 %v3985_v56, %v3986_v34  ;;  %v4026_v30 = vmul.f32 %v4678_v37, %v4023_v8 }
 0x521   :  { %3997 = vperm.xlu1 %4671, %v3987_v1   ;;  %4032 = vperm.xlu0 %4670, %v4026_v30   ;;  %v4028_v39 = vmul.f32 %v4026_v30, %v4019_v58 }
 0x523   :  { %v4029_v28 = vsub.f32 %v4027_v2, %v4028_v39 }
 0x525   :  { %4039 = vperm.xlu1 %4671, %v4029_v28  }
 0x59c   :  { %v3991_v63 = vpop.permute.xlu1 %3990 }
 0x59d   :  { %v3993_v23 = vmul.f32 %v4593_v62, %v3991_v63  ;;  %v3994_v17 = vmul.f32 %v4594_v4, %v3991_v63 }
 0x5a0   :  { %v3998_v13 = vpop.permute.xlu1 %3997  ;;  %v4033_v20 = vpop.permute.xlu0 %4032 }
 0x5a1   :  { %v4000_v35 = vadd.f32 %v3998_v13, %v3993_v23  ;;  %v4001_v33 = vadd.f32 %v3998_v13, %v3994_v17  ;;  %v4035_v44 = vmul.f32 %v4595_v43, %v4033_v20  ;;  %v4036_v24 = vmul.f32 %v4596_v53, %v4033_v20 }
 0x5a3   :  { %v4004_v19 = vcombine.low %v4000_v35, %v4001_v33 }
 0x5a4   :  { %v4040_v54 = vpop.permute.xlu1 %4039 }
 0x5a5   :  { %4006 = vst [vmem:[%s7088_s8] sm:$0x77] %v4004_v19  ;;  %v4042_v3 = vadd.f32 %v4040_v54, %v4035_v44  ;;  %v4043_v40 = vadd.f32 %v4040_v54, %v4036_v24 }
 0x5a7   :  { %v4046_v45 = vcombine.low %v4042_v3, %v4043_v40 }
 0x5a9   :  { %4056 = vst [vmem:[%s7088_s8 + $0x8] sm:$0x77] %v4046_v45 }
 0x5aa   :  { %4054 = vsyncpa [#allocation4], 1 }

</bundles_post_ra>
